<compile_context>
chip_gen: v5e
topology: v5e:2x2
jax: 0.10.0
libtpu: 0.0.40
codegen_flags: <defaults>
</compile_context>

<pallas_src>
import functools

import jax
import jax.numpy as jnp
import numpy as np
from jax.experimental import pallas as pl
from jax.experimental.pallas import tpu as pltpu


# ----------------------------------------------------------------------------
# Fused kernel: backbone (4x conv3x3 + BN + LeakyReLU) + stride-2 downsample +
# RNN step + concat + two 1x1 convs, per batch element, all in VMEM.
# ----------------------------------------------------------------------------
def _make_fused_kernel(C, H, W, padm):
    HW = H * W
    C4 = C // 4

    def kernel(x_ref,
               w1, s1, b1, w2, s2, b2, w3, s3, b3, w4, s4, b4,
               wd, sd, bd, sel_ref,
               wu, su, bu, wp, sp, bp,
               wih_ref, whh_ref, bh_ref, who_ref, bo_ref,
               carry_ref, alpha_ref,
               pred_ref, carry_out_ref,
               pad_ref, patch_ref):
        # Column (lane) coordinate within each image row of the flattened map.
        ww = jax.lax.broadcasted_iota(jnp.int32, (1, HW), 1) % W
        left_ok = ww >= 1          # the pixel at w-1 exists
        right_ok = ww <= W - 2     # the pixel at w+1 exists

        # Zero the flat margins once; every layer fully rewrites the interior.
        pad_ref[...] = jnp.zeros(pad_ref.shape, pad_ref.dtype)

        def build_patch(src_bf, cin):
            """im2col of a 3x3/pad-1 window into patch[(kh*3+kw)*cin + c, h*W+w].

            Vertical over/under-runs land in the zero margins of the flat pad
            buffer; only the horizontal +-1 wrap needs masking.
            """
            pad_ref[0:cin, padm:padm + HW] = src_bf
            zero = jnp.zeros((cin, HW), jnp.bfloat16)
            for kh in range(3):
                for kw in range(3):
                    tap = kh * 3 + kw
                    off = padm + (kh - 1) * W + (kw - 1)
                    v = pad_ref[0:cin, off:off + HW]
                    if kw == 0:
                        v = jnp.where(left_ok, v, zero)
                    elif kw == 2:
                        v = jnp.where(right_ok, v, zero)
                    patch_ref[tap * cin:(tap + 1) * cin, :] = v

        def conv3x3_bn_lrelu(src_bf, cin, w_ref, s_ref, b_ref):
            """3x3/stride-1/pad-1 conv as ONE MXU matmul (K=9*cin) + BN + LReLU."""
            build_patch(src_bf, cin)
            y = jnp.dot(w_ref[...], patch_ref[0:9 * cin, :],
                        preferred_element_type=jnp.float32)   # (cout, HW)
            y = y * s_ref[...] + b_ref[...]                   # folded BN (eval)
            return jnp.where(y > 0.0, y, 0.1 * y)             # LeakyReLU(0.1)

        # ---- scaled_pred1..4 ------------------------------------------------
        a0 = x_ref[0].astype(jnp.bfloat16)                                 # (C, HW)
        a1 = conv3x3_bn_lrelu(a0, C, w1, s1, b1).astype(jnp.bfloat16)      # 2C
        a2 = conv3x3_bn_lrelu(a1, 2 * C, w2, s2, b2).astype(jnp.bfloat16)  # C
        a3 = conv3x3_bn_lrelu(a2, C, w3, s3, b3).astype(jnp.bfloat16)      # C/2
        a4 = conv3x3_bn_lrelu(a3, C // 2, w4, s4, b4).astype(jnp.bfloat16) # C/4

        # ---- downsample1: 3x3 stride-2 pad-1 conv ---------------------------
        # Build the full-res patch once, pick the stride-2 columns with a 0/1
        # selection matrix (single small matmul), then one conv matmul.
        build_patch(a4, C4)
        psub = jnp.dot(patch_ref[0:9 * C4, :], sel_ref[...],
                       preferred_element_type=jnp.float32)     # (9*C4, HW/4)
        ds = jnp.dot(wd[...], psub.astype(jnp.bfloat16),
                     preferred_element_type=jnp.float32)       # (C4, HW/4)
        ds = ds * sd[...] + bd[...]
        ds = jnp.where(ds > 0.0, ds, 0.1 * ds)                 # f32
        ds_bf = ds.astype(jnp.bfloat16)

        # ---- HippoRNN step --------------------------------------------------
        # torch.flatten(downscale_out, 1) (NCHW order) is consumed as the ds
        # row blocks directly - the flat vector is never materialized.
        # TODO(synk): HippoRNN_v2 source was not provided; implemented as a
        # single tanh-RNN step with a HiPPO-style 1/(t+1) running-average carry.
        rnn_in = None
        for c in range(C4):
            part = jnp.dot(ds_bf[c:c + 1, :], wih_ref[c],
                           preferred_element_type=jnp.float32)  # (1, hidden)
            rnn_in = part if rnn_in is None else rnn_in + part
        carry = carry_ref[0]                                    # (1, hidden)
        h = jnp.tanh(rnn_in
                     + jnp.dot(carry.astype(jnp.bfloat16), whh_ref[...],
                               preferred_element_type=jnp.float32)
                     + bh_ref[...])
        carry_out_ref[0] = carry + (h - carry) * alpha_ref[...]

        # RNN output emitted straight in (C4, HW/4) image layout (no in-kernel
        # flat->image relayout).
        h_bf = h.astype(jnp.bfloat16)
        rows = [jnp.dot(h_bf, who_ref[c], preferred_element_type=jnp.float32)
                for c in range(C4)]
        rnn_img = jnp.concatenate(rows, axis=0) + bo_ref[...]   # (C4, HW/4) f32

        # ---- cat + upsample1(1x1 conv) + scaled_pred6(1x1 conv), half-res ----
        cat = jnp.concatenate([rnn_img, ds], axis=0).astype(jnp.bfloat16)
        y = jnp.dot(wu[...], cat, preferred_element_type=jnp.float32)   # (C, HW/4)
        y = y * su[...] + bu[...]
        y = jnp.where(y > 0.0, y, 0.1 * y)
        p = jnp.dot(wp[...], y.astype(jnp.bfloat16),
                    preferred_element_type=jnp.float32)                 # (NP, HW/4)
        p = p * sp[...] + bp[...]
        p = jnp.where(p > 0.0, p, 0.1 * p)
        pred_ref[0] = p

    return kernel


# ----------------------------------------------------------------------------
# ScaledPrediction forward
# ----------------------------------------------------------------------------
def scaled_prediction_forward(params, x_nchw, t, carry, nclasses):
    B, C, H, W = x_nchw.shape
    HW = H * W
    HW2 = (H // 2) * (W // 2)
    NP = (nclasses + 5) * 3
    hidden = carry.shape[-1]
    padm = max(128, W + 1)                         # flat zero margin (lane-aligned)

    x_flat = x_nchw.reshape(B, C, HW)              # channels-first, lane-dense
    carry3 = carry.reshape(B, 1, hidden)
    alpha = (1.0 / (jnp.asarray(t, jnp.float32) + 1.0)).reshape(1, 1)

    rnn = params["rnn"]
    inputs = [
        x_flat,
        *params["p1"], *params["p2"], *params["p3"], *params["p4"],
        *params["down"],
        params["sel"],
        *params["up"], *params["p6"],
        rnn["wih3"], rnn["whh"], rnn["bh"], rnn["who3"], rnn["bo2"],
        carry3,
        alpha,
    ]

    def _const(a):
        nd = a.ndim
        return pl.BlockSpec(a.shape, lambda b, _nd=nd: (0,) * _nd)

    in_specs = ([pl.BlockSpec((1, C, HW), lambda b: (b, 0, 0))]
                + [_const(a) for a in inputs[1:-2]]
                + [pl.BlockSpec((1, 1, hidden), lambda b: (b, 0, 0)),
                   _const(alpha)])

    kernel = _make_fused_kernel(C, H, W, padm)

    pred_half, carry_new = pl.pallas_call(
        kernel,
        out_shape=(jax.ShapeDtypeStruct((B, NP, HW2), jnp.float32),
                   jax.ShapeDtypeStruct((B, 1, hidden), jnp.float32)),
        grid=(B,),
        in_specs=in_specs,
        out_specs=(pl.BlockSpec((1, NP, HW2), lambda b: (b, 0, 0)),
                   pl.BlockSpec((1, 1, hidden), lambda b: (b, 0, 0))),
        scratch_shapes=[
            pltpu.VMEM((2 * C, HW + 2 * padm), jnp.bfloat16),   # zero-margined pad buf
            pltpu.VMEM((9 * 2 * C, HW), jnp.bfloat16),          # im2col patch
        ],
        compiler_params=pltpu.CompilerParams(
            dimension_semantics=("parallel",),
            vmem_limit_bytes=32 * 1024 * 1024),
    )(*inputs)

    # Nearest x2 upsample (commuted past the pointwise head): single
    # broadcast_to + reshape, then the reference reshape/permute.
    ph = pred_half.reshape(B, NP, H // 2, W // 2)
    up = jnp.broadcast_to(ph[:, :, :, None, :, None],
                          (B, NP, H // 2, 2, W // 2, 2)).reshape(B, NP, H, W)
    out = up.reshape(B, 3, nclasses + 5, H, W).transpose(0, 1, 3, 4, 2)
    return out, carry_new.reshape(B, hidden)


# ----------------------------------------------------------------------------
# Parameter init (deterministic, synthetic).  BN folded (eval semantics),
# conv weights pre-cast to bf16 and pre-reshaped to the kernel's im2col layout.
# ----------------------------------------------------------------------------
def _fold_bn(key, cout):
    kb, kg, kbeta, km, kv = jax.random.split(key, 5)
    conv_b = jax.random.normal(kb, (cout,), jnp.float32) * 0.1
    gamma = jax.random.uniform(kg, (cout,), jnp.float32, 0.8, 1.2)
    beta = jax.random.normal(kbeta, (cout,), jnp.float32) * 0.05
    mean = jax.random.normal(km, (cout,), jnp.float32) * 0.05
    var = jax.random.uniform(kv, (cout,), jnp.float32, 0.8, 1.2)
    scale = gamma / jnp.sqrt(var + 1e-5)
    bias = (conv_b - mean) * scale + beta
    return scale.reshape(cout, 1), bias.reshape(cout, 1)


def init_conv3_bn(key, cin, cout):
    kw_, kbn = jax.random.split(key)
    w = jax.random.normal(kw_, (3, 3, cin, cout), jnp.float32) * 0.1
    scale, bias = _fold_bn(kbn, cout)
    # Kernel layout: (cout, 9*cin) with column index (kh*3+kw)*cin + c.
    w2 = w.reshape(9 * cin, cout).T.astype(jnp.bfloat16)
    return w2, scale, bias


def init_conv1_bn(key, cin, cout):
    kw_, kbn = jax.random.split(key)
    w = (jax.random.normal(kw_, (cout, cin), jnp.float32) * 0.1).astype(jnp.bfloat16)
    scale, bias = _fold_bn(kbn, cout)
    return w, scale, bias


def init_rnn(key, C4, HW2, hidden):
    F = C4 * HW2
    k = jax.random.split(key, 5)
    wih = jax.random.normal(k[0], (F, hidden), jnp.float32) / (F ** 0.5)
    whh = jax.random.normal(k[1], (hidden, hidden), jnp.float32) / (hidden ** 0.5)
    bh = jax.random.normal(k[2], (1, hidden), jnp.float32) * 0.05
    who = jax.random.normal(k[3], (hidden, F), jnp.float32) / (hidden ** 0.5)
    bo = jax.random.normal(k[4], (1, F), jnp.float32) * 0.05
    return {
        # (c, p, k): row c*HW2+p of wih  -> matches NCHW flatten of downsample.
        "wih3": wih.reshape(C4, HW2, hidden).astype(jnp.bfloat16),
        "whh": whh.astype(jnp.bfloat16),
        "bh": bh,
        # (c, k, p): columns c*HW2+p of who -> RNN output directly as an image.
        "who3": who.reshape(hidden, C4, HW2).transpose(1, 0, 2).astype(jnp.bfloat16),
        "bo2": bo.reshape(C4, HW2),
    }


def make_stride2_select(H, W):
    """0/1 matrix (H*W, H*W/4): column j picks the stride-2 window centre pixel."""
    H2, W2 = H // 2, W // 2
    j = jnp.arange(H2 * W2)
    rows = (2 * (j // W2)) * W + 2 * (j % W2)
    return (jnp.zeros((H * W, H2 * W2), jnp.float32)
            .at[rows, j].set(1.0).astype(jnp.bfloat16))


def init_params(key, channels, image_size, hidden_size, nclasses):
    C, Hs = channels, image_size
    keys = jax.random.split(key, 8)
    return {
        "p1": init_conv3_bn(keys[0], C, 2 * C),
        "p2": init_conv3_bn(keys[1], 2 * C, C),
        "p3": init_conv3_bn(keys[2], C, C // 2),
        "p4": init_conv3_bn(keys[3], C // 2, C // 4),
        "down": init_conv3_bn(keys[4], C // 4, C // 4),
        "up": init_conv1_bn(keys[5], C // 2, C),
        "p6": init_conv1_bn(keys[6], C, (nclasses + 5) * 3),
        "rnn": init_rnn(keys[7], C // 4, (Hs // 2) * (Hs // 2), hidden_size),
        "sel": make_stride2_select(Hs, Hs),
    }


# ----------------------------------------------------------------------------
# Plain-XLA f32 reference (same folded-BN / placeholder-RNN semantics) used to
# validate the fused kernel numerically.
# ----------------------------------------------------------------------------
def _conv3_ref(x, w2, scale, bias, stride):
    cout, k2 = w2.shape
    cin = k2 // 9
    w = w2.astype(jnp.float32).reshape(cout, 3, 3, cin).transpose(0, 3, 1, 2)
    y = jax.lax.conv_general_dilated(
        x, w, window_strides=(stride, stride), padding=((1, 1), (1, 1)),
        dimension_numbers=("NCHW", "OIHW", "NCHW"),
        precision=jax.lax.Precision.HIGHEST)
    y = y * scale.reshape(1, cout, 1, 1) + bias.reshape(1, cout, 1, 1)
    return jnp.where(y > 0, y, 0.1 * y)


def _conv1_ref(x, w, scale, bias):
    cout = w.shape[0]
    y = jnp.einsum("oi,bihw->bohw", w.astype(jnp.float32), x,
                   precision=jax.lax.Precision.HIGHEST)
    y = y * scale.reshape(1, cout, 1, 1) + bias.reshape(1, cout, 1, 1)
    return jnp.where(y > 0, y, 0.1 * y)


def reference_forward(params, x, t, carry, nclasses):
    B, C, H, W = x.shape
    C4 = C // 4
    a = _conv3_ref(x, *params["p1"], 1)
    a = _conv3_ref(a, *params["p2"], 1)
    a = _conv3_ref(a, *params["p3"], 1)
    a = _conv3_ref(a, *params["p4"], 1)
    ds = _conv3_ref(a, *params["down"], 2)
    flat = ds.reshape(B, -1)
    r = params["rnn"]
    hidden = r["whh"].shape[0]
    wih = r["wih3"].astype(jnp.float32).reshape(-1, hidden)
    who = r["who3"].astype(jnp.float32).transpose(1, 0, 2).reshape(hidden, -1)
    h = jnp.tanh(flat @ wih + carry @ r["whh"].astype(jnp.float32) + r["bh"])
    carry_new = carry + (h - carry) * (1.0 / (jnp.asarray(t, jnp.float32) + 1.0))
    rnn_img = (h @ who + r["bo2"].reshape(1, -1)).reshape(B, C4, H // 2, W // 2)
    cat = jnp.concatenate([rnn_img, ds], axis=1)
    u = _conv1_ref(cat, *params["up"])
    u = jnp.repeat(jnp.repeat(u, 2, axis=2), 2, axis=3)
    p = _conv1_ref(u, *params["p6"])
    out = p.reshape(B, 3, nclasses + 5, H, W).transpose(0, 1, 3, 4, 2)
    return out, carry_new


if __name__ == "__main__":
    # channels=16 makes the HippoRNN sizing formula in the reference module
    # self-consistent with the flattened downsample feature count (F = 256).
    B, C, Hs, Ws = 2, 16, 16, 16
    hidden_size, nclasses, maxlength = 32, 3, 8
    t = 3.0

    key = jax.random.PRNGKey(0)
    k_param, k_x, k_c = jax.random.split(key, 3)
    params = init_params(k_param, C, Hs, hidden_size, nclasses)
    x = jax.random.normal(k_x, (B, C, Hs, Ws), jnp.float32)
    carry = jax.random.normal(k_c, (B, hidden_size), jnp.float32) * 0.1

    fwd = jax.jit(functools.partial(scaled_prediction_forward, nclasses=nclasses))
    out, carry_new = fwd(params, x, t, carry)
    jax.block_until_ready((out, carry_new))

    assert out.shape == (B, 3, Hs, Ws, nclasses + 5), out.shape
    assert carry_new.shape == (B, hidden_size), carry_new.shape

    # Numerical validation against the plain-XLA f32 reference (bf16 MXU tol).
    ref_out, ref_carry = reference_forward(params, x, t, carry, nclasses)
    np.testing.assert_allclose(np.asarray(out), np.asarray(ref_out),
                               rtol=0.1, atol=0.1)
    np.testing.assert_allclose(np.asarray(carry_new), np.asarray(ref_carry),
                               rtol=0.1, atol=0.1)
    print("KERNEL_OK")
</pallas_src>

<mosaic_0001>
module attributes {stable_mosaic.version = 11 : i64} {
  func.func @kernel(%arg0: i32, %arg1: memref<1x16x256xf32, #tpu.memory_space<vmem>>, %arg2: memref<32x144xbf16, #tpu.memory_space<vmem>>, %arg3: memref<32x1xf32, #tpu.memory_space<vmem>>, %arg4: memref<32x1xf32, #tpu.memory_space<vmem>>, %arg5: memref<16x288xbf16, #tpu.memory_space<vmem>>, %arg6: memref<16x1xf32, #tpu.memory_space<vmem>>, %arg7: memref<16x1xf32, #tpu.memory_space<vmem>>, %arg8: memref<8x144xbf16, #tpu.memory_space<vmem>>, %arg9: memref<8x1xf32, #tpu.memory_space<vmem>>, %arg10: memref<8x1xf32, #tpu.memory_space<vmem>>, %arg11: memref<4x72xbf16, #tpu.memory_space<vmem>>, %arg12: memref<4x1xf32, #tpu.memory_space<vmem>>, %arg13: memref<4x1xf32, #tpu.memory_space<vmem>>, %arg14: memref<4x36xbf16, #tpu.memory_space<vmem>>, %arg15: memref<4x1xf32, #tpu.memory_space<vmem>>, %arg16: memref<4x1xf32, #tpu.memory_space<vmem>>, %arg17: memref<256x64xbf16, #tpu.memory_space<vmem>>, %arg18: memref<16x8xbf16, #tpu.memory_space<vmem>>, %arg19: memref<16x1xf32, #tpu.memory_space<vmem>>, %arg20: memref<16x1xf32, #tpu.memory_space<vmem>>, %arg21: memref<24x16xbf16, #tpu.memory_space<vmem>>, %arg22: memref<24x1xf32, #tpu.memory_space<vmem>>, %arg23: memref<24x1xf32, #tpu.memory_space<vmem>>, %arg24: memref<4x64x32xbf16, #tpu.memory_space<vmem>>, %arg25: memref<32x32xbf16, #tpu.memory_space<vmem>>, %arg26: memref<1x32xf32, #tpu.memory_space<vmem>>, %arg27: memref<4x32x64xbf16, #tpu.memory_space<vmem>>, %arg28: memref<4x64xf32, #tpu.memory_space<vmem>>, %arg29: memref<1x1x32xf32, #tpu.memory_space<vmem>>, %arg30: memref<1x1xf32, #tpu.memory_space<vmem>>, %arg31: memref<1x24x64xf32, #tpu.memory_space<vmem>>, %arg32: memref<1x1x32xf32, #tpu.memory_space<vmem>>, %arg33: memref<32x512xbf16, #tpu.memory_space<vmem>>, %arg34: memref<288x256xbf16, #tpu.memory_space<vmem>>) attributes {dimension_semantics = [#tpu.dimension_semantics<parallel>], iteration_bounds = array<i64: 2>, scalar_prefetch = 0 : i64, scratch_operands = 2 : i64, tpu.core_type = #tpu.core_type<tc>, window_params = [{transform_indices = @transform_0, window_bounds = array<i64: 1, 16, 256>}, {pipeline_mode = #tpu.pipeline_mode<synchronous>, transform_indices = @transform_1, window_bounds = array<i64: 32, 144>}, {pipeline_mode = #tpu.pipeline_mode<synchronous>, transform_indices = @transform_2, window_bounds = array<i64: 32, 1>}, {pipeline_mode = #tpu.pipeline_mode<synchronous>, transform_indices = @transform_3, window_bounds = array<i64: 32, 1>}, {pipeline_mode = #tpu.pipeline_mode<synchronous>, transform_indices = @transform_4, window_bounds = array<i64: 16, 288>}, {pipeline_mode = #tpu.pipeline_mode<synchronous>, transform_indices = @transform_5, window_bounds = array<i64: 16, 1>}, {pipeline_mode = #tpu.pipeline_mode<synchronous>, transform_indices = @transform_6, window_bounds = array<i64: 16, 1>}, {pipeline_mode = #tpu.pipeline_mode<synchronous>, transform_indices = @transform_7, window_bounds = array<i64: 8, 144>}, {pipeline_mode = #tpu.pipeline_mode<synchronous>, transform_indices = @transform_8, window_bounds = array<i64: 8, 1>}, {pipeline_mode = #tpu.pipeline_mode<synchronous>, transform_indices = @transform_9, window_bounds = array<i64: 8, 1>}, {pipeline_mode = #tpu.pipeline_mode<synchronous>, transform_indices = @transform_10, window_bounds = array<i64: 4, 72>}, {pipeline_mode = #tpu.pipeline_mode<synchronous>, transform_indices = @transform_11, window_bounds = array<i64: 4, 1>}, {pipeline_mode = #tpu.pipeline_mode<synchronous>, transform_indices = @transform_12, window_bounds = array<i64: 4, 1>}, {pipeline_mode = #tpu.pipeline_mode<synchronous>, transform_indices = @transform_13, window_bounds = array<i64: 4, 36>}, {pipeline_mode = #tpu.pipeline_mode<synchronous>, transform_indices = @transform_14, window_bounds = array<i64: 4, 1>}, {pipeline_mode = #tpu.pipeline_mode<synchronous>, transform_indices = @transform_15, window_bounds = array<i64: 4, 1>}, {pipeline_mode = #tpu.pipeline_mode<synchronous>, transform_indices = @transform_16, window_bounds = array<i64: 256, 64>}, {pipeline_mode = #tpu.pipeline_mode<synchronous>, transform_indices = @transform_17, window_bounds = array<i64: 16, 8>}, {pipeline_mode = #tpu.pipeline_mode<synchronous>, transform_indices = @transform_18, window_bounds = array<i64: 16, 1>}, {pipeline_mode = #tpu.pipeline_mode<synchronous>, transform_indices = @transform_19, window_bounds = array<i64: 16, 1>}, {pipeline_mode = #tpu.pipeline_mode<synchronous>, transform_indices = @transform_20, window_bounds = array<i64: 24, 16>}, {pipeline_mode = #tpu.pipeline_mode<synchronous>, transform_indices = @transform_21, window_bounds = array<i64: 24, 1>}, {pipeline_mode = #tpu.pipeline_mode<synchronous>, transform_indices = @transform_22, window_bounds = array<i64: 24, 1>}, {pipeline_mode = #tpu.pipeline_mode<synchronous>, transform_indices = @transform_23, window_bounds = array<i64: 4, 64, 32>}, {pipeline_mode = #tpu.pipeline_mode<synchronous>, transform_indices = @transform_24, window_bounds = array<i64: 32, 32>}, {pipeline_mode = #tpu.pipeline_mode<synchronous>, transform_indices = @transform_25, window_bounds = array<i64: 1, 32>}, {pipeline_mode = #tpu.pipeline_mode<synchronous>, transform_indices = @transform_26, window_bounds = array<i64: 4, 32, 64>}, {pipeline_mode = #tpu.pipeline_mode<synchronous>, transform_indices = @transform_27, window_bounds = array<i64: 4, 64>}, {transform_indices = @transform_28, window_bounds = array<i64: 1, 1, 32>}, {pipeline_mode = #tpu.pipeline_mode<synchronous>, transform_indices = @transform_29, window_bounds = array<i64: 1, 1>}, {transform_indices = @transform_30, window_bounds = array<i64: 1, 24, 64>}, {transform_indices = @transform_31, window_bounds = array<i64: 1, 1, 32>}]} {
    %0 = tpu.iota {dimensions = array<i32: 1>} : vector<1x256xi32>
    %c16_i32 = arith.constant 16 : i32
    %c0_i32 = arith.constant 0 : i32
    %1 = arith.cmpi eq, %c16_i32, %c0_i32 : i32
    %c1_i32 = arith.constant 1 : i32
    %2 = arith.select %1, %c1_i32, %c16_i32 : i32
    %3 = vector.broadcast %2 : i32 to vector<1x256xi32>
    %4 = arith.remsi %0, %3 : vector<1x256xi32>
    %c0_i32_0 = arith.constant 0 : i32
    %5 = vector.broadcast %c0_i32_0 : i32 to vector<1x256xi32>
    %6 = arith.cmpi ne, %4, %5 : vector<1x256xi32>
    %c0_i32_1 = arith.constant 0 : i32
    %7 = vector.broadcast %c0_i32_1 : i32 to vector<1x256xi32>
    %8 = arith.cmpi slt, %4, %7 : vector<1x256xi32>
    %c0_i32_2 = arith.constant 0 : i32
    %9 = arith.cmpi slt, %2, %c0_i32_2 : i32
    %10 = vector.broadcast %9 : i1 to vector<1x256xi1>
    %11 = vector.broadcast %10 : vector<1x256xi1> to vector<1x256xi1>
    %12 = arith.xori %8, %11 : vector<1x256xi1>
    %13 = arith.andi %12, %6 : vector<1x256xi1>
    %14 = vector.broadcast %2 : i32 to vector<1x256xi32>
    %15 = arith.addi %4, %14 : vector<1x256xi32>
    %16 = arith.select %13, %15, %4 : vector<1x256xi1>, vector<1x256xi32>
    %c1_i32_3 = arith.constant 1 : i32
    %17 = vector.broadcast %c1_i32_3 : i32 to vector<1x256xi32>
    %18 = arith.cmpi sge, %16, %17 : vector<1x256xi32>
    %c14_i32 = arith.constant 14 : i32
    %19 = vector.broadcast %c14_i32 : i32 to vector<1x256xi32>
    %20 = arith.cmpi sle, %16, %19 : vector<1x256xi32>
    %cst = arith.constant 0.000000e+00 : bf16
    %21 = vector.broadcast %cst : bf16 to vector<32x512xbf16>
    %c0 = arith.constant 0 : index
    %c0_4 = arith.constant 0 : index
    %22 = vector.load %arg33[%c0, %c0_4] : memref<32x512xbf16, #tpu.memory_space<vmem>>, vector<32x512xbf16>
    tpu.vector_store %arg33[%c0, %c0_4], %21 {strides = array<i32>} : memref<32x512xbf16, #tpu.memory_space<vmem>>, vector<32x512xbf16>,
    %c0_5 = arith.constant 0 : index
    %c0_6 = arith.constant 0 : index
    %c0_7 = arith.constant 0 : index
    %23 = vector.load %arg1[%c0_5, %c0_6, %c0_7] : memref<1x16x256xf32, #tpu.memory_space<vmem>>, vector<1x16x256xf32>
    %24 = vector.shape_cast %23 : vector<1x16x256xf32> to vector<16x256xf32>
    %25 = arith.truncf %24 : vector<16x256xf32> to vector<16x256xbf16>
    %c0_8 = arith.constant 0 : index
    %c128 = arith.constant 128 : index
    %26 = vector.load %arg33[%c0_8, %c128] : memref<32x512xbf16, #tpu.memory_space<vmem>>, vector<16x256xbf16>
    tpu.vector_store %arg33[%c0_8, %c128], %25 {strides = array<i32>} : memref<32x512xbf16, #tpu.memory_space<vmem>>, vector<16x256xbf16>,
    %cst_9 = arith.constant 0.000000e+00 : bf16
    %27 = vector.broadcast %cst_9 : bf16 to vector<16x256xbf16>
    %c0_10 = arith.constant 0 : index
    %c111 = arith.constant 111 : index
    %28 = vector.load %arg33[%c0_10, %c111] : memref<32x512xbf16, #tpu.memory_space<vmem>>, vector<16x256xbf16>
    %29 = vector.shape_cast %18 : vector<1x256xi1> to vector<1x256xi1>
    %30 = vector.broadcast %29 : vector<1x256xi1> to vector<16x256xi1>
    %31 = arith.select %30, %28, %27 : vector<16x256xi1>, vector<16x256xbf16>
    %c0_11 = arith.constant 0 : index
    %c0_12 = arith.constant 0 : index
    %32 = vector.load %arg34[%c0_11, %c0_12] : memref<288x256xbf16, #tpu.memory_space<vmem>>, vector<16x256xbf16>
    tpu.vector_store %arg34[%c0_11, %c0_12], %31 {strides = array<i32>} : memref<288x256xbf16, #tpu.memory_space<vmem>>, vector<16x256xbf16>,
    %c0_13 = arith.constant 0 : index
    %c112 = arith.constant 112 : index
    %33 = vector.load %arg33[%c0_13, %c112] : memref<32x512xbf16, #tpu.memory_space<vmem>>, vector<16x256xbf16>
    %c16 = arith.constant 16 : index
    %c0_14 = arith.constant 0 : index
    %34 = vector.load %arg34[%c16, %c0_14] : memref<288x256xbf16, #tpu.memory_space<vmem>>, vector<16x256xbf16>
    tpu.vector_store %arg34[%c16, %c0_14], %33 {strides = array<i32>} : memref<288x256xbf16, #tpu.memory_space<vmem>>, vector<16x256xbf16>,
    %c0_15 = arith.constant 0 : index
    %c113 = arith.constant 113 : index
    %35 = vector.load %arg33[%c0_15, %c113] : memref<32x512xbf16, #tpu.memory_space<vmem>>, vector<16x256xbf16>
    %36 = vector.shape_cast %20 : vector<1x256xi1> to vector<1x256xi1>
    %37 = vector.broadcast %36 : vector<1x256xi1> to vector<16x256xi1>
    %38 = arith.select %37, %35, %27 : vector<16x256xi1>, vector<16x256xbf16>
    %c32 = arith.constant 32 : index
    %c0_16 = arith.constant 0 : index
    %39 = vector.load %arg34[%c32, %c0_16] : memref<288x256xbf16, #tpu.memory_space<vmem>>, vector<16x256xbf16>
    tpu.vector_store %arg34[%c32, %c0_16], %38 {strides = array<i32>} : memref<288x256xbf16, #tpu.memory_space<vmem>>, vector<16x256xbf16>,
    %c0_17 = arith.constant 0 : index
    %c127 = arith.constant 127 : index
    %40 = vector.load %arg33[%c0_17, %c127] : memref<32x512xbf16, #tpu.memory_space<vmem>>, vector<16x256xbf16>
    %41 = vector.shape_cast %18 : vector<1x256xi1> to vector<1x256xi1>
    %42 = vector.broadcast %41 : vector<1x256xi1> to vector<16x256xi1>
    %43 = arith.select %42, %40, %27 : vector<16x256xi1>, vector<16x256xbf16>
    %c48 = arith.constant 48 : index
    %c0_18 = arith.constant 0 : index
    %44 = vector.load %arg34[%c48, %c0_18] : memref<288x256xbf16, #tpu.memory_space<vmem>>, vector<16x256xbf16>
    tpu.vector_store %arg34[%c48, %c0_18], %43 {strides = array<i32>} : memref<288x256xbf16, #tpu.memory_space<vmem>>, vector<16x256xbf16>,
    %c0_19 = arith.constant 0 : index
    %c128_20 = arith.constant 128 : index
    %45 = vector.load %arg33[%c0_19, %c128_20] : memref<32x512xbf16, #tpu.memory_space<vmem>>, vector<16x256xbf16>
    %c64 = arith.constant 64 : index
    %c0_21 = arith.constant 0 : index
    %46 = vector.load %arg34[%c64, %c0_21] : memref<288x256xbf16, #tpu.memory_space<vmem>>, vector<16x256xbf16>
    tpu.vector_store %arg34[%c64, %c0_21], %45 {strides = array<i32>} : memref<288x256xbf16, #tpu.memory_space<vmem>>, vector<16x256xbf16>,
    %c0_22 = arith.constant 0 : index
    %c129 = arith.constant 129 : index
    %47 = vector.load %arg33[%c0_22, %c129] : memref<32x512xbf16, #tpu.memory_space<vmem>>, vector<16x256xbf16>
    %48 = vector.shape_cast %20 : vector<1x256xi1> to vector<1x256xi1>
    %49 = vector.broadcast %48 : vector<1x256xi1> to vector<16x256xi1>
    %50 = arith.select %49, %47, %27 : vector<16x256xi1>, vector<16x256xbf16>
    %c80 = arith.constant 80 : index
    %c0_23 = arith.constant 0 : index
    %51 = vector.load %arg34[%c80, %c0_23] : memref<288x256xbf16, #tpu.memory_space<vmem>>, vector<16x256xbf16>
    tpu.vector_store %arg34[%c80, %c0_23], %50 {strides = array<i32>} : memref<288x256xbf16, #tpu.memory_space<vmem>>, vector<16x256xbf16>,
    %c0_24 = arith.constant 0 : index
    %c143 = arith.constant 143 : index
    %52 = vector.load %arg33[%c0_24, %c143] : memref<32x512xbf16, #tpu.memory_space<vmem>>, vector<16x256xbf16>
    %53 = vector.shape_cast %18 : vector<1x256xi1> to vector<1x256xi1>
    %54 = vector.broadcast %53 : vector<1x256xi1> to vector<16x256xi1>
    %55 = arith.select %54, %52, %27 : vector<16x256xi1>, vector<16x256xbf16>
    %c96 = arith.constant 96 : index
    %c0_25 = arith.constant 0 : index
    %56 = vector.load %arg34[%c96, %c0_25] : memref<288x256xbf16, #tpu.memory_space<vmem>>, vector<16x256xbf16>
    tpu.vector_store %arg34[%c96, %c0_25], %55 {strides = array<i32>} : memref<288x256xbf16, #tpu.memory_space<vmem>>, vector<16x256xbf16>,
    %c0_26 = arith.constant 0 : index
    %c144 = arith.constant 144 : index
    %57 = vector.load %arg33[%c0_26, %c144] : memref<32x512xbf16, #tpu.memory_space<vmem>>, vector<16x256xbf16>
    %c112_27 = arith.constant 112 : index
    %c0_28 = arith.constant 0 : index
    %58 = vector.load %arg34[%c112_27, %c0_28] : memref<288x256xbf16, #tpu.memory_space<vmem>>, vector<16x256xbf16>
    tpu.vector_store %arg34[%c112_27, %c0_28], %57 {strides = array<i32>} : memref<288x256xbf16, #tpu.memory_space<vmem>>, vector<16x256xbf16>,
    %c0_29 = arith.constant 0 : index
    %c145 = arith.constant 145 : index
    %59 = vector.load %arg33[%c0_29, %c145] : memref<32x512xbf16, #tpu.memory_space<vmem>>, vector<16x256xbf16>
    %60 = vector.shape_cast %20 : vector<1x256xi1> to vector<1x256xi1>
    %61 = vector.broadcast %60 : vector<1x256xi1> to vector<16x256xi1>
    %62 = arith.select %61, %59, %27 : vector<16x256xi1>, vector<16x256xbf16>
    %c128_30 = arith.constant 128 : index
    %c0_31 = arith.constant 0 : index
    %63 = vector.load %arg34[%c128_30, %c0_31] : memref<288x256xbf16, #tpu.memory_space<vmem>>, vector<16x256xbf16>
    tpu.vector_store %arg34[%c128_30, %c0_31], %62 {strides = array<i32>} : memref<288x256xbf16, #tpu.memory_space<vmem>>, vector<16x256xbf16>,
    %c0_32 = arith.constant 0 : index
    %c0_33 = arith.constant 0 : index
    %64 = vector.load %arg2[%c0_32, %c0_33] : memref<32x144xbf16, #tpu.memory_space<vmem>>, vector<32x144xbf16>
    %c0_34 = arith.constant 0 : index
    %c0_35 = arith.constant 0 : index
    %65 = vector.load %arg34[%c0_34, %c0_35] : memref<288x256xbf16, #tpu.memory_space<vmem>>, vector<144x256xbf16>
    %cst_36 = arith.constant dense<0.000000e+00> : vector<32x256xf32>
    %66 = tpu.matmul %64, %65, %cst_36 {dimension_numbers = #tpu.dot_dimension_numbers<[1], [0], [0], [1], [0, 0, 1, 1], [], []>} : vector<32x144xbf16>, vector<144x256xbf16>, vector<32x256xf32> -> vector<32x256xf32>
    %c0_37 = arith.constant 0 : index
    %c0_38 = arith.constant 0 : index
    %67 = vector.load %arg3[%c0_37, %c0_38] : memref<32x1xf32, #tpu.memory_space<vmem>>, vector<32x1xf32>
    %68 = vector.broadcast %67 : vector<32x1xf32> to vector<32x256xf32>
    %69 = arith.mulf %66, %68 : vector<32x256xf32>
    %c0_39 = arith.constant 0 : index
    %c0_40 = arith.constant 0 : index
    %70 = vector.load %arg4[%c0_39, %c0_40] : memref<32x1xf32, #tpu.memory_space<vmem>>, vector<32x1xf32>
    %71 = vector.broadcast %70 : vector<32x1xf32> to vector<32x256xf32>
    %72 = arith.addf %69, %71 : vector<32x256xf32>
    %cst_41 = arith.constant 0.000000e+00 : f32
    %73 = vector.broadcast %cst_41 : f32 to vector<32x256xf32>
    %74 = arith.cmpf ogt, %72, %73 : vector<32x256xf32>
    %cst_42 = arith.constant 1.000000e-01 : f32
    %75 = vector.broadcast %cst_42 : f32 to vector<32x256xf32>
    %76 = arith.mulf %75, %72 : vector<32x256xf32>
    %77 = arith.select %74, %72, %76 : vector<32x256xi1>, vector<32x256xf32>
    %78 = arith.truncf %77 : vector<32x256xf32> to vector<32x256xbf16>
    %c0_43 = arith.constant 0 : index
    %c128_44 = arith.constant 128 : index
    %79 = vector.load %arg33[%c0_43, %c128_44] : memref<32x512xbf16, #tpu.memory_space<vmem>>, vector<32x256xbf16>
    tpu.vector_store %arg33[%c0_43, %c128_44], %78 {strides = array<i32>} : memref<32x512xbf16, #tpu.memory_space<vmem>>, vector<32x256xbf16>,
    %cst_45 = arith.constant 0.000000e+00 : bf16
    %80 = vector.broadcast %cst_45 : bf16 to vector<32x256xbf16>
    %c0_46 = arith.constant 0 : index
    %c111_47 = arith.constant 111 : index
    %81 = vector.load %arg33[%c0_46, %c111_47] : memref<32x512xbf16, #tpu.memory_space<vmem>>, vector<32x256xbf16>
    %82 = vector.shape_cast %18 : vector<1x256xi1> to vector<1x256xi1>
    %83 = vector.broadcast %82 : vector<1x256xi1> to vector<32x256xi1>
    %84 = arith.select %83, %81, %80 : vector<32x256xi1>, vector<32x256xbf16>
    %c0_48 = arith.constant 0 : index
    %c0_49 = arith.constant 0 : index
    %85 = vector.load %arg34[%c0_48, %c0_49] : memref<288x256xbf16, #tpu.memory_space<vmem>>, vector<32x256xbf16>
    tpu.vector_store %arg34[%c0_48, %c0_49], %84 {strides = array<i32>} : memref<288x256xbf16, #tpu.memory_space<vmem>>, vector<32x256xbf16>,
    %c0_50 = arith.constant 0 : index
    %c112_51 = arith.constant 112 : index
    %86 = vector.load %arg33[%c0_50, %c112_51] : memref<32x512xbf16, #tpu.memory_space<vmem>>, vector<32x256xbf16>
    %c32_52 = arith.constant 32 : index
    %c0_53 = arith.constant 0 : index
    %87 = vector.load %arg34[%c32_52, %c0_53] : memref<288x256xbf16, #tpu.memory_space<vmem>>, vector<32x256xbf16>
    tpu.vector_store %arg34[%c32_52, %c0_53], %86 {strides = array<i32>} : memref<288x256xbf16, #tpu.memory_space<vmem>>, vector<32x256xbf16>,
    %c0_54 = arith.constant 0 : index
    %c113_55 = arith.constant 113 : index
    %88 = vector.load %arg33[%c0_54, %c113_55] : memref<32x512xbf16, #tpu.memory_space<vmem>>, vector<32x256xbf16>
    %89 = vector.shape_cast %20 : vector<1x256xi1> to vector<1x256xi1>
    %90 = vector.broadcast %89 : vector<1x256xi1> to vector<32x256xi1>
    %91 = arith.select %90, %88, %80 : vector<32x256xi1>, vector<32x256xbf16>
    %c64_56 = arith.constant 64 : index
    %c0_57 = arith.constant 0 : index
    %92 = vector.load %arg34[%c64_56, %c0_57] : memref<288x256xbf16, #tpu.memory_space<vmem>>, vector<32x256xbf16>
    tpu.vector_store %arg34[%c64_56, %c0_57], %91 {strides = array<i32>} : memref<288x256xbf16, #tpu.memory_space<vmem>>, vector<32x256xbf16>,
    %c0_58 = arith.constant 0 : index
    %c127_59 = arith.constant 127 : index
    %93 = vector.load %arg33[%c0_58, %c127_59] : memref<32x512xbf16, #tpu.memory_space<vmem>>, vector<32x256xbf16>
    %94 = vector.shape_cast %18 : vector<1x256xi1> to vector<1x256xi1>
    %95 = vector.broadcast %94 : vector<1x256xi1> to vector<32x256xi1>
    %96 = arith.select %95, %93, %80 : vector<32x256xi1>, vector<32x256xbf16>
    %c96_60 = arith.constant 96 : index
    %c0_61 = arith.constant 0 : index
    %97 = vector.load %arg34[%c96_60, %c0_61] : memref<288x256xbf16, #tpu.memory_space<vmem>>, vector<32x256xbf16>
    tpu.vector_store %arg34[%c96_60, %c0_61], %96 {strides = array<i32>} : memref<288x256xbf16, #tpu.memory_space<vmem>>, vector<32x256xbf16>,
    %c0_62 = arith.constant 0 : index
    %c128_63 = arith.constant 128 : index
    %98 = vector.load %arg33[%c0_62, %c128_63] : memref<32x512xbf16, #tpu.memory_space<vmem>>, vector<32x256xbf16>
    %c128_64 = arith.constant 128 : index
    %c0_65 = arith.constant 0 : index
    %99 = vector.load %arg34[%c128_64, %c0_65] : memref<288x256xbf16, #tpu.memory_space<vmem>>, vector<32x256xbf16>
    tpu.vector_store %arg34[%c128_64, %c0_65], %98 {strides = array<i32>} : memref<288x256xbf16, #tpu.memory_space<vmem>>, vector<32x256xbf16>,
    %c0_66 = arith.constant 0 : index
    %c129_67 = arith.constant 129 : index
    %100 = vector.load %arg33[%c0_66, %c129_67] : memref<32x512xbf16, #tpu.memory_space<vmem>>, vector<32x256xbf16>
    %101 = vector.shape_cast %20 : vector<1x256xi1> to vector<1x256xi1>
    %102 = vector.broadcast %101 : vector<1x256xi1> to vector<32x256xi1>
    %103 = arith.select %102, %100, %80 : vector<32x256xi1>, vector<32x256xbf16>
    %c160 = arith.constant 160 : index
    %c0_68 = arith.constant 0 : index
    %104 = vector.load %arg34[%c160, %c0_68] : memref<288x256xbf16, #tpu.memory_space<vmem>>, vector<32x256xbf16>
    tpu.vector_store %arg34[%c160, %c0_68], %103 {strides = array<i32>} : memref<288x256xbf16, #tpu.memory_space<vmem>>, vector<32x256xbf16>,
    %c0_69 = arith.constant 0 : index
    %c143_70 = arith.constant 143 : index
    %105 = vector.load %arg33[%c0_69, %c143_70] : memref<32x512xbf16, #tpu.memory_space<vmem>>, vector<32x256xbf16>
    %106 = vector.shape_cast %18 : vector<1x256xi1> to vector<1x256xi1>
    %107 = vector.broadcast %106 : vector<1x256xi1> to vector<32x256xi1>
    %108 = arith.select %107, %105, %80 : vector<32x256xi1>, vector<32x256xbf16>
    %c192 = arith.constant 192 : index
    %c0_71 = arith.constant 0 : index
    %109 = vector.load %arg34[%c192, %c0_71] : memref<288x256xbf16, #tpu.memory_space<vmem>>, vector<32x256xbf16>
    tpu.vector_store %arg34[%c192, %c0_71], %108 {strides = array<i32>} : memref<288x256xbf16, #tpu.memory_space<vmem>>, vector<32x256xbf16>,
    %c0_72 = arith.constant 0 : index
    %c144_73 = arith.constant 144 : index
    %110 = vector.load %arg33[%c0_72, %c144_73] : memref<32x512xbf16, #tpu.memory_space<vmem>>, vector<32x256xbf16>
    %c224 = arith.constant 224 : index
    %c0_74 = arith.constant 0 : index
    %111 = vector.load %arg34[%c224, %c0_74] : memref<288x256xbf16, #tpu.memory_space<vmem>>, vector<32x256xbf16>
    tpu.vector_store %arg34[%c224, %c0_74], %110 {strides = array<i32>} : memref<288x256xbf16, #tpu.memory_space<vmem>>, vector<32x256xbf16>,
    %c0_75 = arith.constant 0 : index
    %c145_76 = arith.constant 145 : index
    %112 = vector.load %arg33[%c0_75, %c145_76] : memref<32x512xbf16, #tpu.memory_space<vmem>>, vector<32x256xbf16>
    %113 = vector.shape_cast %20 : vector<1x256xi1> to vector<1x256xi1>
    %114 = vector.broadcast %113 : vector<1x256xi1> to vector<32x256xi1>
    %115 = arith.select %114, %112, %80 : vector<32x256xi1>, vector<32x256xbf16>
    %c256 = arith.constant 256 : index
    %c0_77 = arith.constant 0 : index
    %116 = vector.load %arg34[%c256, %c0_77] : memref<288x256xbf16, #tpu.memory_space<vmem>>, vector<32x256xbf16>
    tpu.vector_store %arg34[%c256, %c0_77], %115 {strides = array<i32>} : memref<288x256xbf16, #tpu.memory_space<vmem>>, vector<32x256xbf16>,
    %c0_78 = arith.constant 0 : index
    %c0_79 = arith.constant 0 : index
    %117 = vector.load %arg5[%c0_78, %c0_79] : memref<16x288xbf16, #tpu.memory_space<vmem>>, vector<16x288xbf16>
    %c0_80 = arith.constant 0 : index
    %c0_81 = arith.constant 0 : index
    %118 = vector.load %arg34[%c0_80, %c0_81] : memref<288x256xbf16, #tpu.memory_space<vmem>>, vector<288x256xbf16>
    %cst_82 = arith.constant dense<0.000000e+00> : vector<16x256xf32>
    %119 = tpu.matmul %117, %118, %cst_82 {dimension_numbers = #tpu.dot_dimension_numbers<[1], [0], [0], [1], [0, 0, 1, 1], [], []>} : vector<16x288xbf16>, vector<288x256xbf16>, vector<16x256xf32> -> vector<16x256xf32>
    %c0_83 = arith.constant 0 : index
    %c0_84 = arith.constant 0 : index
    %120 = vector.load %arg6[%c0_83, %c0_84] : memref<16x1xf32, #tpu.memory_space<vmem>>, vector<16x1xf32>
    %121 = vector.broadcast %120 : vector<16x1xf32> to vector<16x256xf32>
    %122 = arith.mulf %119, %121 : vector<16x256xf32>
    %c0_85 = arith.constant 0 : index
    %c0_86 = arith.constant 0 : index
    %123 = vector.load %arg7[%c0_85, %c0_86] : memref<16x1xf32, #tpu.memory_space<vmem>>, vector<16x1xf32>
    %124 = vector.broadcast %123 : vector<16x1xf32> to vector<16x256xf32>
    %125 = arith.addf %122, %124 : vector<16x256xf32>
    %cst_87 = arith.constant 0.000000e+00 : f32
    %126 = vector.broadcast %cst_87 : f32 to vector<16x256xf32>
    %127 = arith.cmpf ogt, %125, %126 : vector<16x256xf32>
    %cst_88 = arith.constant 1.000000e-01 : f32
    %128 = vector.broadcast %cst_88 : f32 to vector<16x256xf32>
    %129 = arith.mulf %128, %125 : vector<16x256xf32>
    %130 = arith.select %127, %125, %129 : vector<16x256xi1>, vector<16x256xf32>
    %131 = arith.truncf %130 : vector<16x256xf32> to vector<16x256xbf16>
    %c0_89 = arith.constant 0 : index
    %c128_90 = arith.constant 128 : index
    %132 = vector.load %arg33[%c0_89, %c128_90] : memref<32x512xbf16, #tpu.memory_space<vmem>>, vector<16x256xbf16>
    tpu.vector_store %arg33[%c0_89, %c128_90], %131 {strides = array<i32>} : memref<32x512xbf16, #tpu.memory_space<vmem>>, vector<16x256xbf16>,
    %cst_91 = arith.constant 0.000000e+00 : bf16
    %133 = vector.broadcast %cst_91 : bf16 to vector<16x256xbf16>
    %c0_92 = arith.constant 0 : index
    %c111_93 = arith.constant 111 : index
    %134 = vector.load %arg33[%c0_92, %c111_93] : memref<32x512xbf16, #tpu.memory_space<vmem>>, vector<16x256xbf16>
    %135 = vector.shape_cast %18 : vector<1x256xi1> to vector<1x256xi1>
    %136 = vector.broadcast %135 : vector<1x256xi1> to vector<16x256xi1>
    %137 = arith.select %136, %134, %133 : vector<16x256xi1>, vector<16x256xbf16>
    %c0_94 = arith.constant 0 : index
    %c0_95 = arith.constant 0 : index
    %138 = vector.load %arg34[%c0_94, %c0_95] : memref<288x256xbf16, #tpu.memory_space<vmem>>, vector<16x256xbf16>
    tpu.vector_store %arg34[%c0_94, %c0_95], %137 {strides = array<i32>} : memref<288x256xbf16, #tpu.memory_space<vmem>>, vector<16x256xbf16>,
    %c0_96 = arith.constant 0 : index
    %c112_97 = arith.constant 112 : index
    %139 = vector.load %arg33[%c0_96, %c112_97] : memref<32x512xbf16, #tpu.memory_space<vmem>>, vector<16x256xbf16>
    %c16_98 = arith.constant 16 : index
    %c0_99 = arith.constant 0 : index
    %140 = vector.load %arg34[%c16_98, %c0_99] : memref<288x256xbf16, #tpu.memory_space<vmem>>, vector<16x256xbf16>
    tpu.vector_store %arg34[%c16_98, %c0_99], %139 {strides = array<i32>} : memref<288x256xbf16, #tpu.memory_space<vmem>>, vector<16x256xbf16>,
    %c0_100 = arith.constant 0 : index
    %c113_101 = arith.constant 113 : index
    %141 = vector.load %arg33[%c0_100, %c113_101] : memref<32x512xbf16, #tpu.memory_space<vmem>>, vector<16x256xbf16>
    %142 = vector.shape_cast %20 : vector<1x256xi1> to vector<1x256xi1>
    %143 = vector.broadcast %142 : vector<1x256xi1> to vector<16x256xi1>
    %144 = arith.select %143, %141, %133 : vector<16x256xi1>, vector<16x256xbf16>
    %c32_102 = arith.constant 32 : index
    %c0_103 = arith.constant 0 : index
    %145 = vector.load %arg34[%c32_102, %c0_103] : memref<288x256xbf16, #tpu.memory_space<vmem>>, vector<16x256xbf16>
    tpu.vector_store %arg34[%c32_102, %c0_103], %144 {strides = array<i32>} : memref<288x256xbf16, #tpu.memory_space<vmem>>, vector<16x256xbf16>,
    %c0_104 = arith.constant 0 : index
    %c127_105 = arith.constant 127 : index
    %146 = vector.load %arg33[%c0_104, %c127_105] : memref<32x512xbf16, #tpu.memory_space<vmem>>, vector<16x256xbf16>
    %147 = vector.shape_cast %18 : vector<1x256xi1> to vector<1x256xi1>
    %148 = vector.broadcast %147 : vector<1x256xi1> to vector<16x256xi1>
    %149 = arith.select %148, %146, %133 : vector<16x256xi1>, vector<16x256xbf16>
    %c48_106 = arith.constant 48 : index
    %c0_107 = arith.constant 0 : index
    %150 = vector.load %arg34[%c48_106, %c0_107] : memref<288x256xbf16, #tpu.memory_space<vmem>>, vector<16x256xbf16>
    tpu.vector_store %arg34[%c48_106, %c0_107], %149 {strides = array<i32>} : memref<288x256xbf16, #tpu.memory_space<vmem>>, vector<16x256xbf16>,
    %c0_108 = arith.constant 0 : index
    %c128_109 = arith.constant 128 : index
    %151 = vector.load %arg33[%c0_108, %c128_109] : memref<32x512xbf16, #tpu.memory_space<vmem>>, vector<16x256xbf16>
    %c64_110 = arith.constant 64 : index
    %c0_111 = arith.constant 0 : index
    %152 = vector.load %arg34[%c64_110, %c0_111] : memref<288x256xbf16, #tpu.memory_space<vmem>>, vector<16x256xbf16>
    tpu.vector_store %arg34[%c64_110, %c0_111], %151 {strides = array<i32>} : memref<288x256xbf16, #tpu.memory_space<vmem>>, vector<16x256xbf16>,
    %c0_112 = arith.constant 0 : index
    %c129_113 = arith.constant 129 : index
    %153 = vector.load %arg33[%c0_112, %c129_113] : memref<32x512xbf16, #tpu.memory_space<vmem>>, vector<16x256xbf16>
    %154 = vector.shape_cast %20 : vector<1x256xi1> to vector<1x256xi1>
    %155 = vector.broadcast %154 : vector<1x256xi1> to vector<16x256xi1>
    %156 = arith.select %155, %153, %133 : vector<16x256xi1>, vector<16x256xbf16>
    %c80_114 = arith.constant 80 : index
    %c0_115 = arith.constant 0 : index
    %157 = vector.load %arg34[%c80_114, %c0_115] : memref<288x256xbf16, #tpu.memory_space<vmem>>, vector<16x256xbf16>
    tpu.vector_store %arg34[%c80_114, %c0_115], %156 {strides = array<i32>} : memref<288x256xbf16, #tpu.memory_space<vmem>>, vector<16x256xbf16>,
    %c0_116 = arith.constant 0 : index
    %c143_117 = arith.constant 143 : index
    %158 = vector.load %arg33[%c0_116, %c143_117] : memref<32x512xbf16, #tpu.memory_space<vmem>>, vector<16x256xbf16>
    %159 = vector.shape_cast %18 : vector<1x256xi1> to vector<1x256xi1>
    %160 = vector.broadcast %159 : vector<1x256xi1> to vector<16x256xi1>
    %161 = arith.select %160, %158, %133 : vector<16x256xi1>, vector<16x256xbf16>
    %c96_118 = arith.constant 96 : index
    %c0_119 = arith.constant 0 : index
    %162 = vector.load %arg34[%c96_118, %c0_119] : memref<288x256xbf16, #tpu.memory_space<vmem>>, vector<16x256xbf16>
    tpu.vector_store %arg34[%c96_118, %c0_119], %161 {strides = array<i32>} : memref<288x256xbf16, #tpu.memory_space<vmem>>, vector<16x256xbf16>,
    %c0_120 = arith.constant 0 : index
    %c144_121 = arith.constant 144 : index
    %163 = vector.load %arg33[%c0_120, %c144_121] : memref<32x512xbf16, #tpu.memory_space<vmem>>, vector<16x256xbf16>
    %c112_122 = arith.constant 112 : index
    %c0_123 = arith.constant 0 : index
    %164 = vector.load %arg34[%c112_122, %c0_123] : memref<288x256xbf16, #tpu.memory_space<vmem>>, vector<16x256xbf16>
    tpu.vector_store %arg34[%c112_122, %c0_123], %163 {strides = array<i32>} : memref<288x256xbf16, #tpu.memory_space<vmem>>, vector<16x256xbf16>,
    %c0_124 = arith.constant 0 : index
    %c145_125 = arith.constant 145 : index
    %165 = vector.load %arg33[%c0_124, %c145_125] : memref<32x512xbf16, #tpu.memory_space<vmem>>, vector<16x256xbf16>
    %166 = vector.shape_cast %20 : vector<1x256xi1> to vector<1x256xi1>
    %167 = vector.broadcast %166 : vector<1x256xi1> to vector<16x256xi1>
    %168 = arith.select %167, %165, %133 : vector<16x256xi1>, vector<16x256xbf16>
    %c128_126 = arith.constant 128 : index
    %c0_127 = arith.constant 0 : index
    %169 = vector.load %arg34[%c128_126, %c0_127] : memref<288x256xbf16, #tpu.memory_space<vmem>>, vector<16x256xbf16>
    tpu.vector_store %arg34[%c128_126, %c0_127], %168 {strides = array<i32>} : memref<288x256xbf16, #tpu.memory_space<vmem>>, vector<16x256xbf16>,
    %c0_128 = arith.constant 0 : index
    %c0_129 = arith.constant 0 : index
    %170 = vector.load %arg8[%c0_128, %c0_129] : memref<8x144xbf16, #tpu.memory_space<vmem>>, vector<8x144xbf16>
    %c0_130 = arith.constant 0 : index
    %c0_131 = arith.constant 0 : index
    %171 = vector.load %arg34[%c0_130, %c0_131] : memref<288x256xbf16, #tpu.memory_space<vmem>>, vector<144x256xbf16>
    %cst_132 = arith.constant dense<0.000000e+00> : vector<8x256xf32>
    %172 = tpu.matmul %170, %171, %cst_132 {dimension_numbers = #tpu.dot_dimension_numbers<[1], [0], [0], [1], [0, 0, 1, 1], [], []>} : vector<8x144xbf16>, vector<144x256xbf16>, vector<8x256xf32> -> vector<8x256xf32>
    %c0_133 = arith.constant 0 : index
    %c0_134 = arith.constant 0 : index
    %173 = vector.load %arg9[%c0_133, %c0_134] : memref<8x1xf32, #tpu.memory_space<vmem>>, vector<8x1xf32>
    %174 = vector.broadcast %173 : vector<8x1xf32> to vector<8x256xf32>
    %175 = arith.mulf %172, %174 : vector<8x256xf32>
    %c0_135 = arith.constant 0 : index
    %c0_136 = arith.constant 0 : index
    %176 = vector.load %arg10[%c0_135, %c0_136] : memref<8x1xf32, #tpu.memory_space<vmem>>, vector<8x1xf32>
    %177 = vector.broadcast %176 : vector<8x1xf32> to vector<8x256xf32>
    %178 = arith.addf %175, %177 : vector<8x256xf32>
    %cst_137 = arith.constant 0.000000e+00 : f32
    %179 = vector.broadcast %cst_137 : f32 to vector<8x256xf32>
    %180 = arith.cmpf ogt, %178, %179 : vector<8x256xf32>
    %cst_138 = arith.constant 1.000000e-01 : f32
    %181 = vector.broadcast %cst_138 : f32 to vector<8x256xf32>
    %182 = arith.mulf %181, %178 : vector<8x256xf32>
    %183 = arith.select %180, %178, %182 : vector<8x256xi1>, vector<8x256xf32>
    %184 = arith.truncf %183 : vector<8x256xf32> to vector<8x256xbf16>
    %c0_139 = arith.constant 0 : index
    %c128_140 = arith.constant 128 : index
    %185 = vector.load %arg33[%c0_139, %c128_140] : memref<32x512xbf16, #tpu.memory_space<vmem>>, vector<8x256xbf16>
    tpu.vector_store %arg33[%c0_139, %c128_140], %184 {strides = array<i32>} : memref<32x512xbf16, #tpu.memory_space<vmem>>, vector<8x256xbf16>,
    %cst_141 = arith.constant 0.000000e+00 : bf16
    %186 = vector.broadcast %cst_141 : bf16 to vector<8x256xbf16>
    %c0_142 = arith.constant 0 : index
    %c111_143 = arith.constant 111 : index
    %187 = vector.load %arg33[%c0_142, %c111_143] : memref<32x512xbf16, #tpu.memory_space<vmem>>, vector<8x256xbf16>
    %188 = vector.shape_cast %18 : vector<1x256xi1> to vector<1x256xi1>
    %189 = vector.broadcast %188 : vector<1x256xi1> to vector<8x256xi1>
    %190 = arith.select %189, %187, %186 : vector<8x256xi1>, vector<8x256xbf16>
    %c0_144 = arith.constant 0 : index
    %c0_145 = arith.constant 0 : index
    %191 = vector.load %arg34[%c0_144, %c0_145] : memref<288x256xbf16, #tpu.memory_space<vmem>>, vector<8x256xbf16>
    tpu.vector_store %arg34[%c0_144, %c0_145], %190 {strides = array<i32>} : memref<288x256xbf16, #tpu.memory_space<vmem>>, vector<8x256xbf16>,
    %c0_146 = arith.constant 0 : index
    %c112_147 = arith.constant 112 : index
    %192 = vector.load %arg33[%c0_146, %c112_147] : memref<32x512xbf16, #tpu.memory_space<vmem>>, vector<8x256xbf16>
    %c8 = arith.constant 8 : index
    %c0_148 = arith.constant 0 : index
    %193 = vector.load %arg34[%c8, %c0_148] : memref<288x256xbf16, #tpu.memory_space<vmem>>, vector<8x256xbf16>
    tpu.vector_store %arg34[%c8, %c0_148], %192 {strides = array<i32>} : memref<288x256xbf16, #tpu.memory_space<vmem>>, vector<8x256xbf16>,
    %c0_149 = arith.constant 0 : index
    %c113_150 = arith.constant 113 : index
    %194 = vector.load %arg33[%c0_149, %c113_150] : memref<32x512xbf16, #tpu.memory_space<vmem>>, vector<8x256xbf16>
    %195 = vector.shape_cast %20 : vector<1x256xi1> to vector<1x256xi1>
    %196 = vector.broadcast %195 : vector<1x256xi1> to vector<8x256xi1>
    %197 = arith.select %196, %194, %186 : vector<8x256xi1>, vector<8x256xbf16>
    %c16_151 = arith.constant 16 : index
    %c0_152 = arith.constant 0 : index
    %198 = vector.load %arg34[%c16_151, %c0_152] : memref<288x256xbf16, #tpu.memory_space<vmem>>, vector<8x256xbf16>
    tpu.vector_store %arg34[%c16_151, %c0_152], %197 {strides = array<i32>} : memref<288x256xbf16, #tpu.memory_space<vmem>>, vector<8x256xbf16>,
    %c0_153 = arith.constant 0 : index
    %c127_154 = arith.constant 127 : index
    %199 = vector.load %arg33[%c0_153, %c127_154] : memref<32x512xbf16, #tpu.memory_space<vmem>>, vector<8x256xbf16>
    %200 = vector.shape_cast %18 : vector<1x256xi1> to vector<1x256xi1>
    %201 = vector.broadcast %200 : vector<1x256xi1> to vector<8x256xi1>
    %202 = arith.select %201, %199, %186 : vector<8x256xi1>, vector<8x256xbf16>
    %c24 = arith.constant 24 : index
    %c0_155 = arith.constant 0 : index
    %203 = vector.load %arg34[%c24, %c0_155] : memref<288x256xbf16, #tpu.memory_space<vmem>>, vector<8x256xbf16>
    tpu.vector_store %arg34[%c24, %c0_155], %202 {strides = array<i32>} : memref<288x256xbf16, #tpu.memory_space<vmem>>, vector<8x256xbf16>,
    %c0_156 = arith.constant 0 : index
    %c128_157 = arith.constant 128 : index
    %204 = vector.load %arg33[%c0_156, %c128_157] : memref<32x512xbf16, #tpu.memory_space<vmem>>, vector<8x256xbf16>
    %c32_158 = arith.constant 32 : index
    %c0_159 = arith.constant 0 : index
    %205 = vector.load %arg34[%c32_158, %c0_159] : memref<288x256xbf16, #tpu.memory_space<vmem>>, vector<8x256xbf16>
    tpu.vector_store %arg34[%c32_158, %c0_159], %204 {strides = array<i32>} : memref<288x256xbf16, #tpu.memory_space<vmem>>, vector<8x256xbf16>,
    %c0_160 = arith.constant 0 : index
    %c129_161 = arith.constant 129 : index
    %206 = vector.load %arg33[%c0_160, %c129_161] : memref<32x512xbf16, #tpu.memory_space<vmem>>, vector<8x256xbf16>
    %207 = vector.shape_cast %20 : vector<1x256xi1> to vector<1x256xi1>
    %208 = vector.broadcast %207 : vector<1x256xi1> to vector<8x256xi1>
    %209 = arith.select %208, %206, %186 : vector<8x256xi1>, vector<8x256xbf16>
    %c40 = arith.constant 40 : index
    %c0_162 = arith.constant 0 : index
    %210 = vector.load %arg34[%c40, %c0_162] : memref<288x256xbf16, #tpu.memory_space<vmem>>, vector<8x256xbf16>
    tpu.vector_store %arg34[%c40, %c0_162], %209 {strides = array<i32>} : memref<288x256xbf16, #tpu.memory_space<vmem>>, vector<8x256xbf16>,
    %c0_163 = arith.constant 0 : index
    %c143_164 = arith.constant 143 : index
    %211 = vector.load %arg33[%c0_163, %c143_164] : memref<32x512xbf16, #tpu.memory_space<vmem>>, vector<8x256xbf16>
    %212 = vector.shape_cast %18 : vector<1x256xi1> to vector<1x256xi1>
    %213 = vector.broadcast %212 : vector<1x256xi1> to vector<8x256xi1>
    %214 = arith.select %213, %211, %186 : vector<8x256xi1>, vector<8x256xbf16>
    %c48_165 = arith.constant 48 : index
    %c0_166 = arith.constant 0 : index
    %215 = vector.load %arg34[%c48_165, %c0_166] : memref<288x256xbf16, #tpu.memory_space<vmem>>, vector<8x256xbf16>
    tpu.vector_store %arg34[%c48_165, %c0_166], %214 {strides = array<i32>} : memref<288x256xbf16, #tpu.memory_space<vmem>>, vector<8x256xbf16>,
    %c0_167 = arith.constant 0 : index
    %c144_168 = arith.constant 144 : index
    %216 = vector.load %arg33[%c0_167, %c144_168] : memref<32x512xbf16, #tpu.memory_space<vmem>>, vector<8x256xbf16>
    %c56 = arith.constant 56 : index
    %c0_169 = arith.constant 0 : index
    %217 = vector.load %arg34[%c56, %c0_169] : memref<288x256xbf16, #tpu.memory_space<vmem>>, vector<8x256xbf16>
    tpu.vector_store %arg34[%c56, %c0_169], %216 {strides = array<i32>} : memref<288x256xbf16, #tpu.memory_space<vmem>>, vector<8x256xbf16>,
    %c0_170 = arith.constant 0 : index
    %c145_171 = arith.constant 145 : index
    %218 = vector.load %arg33[%c0_170, %c145_171] : memref<32x512xbf16, #tpu.memory_space<vmem>>, vector<8x256xbf16>
    %219 = vector.shape_cast %20 : vector<1x256xi1> to vector<1x256xi1>
    %220 = vector.broadcast %219 : vector<1x256xi1> to vector<8x256xi1>
    %221 = arith.select %220, %218, %186 : vector<8x256xi1>, vector<8x256xbf16>
    %c64_172 = arith.constant 64 : index
    %c0_173 = arith.constant 0 : index
    %222 = vector.load %arg34[%c64_172, %c0_173] : memref<288x256xbf16, #tpu.memory_space<vmem>>, vector<8x256xbf16>
    tpu.vector_store %arg34[%c64_172, %c0_173], %221 {strides = array<i32>} : memref<288x256xbf16, #tpu.memory_space<vmem>>, vector<8x256xbf16>,
    %c0_174 = arith.constant 0 : index
    %c0_175 = arith.constant 0 : index
    %223 = vector.load %arg11[%c0_174, %c0_175] : memref<4x72xbf16, #tpu.memory_space<vmem>>, vector<4x72xbf16>
    %c0_176 = arith.constant 0 : index
    %c0_177 = arith.constant 0 : index
    %224 = vector.load %arg34[%c0_176, %c0_177] : memref<288x256xbf16, #tpu.memory_space<vmem>>, vector<72x256xbf16>
    %cst_178 = arith.constant dense<0.000000e+00> : vector<4x256xf32>
    %225 = tpu.matmul %223, %224, %cst_178 {dimension_numbers = #tpu.dot_dimension_numbers<[1], [0], [0], [1], [0, 0, 1, 1], [], []>} : vector<4x72xbf16>, vector<72x256xbf16>, vector<4x256xf32> -> vector<4x256xf32>
    %c0_179 = arith.constant 0 : index
    %c0_180 = arith.constant 0 : index
    %226 = vector.load %arg12[%c0_179, %c0_180] : memref<4x1xf32, #tpu.memory_space<vmem>>, vector<4x1xf32>
    %227 = vector.broadcast %226 : vector<4x1xf32> to vector<4x256xf32>
    %228 = arith.mulf %225, %227 : vector<4x256xf32>
    %c0_181 = arith.constant 0 : index
    %c0_182 = arith.constant 0 : index
    %229 = vector.load %arg13[%c0_181, %c0_182] : memref<4x1xf32, #tpu.memory_space<vmem>>, vector<4x1xf32>
    %230 = vector.broadcast %229 : vector<4x1xf32> to vector<4x256xf32>
    %231 = arith.addf %228, %230 : vector<4x256xf32>
    %cst_183 = arith.constant 0.000000e+00 : f32
    %232 = vector.broadcast %cst_183 : f32 to vector<4x256xf32>
    %233 = arith.cmpf ogt, %231, %232 : vector<4x256xf32>
    %cst_184 = arith.constant 1.000000e-01 : f32
    %234 = vector.broadcast %cst_184 : f32 to vector<4x256xf32>
    %235 = arith.mulf %234, %231 : vector<4x256xf32>
    %236 = arith.select %233, %231, %235 : vector<4x256xi1>, vector<4x256xf32>
    %237 = arith.truncf %236 : vector<4x256xf32> to vector<4x256xbf16>
    %c0_185 = arith.constant 0 : index
    %c128_186 = arith.constant 128 : index
    %238 = vector.load %arg33[%c0_185, %c128_186] : memref<32x512xbf16, #tpu.memory_space<vmem>>, vector<4x256xbf16>
    tpu.vector_store %arg33[%c0_185, %c128_186], %237 {strides = array<i32>} : memref<32x512xbf16, #tpu.memory_space<vmem>>, vector<4x256xbf16>,
    %cst_187 = arith.constant 0.000000e+00 : bf16
    %239 = vector.broadcast %cst_187 : bf16 to vector<4x256xbf16>
    %c0_188 = arith.constant 0 : index
    %c111_189 = arith.constant 111 : index
    %240 = vector.load %arg33[%c0_188, %c111_189] : memref<32x512xbf16, #tpu.memory_space<vmem>>, vector<4x256xbf16>
    %241 = vector.shape_cast %18 : vector<1x256xi1> to vector<1x256xi1>
    %242 = vector.broadcast %241 : vector<1x256xi1> to vector<4x256xi1>
    %243 = arith.select %242, %240, %239 : vector<4x256xi1>, vector<4x256xbf16>
    %c0_190 = arith.constant 0 : index
    %c0_191 = arith.constant 0 : index
    %244 = vector.load %arg34[%c0_190, %c0_191] : memref<288x256xbf16, #tpu.memory_space<vmem>>, vector<4x256xbf16>
    tpu.vector_store %arg34[%c0_190, %c0_191], %243 {strides = array<i32>} : memref<288x256xbf16, #tpu.memory_space<vmem>>, vector<4x256xbf16>,
    %c0_192 = arith.constant 0 : index
    %c112_193 = arith.constant 112 : index
    %245 = vector.load %arg33[%c0_192, %c112_193] : memref<32x512xbf16, #tpu.memory_space<vmem>>, vector<4x256xbf16>
    %c4 = arith.constant 4 : index
    %c0_194 = arith.constant 0 : index
    %246 = vector.load %arg34[%c4, %c0_194] : memref<288x256xbf16, #tpu.memory_space<vmem>>, vector<4x256xbf16>
    tpu.vector_store %arg34[%c4, %c0_194], %245 {strides = array<i32>} : memref<288x256xbf16, #tpu.memory_space<vmem>>, vector<4x256xbf16>,
    %c0_195 = arith.constant 0 : index
    %c113_196 = arith.constant 113 : index
    %247 = vector.load %arg33[%c0_195, %c113_196] : memref<32x512xbf16, #tpu.memory_space<vmem>>, vector<4x256xbf16>
    %248 = vector.shape_cast %20 : vector<1x256xi1> to vector<1x256xi1>
    %249 = vector.broadcast %248 : vector<1x256xi1> to vector<4x256xi1>
    %250 = arith.select %249, %247, %239 : vector<4x256xi1>, vector<4x256xbf16>
    %c8_197 = arith.constant 8 : index
    %c0_198 = arith.constant 0 : index
    %251 = vector.load %arg34[%c8_197, %c0_198] : memref<288x256xbf16, #tpu.memory_space<vmem>>, vector<4x256xbf16>
    tpu.vector_store %arg34[%c8_197, %c0_198], %250 {strides = array<i32>} : memref<288x256xbf16, #tpu.memory_space<vmem>>, vector<4x256xbf16>,
    %c0_199 = arith.constant 0 : index
    %c127_200 = arith.constant 127 : index
    %252 = vector.load %arg33[%c0_199, %c127_200] : memref<32x512xbf16, #tpu.memory_space<vmem>>, vector<4x256xbf16>
    %253 = vector.shape_cast %18 : vector<1x256xi1> to vector<1x256xi1>
    %254 = vector.broadcast %253 : vector<1x256xi1> to vector<4x256xi1>
    %255 = arith.select %254, %252, %239 : vector<4x256xi1>, vector<4x256xbf16>
    %c12 = arith.constant 12 : index
    %c0_201 = arith.constant 0 : index
    %256 = vector.load %arg34[%c12, %c0_201] : memref<288x256xbf16, #tpu.memory_space<vmem>>, vector<4x256xbf16>
    tpu.vector_store %arg34[%c12, %c0_201], %255 {strides = array<i32>} : memref<288x256xbf16, #tpu.memory_space<vmem>>, vector<4x256xbf16>,
    %c0_202 = arith.constant 0 : index
    %c128_203 = arith.constant 128 : index
    %257 = vector.load %arg33[%c0_202, %c128_203] : memref<32x512xbf16, #tpu.memory_space<vmem>>, vector<4x256xbf16>
    %c16_204 = arith.constant 16 : index
    %c0_205 = arith.constant 0 : index
    %258 = vector.load %arg34[%c16_204, %c0_205] : memref<288x256xbf16, #tpu.memory_space<vmem>>, vector<4x256xbf16>
    tpu.vector_store %arg34[%c16_204, %c0_205], %257 {strides = array<i32>} : memref<288x256xbf16, #tpu.memory_space<vmem>>, vector<4x256xbf16>,
    %c0_206 = arith.constant 0 : index
    %c129_207 = arith.constant 129 : index
    %259 = vector.load %arg33[%c0_206, %c129_207] : memref<32x512xbf16, #tpu.memory_space<vmem>>, vector<4x256xbf16>
    %260 = vector.shape_cast %20 : vector<1x256xi1> to vector<1x256xi1>
    %261 = vector.broadcast %260 : vector<1x256xi1> to vector<4x256xi1>
    %262 = arith.select %261, %259, %239 : vector<4x256xi1>, vector<4x256xbf16>
    %c20 = arith.constant 20 : index
    %c0_208 = arith.constant 0 : index
    %263 = vector.load %arg34[%c20, %c0_208] : memref<288x256xbf16, #tpu.memory_space<vmem>>, vector<4x256xbf16>
    tpu.vector_store %arg34[%c20, %c0_208], %262 {strides = array<i32>} : memref<288x256xbf16, #tpu.memory_space<vmem>>, vector<4x256xbf16>,
    %c0_209 = arith.constant 0 : index
    %c143_210 = arith.constant 143 : index
    %264 = vector.load %arg33[%c0_209, %c143_210] : memref<32x512xbf16, #tpu.memory_space<vmem>>, vector<4x256xbf16>
    %265 = vector.shape_cast %18 : vector<1x256xi1> to vector<1x256xi1>
    %266 = vector.broadcast %265 : vector<1x256xi1> to vector<4x256xi1>
    %267 = arith.select %266, %264, %239 : vector<4x256xi1>, vector<4x256xbf16>
    %c24_211 = arith.constant 24 : index
    %c0_212 = arith.constant 0 : index
    %268 = vector.load %arg34[%c24_211, %c0_212] : memref<288x256xbf16, #tpu.memory_space<vmem>>, vector<4x256xbf16>
    tpu.vector_store %arg34[%c24_211, %c0_212], %267 {strides = array<i32>} : memref<288x256xbf16, #tpu.memory_space<vmem>>, vector<4x256xbf16>,
    %c0_213 = arith.constant 0 : index
    %c144_214 = arith.constant 144 : index
    %269 = vector.load %arg33[%c0_213, %c144_214] : memref<32x512xbf16, #tpu.memory_space<vmem>>, vector<4x256xbf16>
    %c28 = arith.constant 28 : index
    %c0_215 = arith.constant 0 : index
    %270 = vector.load %arg34[%c28, %c0_215] : memref<288x256xbf16, #tpu.memory_space<vmem>>, vector<4x256xbf16>
    tpu.vector_store %arg34[%c28, %c0_215], %269 {strides = array<i32>} : memref<288x256xbf16, #tpu.memory_space<vmem>>, vector<4x256xbf16>,
    %c0_216 = arith.constant 0 : index
    %c145_217 = arith.constant 145 : index
    %271 = vector.load %arg33[%c0_216, %c145_217] : memref<32x512xbf16, #tpu.memory_space<vmem>>, vector<4x256xbf16>
    %272 = vector.shape_cast %20 : vector<1x256xi1> to vector<1x256xi1>
    %273 = vector.broadcast %272 : vector<1x256xi1> to vector<4x256xi1>
    %274 = arith.select %273, %271, %239 : vector<4x256xi1>, vector<4x256xbf16>
    %c32_218 = arith.constant 32 : index
    %c0_219 = arith.constant 0 : index
    %275 = vector.load %arg34[%c32_218, %c0_219] : memref<288x256xbf16, #tpu.memory_space<vmem>>, vector<4x256xbf16>
    tpu.vector_store %arg34[%c32_218, %c0_219], %274 {strides = array<i32>} : memref<288x256xbf16, #tpu.memory_space<vmem>>, vector<4x256xbf16>,
    %c0_220 = arith.constant 0 : index
    %c0_221 = arith.constant 0 : index
    %276 = vector.load %arg34[%c0_220, %c0_221] : memref<288x256xbf16, #tpu.memory_space<vmem>>, vector<36x256xbf16>
    %c0_222 = arith.constant 0 : index
    %c0_223 = arith.constant 0 : index
    %277 = vector.load %arg17[%c0_222, %c0_223] : memref<256x64xbf16, #tpu.memory_space<vmem>>, vector<256x64xbf16>
    %cst_224 = arith.constant dense<0.000000e+00> : vector<36x64xf32>
    %278 = tpu.matmul %276, %277, %cst_224 {dimension_numbers = #tpu.dot_dimension_numbers<[1], [0], [0], [1], [0, 0, 1, 1], [], []>} : vector<36x256xbf16>, vector<256x64xbf16>, vector<36x64xf32> -> vector<36x64xf32>
    %c0_225 = arith.constant 0 : index
    %c0_226 = arith.constant 0 : index
    %279 = vector.load %arg14[%c0_225, %c0_226] : memref<4x36xbf16, #tpu.memory_space<vmem>>, vector<4x36xbf16>
    %280 = arith.truncf %278 : vector<36x64xf32> to vector<36x64xbf16>
    %cst_227 = arith.constant dense<0.000000e+00> : vector<4x64xf32>
    %281 = tpu.matmul %279, %280, %cst_227 {dimension_numbers = #tpu.dot_dimension_numbers<[1], [0], [0], [1], [0, 0, 1, 1], [], []>} : vector<4x36xbf16>, vector<36x64xbf16>, vector<4x64xf32> -> vector<4x64xf32>
    %c0_228 = arith.constant 0 : index
    %c0_229 = arith.constant 0 : index
    %282 = vector.load %arg15[%c0_228, %c0_229] : memref<4x1xf32, #tpu.memory_space<vmem>>, vector<4x1xf32>
    %283 = vector.broadcast %282 : vector<4x1xf32> to vector<4x64xf32>
    %284 = arith.mulf %281, %283 : vector<4x64xf32>
    %c0_230 = arith.constant 0 : index
    %c0_231 = arith.constant 0 : index
    %285 = vector.load %arg16[%c0_230, %c0_231] : memref<4x1xf32, #tpu.memory_space<vmem>>, vector<4x1xf32>
    %286 = vector.broadcast %285 : vector<4x1xf32> to vector<4x64xf32>
    %287 = arith.addf %284, %286 : vector<4x64xf32>
    %cst_232 = arith.constant 0.000000e+00 : f32
    %288 = vector.broadcast %cst_232 : f32 to vector<4x64xf32>
    %289 = arith.cmpf ogt, %287, %288 : vector<4x64xf32>
    %cst_233 = arith.constant 1.000000e-01 : f32
    %290 = vector.broadcast %cst_233 : f32 to vector<4x64xf32>
    %291 = arith.mulf %290, %287 : vector<4x64xf32>
    %292 = arith.select %289, %287, %291 : vector<4x64xi1>, vector<4x64xf32>
    %293 = arith.truncf %292 : vector<4x64xf32> to vector<4x64xbf16>
    %294 = vector.extract_strided_slice %293 {offsets = [0, 0], sizes = [1, 64], strides = [1, 1]} : vector<4x64xbf16> to vector<1x64xbf16>
    %c0_234 = arith.constant 0 : index
    %c0_235 = arith.constant 0 : index
    %c0_236 = arith.constant 0 : index
    %295 = vector.load %arg24[%c0_234, %c0_235, %c0_236] : memref<4x64x32xbf16, #tpu.memory_space<vmem>>, vector<1x64x32xbf16>
    %296 = vector.shape_cast %295 : vector<1x64x32xbf16> to vector<64x32xbf16>
    %cst_237 = arith.constant dense<0.000000e+00> : vector<1x32xf32>
    %297 = tpu.matmul %294, %296, %cst_237 {dimension_numbers = #tpu.dot_dimension_numbers<[1], [0], [0], [1], [0, 0, 1, 1], [], []>} : vector<1x64xbf16>, vector<64x32xbf16>, vector<1x32xf32> -> vector<1x32xf32>
    %298 = vector.extract_strided_slice %293 {offsets = [1, 0], sizes = [1, 64], strides = [1, 1]} : vector<4x64xbf16> to vector<1x64xbf16>
    %c1 = arith.constant 1 : index
    %c0_238 = arith.constant 0 : index
    %c0_239 = arith.constant 0 : index
    %299 = vector.load %arg24[%c1, %c0_238, %c0_239] : memref<4x64x32xbf16, #tpu.memory_space<vmem>>, vector<1x64x32xbf16>
    %300 = vector.shape_cast %299 : vector<1x64x32xbf16> to vector<64x32xbf16>
    %cst_240 = arith.constant dense<0.000000e+00> : vector<1x32xf32>
    %301 = tpu.matmul %298, %300, %cst_240 {dimension_numbers = #tpu.dot_dimension_numbers<[1], [0], [0], [1], [0, 0, 1, 1], [], []>} : vector<1x64xbf16>, vector<64x32xbf16>, vector<1x32xf32> -> vector<1x32xf32>
    %302 = arith.addf %297, %301 : vector<1x32xf32>
    %303 = vector.extract_strided_slice %293 {offsets = [2, 0], sizes = [1, 64], strides = [1, 1]} : vector<4x64xbf16> to vector<1x64xbf16>
    %c2 = arith.constant 2 : index
    %c0_241 = arith.constant 0 : index
    %c0_242 = arith.constant 0 : index
    %304 = vector.load %arg24[%c2, %c0_241, %c0_242] : memref<4x64x32xbf16, #tpu.memory_space<vmem>>, vector<1x64x32xbf16>
    %305 = vector.shape_cast %304 : vector<1x64x32xbf16> to vector<64x32xbf16>
    %cst_243 = arith.constant dense<0.000000e+00> : vector<1x32xf32>
    %306 = tpu.matmul %303, %305, %cst_243 {dimension_numbers = #tpu.dot_dimension_numbers<[1], [0], [0], [1], [0, 0, 1, 1], [], []>} : vector<1x64xbf16>, vector<64x32xbf16>, vector<1x32xf32> -> vector<1x32xf32>
    %307 = arith.addf %302, %306 : vector<1x32xf32>
    %308 = vector.extract_strided_slice %293 {offsets = [3, 0], sizes = [1, 64], strides = [1, 1]} : vector<4x64xbf16> to vector<1x64xbf16>
    %c3 = arith.constant 3 : index
    %c0_244 = arith.constant 0 : index
    %c0_245 = arith.constant 0 : index
    %309 = vector.load %arg24[%c3, %c0_244, %c0_245] : memref<4x64x32xbf16, #tpu.memory_space<vmem>>, vector<1x64x32xbf16>
    %310 = vector.shape_cast %309 : vector<1x64x32xbf16> to vector<64x32xbf16>
    %cst_246 = arith.constant dense<0.000000e+00> : vector<1x32xf32>
    %311 = tpu.matmul %308, %310, %cst_246 {dimension_numbers = #tpu.dot_dimension_numbers<[1], [0], [0], [1], [0, 0, 1, 1], [], []>} : vector<1x64xbf16>, vector<64x32xbf16>, vector<1x32xf32> -> vector<1x32xf32>
    %312 = arith.addf %307, %311 : vector<1x32xf32>
    %c0_247 = arith.constant 0 : index
    %c0_248 = arith.constant 0 : index
    %c0_249 = arith.constant 0 : index
    %313 = vector.load %arg29[%c0_247, %c0_248, %c0_249] : memref<1x1x32xf32, #tpu.memory_space<vmem>>, vector<1x1x32xf32>
    %314 = vector.shape_cast %313 : vector<1x1x32xf32> to vector<1x32xf32>
    %315 = arith.truncf %314 : vector<1x32xf32> to vector<1x32xbf16>
    %c0_250 = arith.constant 0 : index
    %c0_251 = arith.constant 0 : index
    %316 = vector.load %arg25[%c0_250, %c0_251] : memref<32x32xbf16, #tpu.memory_space<vmem>>, vector<32x32xbf16>
    %cst_252 = arith.constant dense<0.000000e+00> : vector<1x32xf32>
    %317 = tpu.matmul %315, %316, %cst_252 {dimension_numbers = #tpu.dot_dimension_numbers<[1], [0], [0], [1], [0, 0, 1, 1], [], []>} : vector<1x32xbf16>, vector<32x32xbf16>, vector<1x32xf32> -> vector<1x32xf32>
    %318 = arith.addf %312, %317 : vector<1x32xf32>
    %c0_253 = arith.constant 0 : index
    %c0_254 = arith.constant 0 : index
    %319 = vector.load %arg26[%c0_253, %c0_254] : memref<1x32xf32, #tpu.memory_space<vmem>>, vector<1x32xf32>
    %320 = arith.addf %318, %319 : vector<1x32xf32>
    %321 = math.tanh %320 : vector<1x32xf32>
    %322 = arith.subf %321, %314 : vector<1x32xf32>
    %c0_255 = arith.constant 0 : index
    %c0_256 = arith.constant 0 : index
    %323 = vector.load %arg30[%c0_255, %c0_256] : memref<1x1xf32, #tpu.memory_space<vmem>>, vector<1x1xf32>
    %324 = vector.broadcast %323 : vector<1x1xf32> to vector<1x32xf32>
    %325 = arith.mulf %322, %324 : vector<1x32xf32>
    %326 = arith.addf %314, %325 : vector<1x32xf32>
    %c0_257 = arith.constant 0 : index
    %c0_258 = arith.constant 0 : index
    %c0_259 = arith.constant 0 : index
    %327 = vector.load %arg32[%c0_257, %c0_258, %c0_259] : memref<1x1x32xf32, #tpu.memory_space<vmem>>, vector<1x1x32xf32>
    %328 = vector.shape_cast %327 : vector<1x1x32xf32> to vector<1x32xf32>
    %329 = vector.shape_cast %326 : vector<1x32xf32> to vector<1x1x32xf32>
    tpu.vector_store %arg32[%c0_257, %c0_258, %c0_259], %329 {strides = array<i32>} : memref<1x1x32xf32, #tpu.memory_space<vmem>>, vector<1x1x32xf32>,
    %330 = arith.truncf %321 : vector<1x32xf32> to vector<1x32xbf16>
    %c0_260 = arith.constant 0 : index
    %c0_261 = arith.constant 0 : index
    %c0_262 = arith.constant 0 : index
    %331 = vector.load %arg27[%c0_260, %c0_261, %c0_262] : memref<4x32x64xbf16, #tpu.memory_space<vmem>>, vector<1x32x64xbf16>
    %332 = vector.shape_cast %331 : vector<1x32x64xbf16> to vector<32x64xbf16>
    %cst_263 = arith.constant dense<0.000000e+00> : vector<1x64xf32>
    %333 = tpu.matmul %330, %332, %cst_263 {dimension_numbers = #tpu.dot_dimension_numbers<[1], [0], [0], [1], [0, 0, 1, 1], [], []>} : vector<1x32xbf16>, vector<32x64xbf16>, vector<1x64xf32> -> vector<1x64xf32>
    %c1_264 = arith.constant 1 : index
    %c0_265 = arith.constant 0 : index
    %c0_266 = arith.constant 0 : index
    %334 = vector.load %arg27[%c1_264, %c0_265, %c0_266] : memref<4x32x64xbf16, #tpu.memory_space<vmem>>, vector<1x32x64xbf16>
    %335 = vector.shape_cast %334 : vector<1x32x64xbf16> to vector<32x64xbf16>
    %cst_267 = arith.constant dense<0.000000e+00> : vector<1x64xf32>
    %336 = tpu.matmul %330, %335, %cst_267 {dimension_numbers = #tpu.dot_dimension_numbers<[1], [0], [0], [1], [0, 0, 1, 1], [], []>} : vector<1x32xbf16>, vector<32x64xbf16>, vector<1x64xf32> -> vector<1x64xf32>
    %c2_268 = arith.constant 2 : index
    %c0_269 = arith.constant 0 : index
    %c0_270 = arith.constant 0 : index
    %337 = vector.load %arg27[%c2_268, %c0_269, %c0_270] : memref<4x32x64xbf16, #tpu.memory_space<vmem>>, vector<1x32x64xbf16>
    %338 = vector.shape_cast %337 : vector<1x32x64xbf16> to vector<32x64xbf16>
    %cst_271 = arith.constant dense<0.000000e+00> : vector<1x64xf32>
    %339 = tpu.matmul %330, %338, %cst_271 {dimension_numbers = #tpu.dot_dimension_numbers<[1], [0], [0], [1], [0, 0, 1, 1], [], []>} : vector<1x32xbf16>, vector<32x64xbf16>, vector<1x64xf32> -> vector<1x64xf32>
    %c3_272 = arith.constant 3 : index
    %c0_273 = arith.constant 0 : index
    %c0_274 = arith.constant 0 : index
    %340 = vector.load %arg27[%c3_272, %c0_273, %c0_274] : memref<4x32x64xbf16, #tpu.memory_space<vmem>>, vector<1x32x64xbf16>
    %341 = vector.shape_cast %340 : vector<1x32x64xbf16> to vector<32x64xbf16>
    %cst_275 = arith.constant dense<0.000000e+00> : vector<1x64xf32>
    %342 = tpu.matmul %330, %341, %cst_275 {dimension_numbers = #tpu.dot_dimension_numbers<[1], [0], [0], [1], [0, 0, 1, 1], [], []>} : vector<1x32xbf16>, vector<32x64xbf16>, vector<1x64xf32> -> vector<1x64xf32>
    %343 = tpu.concatenate %333, %336, %339, %342 in 0 : vector<1x64xf32>, vector<1x64xf32>, vector<1x64xf32>, vector<1x64xf32> -> vector<4x64xf32>
    %c0_276 = arith.constant 0 : index
    %c0_277 = arith.constant 0 : index
    %344 = vector.load %arg28[%c0_276, %c0_277] : memref<4x64xf32, #tpu.memory_space<vmem>>, vector<4x64xf32>
    %345 = arith.addf %343, %344 : vector<4x64xf32>
    %346 = tpu.concatenate %345, %292 in 0 : vector<4x64xf32>, vector<4x64xf32> -> vector<8x64xf32>
    %347 = arith.truncf %346 : vector<8x64xf32> to vector<8x64xbf16>
    %c0_278 = arith.constant 0 : index
    %c0_279 = arith.constant 0 : index
    %348 = vector.load %arg18[%c0_278, %c0_279] : memref<16x8xbf16, #tpu.memory_space<vmem>>, vector<16x8xbf16>
    %cst_280 = arith.constant dense<0.000000e+00> : vector<16x64xf32>
    %349 = tpu.matmul %348, %347, %cst_280 {dimension_numbers = #tpu.dot_dimension_numbers<[1], [0], [0], [1], [0, 0, 1, 1], [], []>} : vector<16x8xbf16>, vector<8x64xbf16>, vector<16x64xf32> -> vector<16x64xf32>
    %c0_281 = arith.constant 0 : index
    %c0_282 = arith.constant 0 : index
    %350 = vector.load %arg19[%c0_281, %c0_282] : memref<16x1xf32, #tpu.memory_space<vmem>>, vector<16x1xf32>
    %351 = vector.broadcast %350 : vector<16x1xf32> to vector<16x64xf32>
    %352 = arith.mulf %349, %351 : vector<16x64xf32>
    %c0_283 = arith.constant 0 : index
    %c0_284 = arith.constant 0 : index
    %353 = vector.load %arg20[%c0_283, %c0_284] : memref<16x1xf32, #tpu.memory_space<vmem>>, vector<16x1xf32>
    %354 = vector.broadcast %353 : vector<16x1xf32> to vector<16x64xf32>
    %355 = arith.addf %352, %354 : vector<16x64xf32>
    %cst_285 = arith.constant 0.000000e+00 : f32
    %356 = vector.broadcast %cst_285 : f32 to vector<16x64xf32>
    %357 = arith.cmpf ogt, %355, %356 : vector<16x64xf32>
    %cst_286 = arith.constant 1.000000e-01 : f32
    %358 = vector.broadcast %cst_286 : f32 to vector<16x64xf32>
    %359 = arith.mulf %358, %355 : vector<16x64xf32>
    %360 = arith.select %357, %355, %359 : vector<16x64xi1>, vector<16x64xf32>
    %c0_287 = arith.constant 0 : index
    %c0_288 = arith.constant 0 : index
    %361 = vector.load %arg21[%c0_287, %c0_288] : memref<24x16xbf16, #tpu.memory_space<vmem>>, vector<24x16xbf16>
    %362 = arith.truncf %360 : vector<16x64xf32> to vector<16x64xbf16>
    %cst_289 = arith.constant dense<0.000000e+00> : vector<24x64xf32>
    %363 = tpu.matmul %361, %362, %cst_289 {dimension_numbers = #tpu.dot_dimension_numbers<[1], [0], [0], [1], [0, 0, 1, 1], [], []>} : vector<24x16xbf16>, vector<16x64xbf16>, vector<24x64xf32> -> vector<24x64xf32>
    %c0_290 = arith.constant 0 : index
    %c0_291 = arith.constant 0 : index
    %364 = vector.load %arg22[%c0_290, %c0_291] : memref<24x1xf32, #tpu.memory_space<vmem>>, vector<24x1xf32>
    %365 = vector.broadcast %364 : vector<24x1xf32> to vector<24x64xf32>
    %366 = arith.mulf %363, %365 : vector<24x64xf32>
    %c0_292 = arith.constant 0 : index
    %c0_293 = arith.constant 0 : index
    %367 = vector.load %arg23[%c0_292, %c0_293] : memref<24x1xf32, #tpu.memory_space<vmem>>, vector<24x1xf32>
    %368 = vector.broadcast %367 : vector<24x1xf32> to vector<24x64xf32>
    %369 = arith.addf %366, %368 : vector<24x64xf32>
    %cst_294 = arith.constant 0.000000e+00 : f32
    %370 = vector.broadcast %cst_294 : f32 to vector<24x64xf32>
    %371 = arith.cmpf ogt, %369, %370 : vector<24x64xf32>
    %cst_295 = arith.constant 1.000000e-01 : f32
    %372 = vector.broadcast %cst_295 : f32 to vector<24x64xf32>
    %373 = arith.mulf %372, %369 : vector<24x64xf32>
    %374 = arith.select %371, %369, %373 : vector<24x64xi1>, vector<24x64xf32>
    %c0_296 = arith.constant 0 : index
    %c0_297 = arith.constant 0 : index
    %c0_298 = arith.constant 0 : index
    %375 = vector.load %arg31[%c0_296, %c0_297, %c0_298] : memref<1x24x64xf32, #tpu.memory_space<vmem>>, vector<1x24x64xf32>
    %376 = vector.shape_cast %375 : vector<1x24x64xf32> to vector<24x64xf32>
    %377 = vector.shape_cast %374 : vector<24x64xf32> to vector<1x24x64xf32>
    tpu.vector_store %arg31[%c0_296, %c0_297, %c0_298], %377 {strides = array<i32>} : memref<1x24x64xf32, #tpu.memory_space<vmem>>, vector<1x24x64xf32>,
    return
  }
  func.func @transform_0(%arg0: i32) -> (i32, i32, i32) {
    %c0_i32 = arith.constant 0 : i32
    %c0_i32_0 = arith.constant 0 : i32
    %c0_i32_1 = arith.constant 0 : i32
    return %arg0, %c0_i32, %c0_i32_0 : i32, i32, i32
  }
  func.func @transform_1(%arg0: i32) -> (i32, i32) {
    %c0_i32 = arith.constant 0 : i32
    %c0_i32_0 = arith.constant 0 : i32
    %c0_i32_1 = arith.constant 0 : i32
    return %c0_i32, %c0_i32_0 : i32, i32
  }
  func.func @transform_2(%arg0: i32) -> (i32, i32) {
    %c0_i32 = arith.constant 0 : i32
    %c0_i32_0 = arith.constant 0 : i32
    %c0_i32_1 = arith.constant 0 : i32
    return %c0_i32, %c0_i32_0 : i32, i32
  }
  func.func @transform_3(%arg0: i32) -> (i32, i32) {
    %c0_i32 = arith.constant 0 : i32
    %c0_i32_0 = arith.constant 0 : i32
    %c0_i32_1 = arith.constant 0 : i32
    return %c0_i32, %c0_i32_0 : i32, i32
  }
  func.func @transform_4(%arg0: i32) -> (i32, i32) {
    %c0_i32 = arith.constant 0 : i32
    %c0_i32_0 = arith.constant 0 : i32
    %c0_i32_1 = arith.constant 0 : i32
    return %c0_i32, %c0_i32_0 : i32, i32
  }
  func.func @transform_5(%arg0: i32) -> (i32, i32) {
    %c0_i32 = arith.constant 0 : i32
    %c0_i32_0 = arith.constant 0 : i32
    %c0_i32_1 = arith.constant 0 : i32
    return %c0_i32, %c0_i32_0 : i32, i32
  }
  func.func @transform_6(%arg0: i32) -> (i32, i32) {
    %c0_i32 = arith.constant 0 : i32
    %c0_i32_0 = arith.constant 0 : i32
    %c0_i32_1 = arith.constant 0 : i32
    return %c0_i32, %c0_i32_0 : i32, i32
  }
  func.func @transform_7(%arg0: i32) -> (i32, i32) {
    %c0_i32 = arith.constant 0 : i32
    %c0_i32_0 = arith.constant 0 : i32
    %c0_i32_1 = arith.constant 0 : i32
    return %c0_i32, %c0_i32_0 : i32, i32
  }
  func.func @transform_8(%arg0: i32) -> (i32, i32) {
    %c0_i32 = arith.constant 0 : i32
    %c0_i32_0 = arith.constant 0 : i32
    %c0_i32_1 = arith.constant 0 : i32
    return %c0_i32, %c0_i32_0 : i32, i32
  }
  func.func @transform_9(%arg0: i32) -> (i32, i32) {
    %c0_i32 = arith.constant 0 : i32
    %c0_i32_0 = arith.constant 0 : i32
    %c0_i32_1 = arith.constant 0 : i32
    return %c0_i32, %c0_i32_0 : i32, i32
  }
  func.func @transform_10(%arg0: i32) -> (i32, i32) {
    %c0_i32 = arith.constant 0 : i32
    %c0_i32_0 = arith.constant 0 : i32
    %c0_i32_1 = arith.constant 0 : i32
    return %c0_i32, %c0_i32_0 : i32, i32
  }
  func.func @transform_11(%arg0: i32) -> (i32, i32) {
    %c0_i32 = arith.constant 0 : i32
    %c0_i32_0 = arith.constant 0 : i32
    %c0_i32_1 = arith.constant 0 : i32
    return %c0_i32, %c0_i32_0 : i32, i32
  }
  func.func @transform_12(%arg0: i32) -> (i32, i32) {
    %c0_i32 = arith.constant 0 : i32
    %c0_i32_0 = arith.constant 0 : i32
    %c0_i32_1 = arith.constant 0 : i32
    return %c0_i32, %c0_i32_0 : i32, i32
  }
  func.func @transform_13(%arg0: i32) -> (i32, i32) {
    %c0_i32 = arith.constant 0 : i32
    %c0_i32_0 = arith.constant 0 : i32
    %c0_i32_1 = arith.constant 0 : i32
    return %c0_i32, %c0_i32_0 : i32, i32
  }
  func.func @transform_14(%arg0: i32) -> (i32, i32) {
    %c0_i32 = arith.constant 0 : i32
    %c0_i32_0 = arith.constant 0 : i32
    %c0_i32_1 = arith.constant 0 : i32
    return %c0_i32, %c0_i32_0 : i32, i32
  }
  func.func @transform_15(%arg0: i32) -> (i32, i32) {
    %c0_i32 = arith.constant 0 : i32
    %c0_i32_0 = arith.constant 0 : i32
    %c0_i32_1 = arith.constant 0 : i32
    return %c0_i32, %c0_i32_0 : i32, i32
  }
  func.func @transform_16(%arg0: i32) -> (i32, i32) {
    %c0_i32 = arith.constant 0 : i32
    %c0_i32_0 = arith.constant 0 : i32
    %c0_i32_1 = arith.constant 0 : i32
    return %c0_i32, %c0_i32_0 : i32, i32
  }
  func.func @transform_17(%arg0: i32) -> (i32, i32) {
    %c0_i32 = arith.constant 0 : i32
    %c0_i32_0 = arith.constant 0 : i32
    %c0_i32_1 = arith.constant 0 : i32
    return %c0_i32, %c0_i32_0 : i32, i32
  }
  func.func @transform_18(%arg0: i32) -> (i32, i32) {
    %c0_i32 = arith.constant 0 : i32
    %c0_i32_0 = arith.constant 0 : i32
    %c0_i32_1 = arith.constant 0 : i32
    return %c0_i32, %c0_i32_0 : i32, i32
  }
  func.func @transform_19(%arg0: i32) -> (i32, i32) {
    %c0_i32 = arith.constant 0 : i32
    %c0_i32_0 = arith.constant 0 : i32
    %c0_i32_1 = arith.constant 0 : i32
    return %c0_i32, %c0_i32_0 : i32, i32
  }
  func.func @transform_20(%arg0: i32) -> (i32, i32) {
    %c0_i32 = arith.constant 0 : i32
    %c0_i32_0 = arith.constant 0 : i32
    %c0_i32_1 = arith.constant 0 : i32
    return %c0_i32, %c0_i32_0 : i32, i32
  }
  func.func @transform_21(%arg0: i32) -> (i32, i32) {
    %c0_i32 = arith.constant 0 : i32
    %c0_i32_0 = arith.constant 0 : i32
    %c0_i32_1 = arith.constant 0 : i32
    return %c0_i32, %c0_i32_0 : i32, i32
  }
  func.func @transform_22(%arg0: i32) -> (i32, i32) {
    %c0_i32 = arith.constant 0 : i32
    %c0_i32_0 = arith.constant 0 : i32
    %c0_i32_1 = arith.constant 0 : i32
    return %c0_i32, %c0_i32_0 : i32, i32
  }
  func.func @transform_23(%arg0: i32) -> (i32, i32, i32) {
    %c0_i32 = arith.constant 0 : i32
    %c0_i32_0 = arith.constant 0 : i32
    %c0_i32_1 = arith.constant 0 : i32
    %c0_i32_2 = arith.constant 0 : i32
    return %c0_i32, %c0_i32_0, %c0_i32_1 : i32, i32, i32
  }
  func.func @transform_24(%arg0: i32) -> (i32, i32) {
    %c0_i32 = arith.constant 0 : i32
    %c0_i32_0 = arith.constant 0 : i32
    %c0_i32_1 = arith.constant 0 : i32
    return %c0_i32, %c0_i32_0 : i32, i32
  }
  func.func @transform_25(%arg0: i32) -> (i32, i32) {
    %c0_i32 = arith.constant 0 : i32
    %c0_i32_0 = arith.constant 0 : i32
    %c0_i32_1 = arith.constant 0 : i32
    return %c0_i32, %c0_i32_0 : i32, i32
  }
  func.func @transform_26(%arg0: i32) -> (i32, i32, i32) {
    %c0_i32 = arith.constant 0 : i32
    %c0_i32_0 = arith.constant 0 : i32
    %c0_i32_1 = arith.constant 0 : i32
    %c0_i32_2 = arith.constant 0 : i32
    return %c0_i32, %c0_i32_0, %c0_i32_1 : i32, i32, i32
  }
  func.func @transform_27(%arg0: i32) -> (i32, i32) {
    %c0_i32 = arith.constant 0 : i32
    %c0_i32_0 = arith.constant 0 : i32
    %c0_i32_1 = arith.constant 0 : i32
    return %c0_i32, %c0_i32_0 : i32, i32
  }
  func.func @transform_28(%arg0: i32) -> (i32, i32, i32) {
    %c0_i32 = arith.constant 0 : i32
    %c0_i32_0 = arith.constant 0 : i32
    %c0_i32_1 = arith.constant 0 : i32
    return %arg0, %c0_i32, %c0_i32_0 : i32, i32, i32
  }
  func.func @transform_29(%arg0: i32) -> (i32, i32) {
    %c0_i32 = arith.constant 0 : i32
    %c0_i32_0 = arith.constant 0 : i32
    %c0_i32_1 = arith.constant 0 : i32
    return %c0_i32, %c0_i32_0 : i32, i32
  }
  func.func @transform_30(%arg0: i32) -> (i32, i32, i32) {
    %c0_i32 = arith.constant 0 : i32
    %c0_i32_0 = arith.constant 0 : i32
    %c0_i32_1 = arith.constant 0 : i32
    return %arg0, %c0_i32, %c0_i32_0 : i32, i32, i32
  }
  func.func @transform_31(%arg0: i32) -> (i32, i32, i32) {
    %c0_i32 = arith.constant 0 : i32
    %c0_i32_0 = arith.constant 0 : i32
    %c0_i32_1 = arith.constant 0 : i32
    return %arg0, %c0_i32, %c0_i32_0 : i32, i32, i32
  }
}

</mosaic_0001>

<bundles_post_ra>
// kernel: scaled_prediction_forward.1
= control target key start
LH: loop header
LB: loop body
LE: loop exit
PB: predicated region body
PF: predicated region fallthrough
CT: control target
= control target key end

     0   :  { %s5337_s6 = smov 1   ;;  %s5338_s10 = smov 2   ;;  %s6588_s0 = inlined_call_operand.smem [shape: u32[32], index: -1, kind: input, shape index: {}] }
   0x1   :  { %s5385_s5 = sld [smem:[%s6588_s0]]   ;;  %s5339_s14 = smov 3  }
   0x2   :  { %s5390_s9 = sld [smem:[%s6588_s0 + %s5337_s6]]   ;;  %s5340_s18 = smov 4  }
   0x3   :  { %s5395_s13 = sld [smem:[%s6588_s0 + %s5338_s10]]   ;;  %s5341_s22 = smov 5  }
   0x4   :  { %s5400_s17 = sld [smem:[%s6588_s0 + %s5339_s14]]   ;;  %s5342_s26 = smov 6  }
   0x5   :  { %s5405_s21 = sld [smem:[%s6588_s0 + %s5340_s18]]   ;;  %s5343_s30 = smov 7  }
   0x6   :  { %s5410_s25 = sld [smem:[%s6588_s0 + %s5341_s22]]   ;;  %s5344_s4 = smov 8  }
   0x7   :  { %6640 = sst [smem:[#allocation8_spill]] %s5385_s5  ;;  %s5345_s10 = smov 9  }
   0x8   :  { %6641 = sst [smem:[#allocation9_spill]] %s5390_s9  ;;  %s5346_s15 = smov 10  }
   0x9   :  { %6642 = sst [smem:[#allocation10_spill]] %s5395_s13  ;;  %s5347_s20 = smov 11  }
   0xa   :  { %6643 = sst [smem:[#allocation11_spill]] %s5400_s17  ;;  %s5349_s1 = smov 13  }
   0xb   :  { %s5415_s29 = sld [smem:[%s6588_s0 + %s5342_s26]]   ;;  %s5348_s26 = smov 12  }
   0xc   :  { %s5420_s3 = sld [smem:[%s6588_s0 + %s5343_s30]]   ;;  %s5350_s7 = smov 14  }
   0xd   :  { %s5425_s8 = sld [smem:[%s6588_s0 + %s5344_s4]]   ;;  %s5352_s22 = smov 16  }
   0xe   :  { %s5430_s14 = sld [smem:[%s6588_s0 + %s5345_s10]]   ;;  %s5353_s28 = smov 17  }
   0xf   :  { %s5435_s19 = sld [smem:[%s6588_s0 + %s5346_s15]]   ;;  %s5351_s15 = smov 15  }
  0x10   :  { %s5440_s24 = sld [smem:[%s6588_s0 + %s5347_s20]]   ;;  %s5366_s10 = smov 30  }
  0x11   :  { %s5445_s30 = sld [smem:[%s6588_s0 + %s5348_s26]]   ;;  %s5367_s16 = smov 31  }
  0x12   :  { %6644 = sst [smem:[#allocation12_spill]] %s5420_s3 }
  0x13   :  { %6645 = sst [smem:[#allocation13_spill]] %s5425_s8 }
  0x14   :  { %6646 = sst [smem:[#allocation14_spill]] %s5430_s14 }
  0x15   :  { %s5450_s6 = sld [smem:[%s6588_s0 + %s5349_s1]]  }
  0x16   :  { %s5455_s12 = sld [smem:[%s6588_s0 + %s5350_s7]]   ;;  %s5354_s7 = smov 18  }
  0x17   :  { %s5460_s20 = sld [smem:[%s6588_s0 + %s5351_s15]]   ;;  %s5355_s15 = smov 19  }
  0x18   :  { %s5465_s27 = sld [smem:[%s6588_s0 + %s5352_s22]]   ;;  %s5356_s22 = smov 20  }
  0x19   :  { %s5470_s4 = sld [smem:[%s6588_s0 + %s5353_s28]]   ;;  %s5357_s28 = smov 21  }
  0x1b   :  { %6647 = sst [smem:[#allocation15_spill]] %s5450_s6 }
  0x1c   :  { %6648 = sst [smem:[#allocation16_spill]] %s5455_s12 }
  0x1d   :  { %s5475_s6 = sld [smem:[%s6588_s0 + %s5354_s7]]   ;;  %s5358_s7 = smov 22  }
  0x1e   :  { %6649 = sst [smem:[#allocation17_spill]] %s5465_s27 }
  0x1f   :  { %6650 = sst [smem:[#allocation18_spill]] %s5470_s4 }
  0x20   :  { %s5480_s12 = sld [smem:[%s6588_s0 + %s5355_s15]]   ;;  %s5359_s15 = smov 23  }
  0x21   :  { %s5485_s27 = sld [smem:[%s6588_s0 + %s5356_s22]]   ;;  %s5360_s22 = smov 24  }
  0x22   :  { %s5490_s4 = sld [smem:[%s6588_s0 + %s5357_s28]]   ;;  %s5361_s28 = smov 25  }
  0x23   :  { %6651 = sst [smem:[#allocation19_spill]] %s5475_s6 }
  0x24   :  { %s5495_s6 = sld [smem:[%s6588_s0 + %s5358_s7]]   ;;  %s5362_s7 = smov 26  }
  0x26   :  { %6652 = sst [smem:[#allocation20_spill]] %s5480_s12 }
  0x27   :  { %6653 = sst [smem:[#allocation21_spill]] %s5485_s27 }
  0x28   :  { %6654 = sst [smem:[#allocation22_spill]] %s5490_s4 }
  0x29   :  { %s5500_s12 = sld [smem:[%s6588_s0 + %s5359_s15]]   ;;  %s5363_s15 = smov 27  }
  0x2a   :  { %6655 = sst [smem:[#allocation23_spill]] %s5495_s6 }
  0x2b   :  { %s5505_s27 = sld [smem:[%s6588_s0 + %s5360_s22]]   ;;  %s5364_s22 = smov 28  }
  0x2c   :  { %s5510_s4 = sld [smem:[%s6588_s0 + %s5361_s28]]   ;;  %s5365_s28 = smov 29  }
  0x2d   :  { %s5515_s6 = sld [smem:[%s6588_s0 + %s5362_s7]]  }
  0x2f   :  { %6656 = sst [smem:[#allocation24_spill]] %s5500_s12 }
  0x30   :  { %s5520_s12 = sld [smem:[%s6588_s0 + %s5363_s15]]  }
  0x31   :  { %6657 = sst [smem:[#allocation25_spill]] %s5505_s27 }
  0x32   :  { %6658 = sst [smem:[#allocation26_spill]] %s5510_s4 }
  0x33   :  { %6659 = sst [smem:[#allocation27_spill]] %s5515_s6 }
  0x34   :  { %s5525_s27 = sld [smem:[%s6588_s0 + %s5364_s22]]  }
  0x35   :  { %s4360_s4 = sld [smem:[%s6588_s0 + %s5365_s28]]  }
  0x36   :  { %6660 = sst [smem:[#allocation28_spill]] %s5520_s12 }
  0x37   :  { %s5533_s6 = sld [smem:[%s6588_s0 + %s5366_s10]]  }
  0x38   :  { %s5538_s12 = sld [smem:[%s6588_s0 + %s5367_s16]]  }
  0x3b   :  { %v69_v0 = vstv %s4360_s4 }
  0x3c   :  { %70 = vst [vmem:[#allocation4] sm:$0x1] %v69_v0 }
  0x3d   :  { %71 = vsyncpa [#allocation6], 0 }
  0x3e   :  { %73 = vsyncpa [#allocation6 + $0x1], 0  ;;  %s5540_s22 = smov 0   ;;  %s5542_s23 = smov 0  }
  0x3f   :  { %s5544_s26 = smov 0   ;;  %s5546_s28 = smov 0  }
  0x40 LB: > { %s6661_s13 = sld [smem:[#allocation10_spill]]  ;;  %s5561_s0 = sadd.s32 4294967295, %s5335_s28   ;;  %s5331_s26 = sphi %s5544_s26, %s6805_s26   ;;  %s5327_s23 = sphi %s5542_s23, %s6804_s23   ;;  %s5323_s22 = sphi %s5540_s22, %s6803_s22   ;;  %s5335_s28 = sphi %s5546_s28, %s6806_s28  }
  0x41   : > { %s6662_s9 = sld [smem:[#allocation9_spill]]  ;;  %s4364_s4 = sadd.s32 4294967294, %s5335_s28  }
  0x42   : > { %s6663_s17 = sld [smem:[#allocation11_spill]]  ;;  %s5565_s1 = sadd.s32 1, %s5335_s28  }
  0x43   : > { %s752_s2 = sadd.s32 1, %s5331_s26  ;;  %s749_s10 = ssub.s32 %s5335_s28, %s5565_s1 }
  0x44   : > { %p762_p0 = scmp.ne.s32.totalorder %s5331_s26, %s5327_s23  ;;  %p750_p1 = scmp.eq.s32.totalorder %s749_s10, 0 }
  0x45   : > { %p763_p2 = scmp.eq.s32.totalorder %s5561_s0, 1  ;;  %p768_p3 = scmp.ne.s32.totalorder %s5327_s23, %s5323_s22 }
  0x46   : > { %p769_p4 = scmp.eq.s32.totalorder %s4364_s4, 1  ;;  %p4367_p7 = scmp.ge.s32.totalorder %s5335_s28, 1 }
  0x47   : > { %s5576_s7 = scalar_select %p750_p1, %s5331_s26, %s752_s2  }
  0x48   : > { %p5578_p5 = por %p763_p2, %p762_p0  ;;  %p5582_p6 = por %p769_p4, %p768_p3 }
  0x49   : > { %p885_p8 = scmp.lt.s32.totalorder %s5335_s28, 3 }
  0x4b   : > { %p886_p9 = pnand %p4367_p7, %p885_p8 }
  0x4c   : > { %s6666_s5 = sld [smem:[#allocation8_spill]] (!%p886_p9)  ;;  %p972_p10 = scmp.lt.s32.totalorder (!%p886_p9), %s5561_s0, 1 }
  0x4d   : > { %889 = sbr.rel (%p886_p9) target bundleno = 2716 (0xa9c), region = 140  ;;  %s6600_s2 = smov (!%p886_p9), 127  }
  0x4e   : > { %s6602_s10 = smov (!%p886_p9), 15   ;;  %s6743_s8 = sld [smem:[#allocation13_spill]] (!%p886_p9) }
  0x4f   : > { %s6744_s14 = sld [smem:[#allocation14_spill]] (!%p886_p9) }
  0x50   : > { %s6755_s3 = sld [smem:[#allocation12_spill]] (!%p886_p9) }
  0x52   : > { %v988_v1 = vlaneseq  ;;  %v5368_v2 = vmov 0   ;;  %s5598_s15 = scalar_select %p972_p10, %s5561_s0, 1  ;;  %vm6613_vm11 = vcmask 121856  }
  0x53   : > { %1019 = vst [vmem:[#allocation2] sm:$0xff] %v5368_v2  ;;  %5209 = vset.pattern.permute.xlu2 %v5368_v2  ;;  %5208 = vset.pattern.permute.xlu1 %v5368_v2  ;;  %v5658_v30 = vunpack.c.l.b16 %v5368_v2  ;;  %v5661_v31 = vunpack.c.h.b16 %v5368_v2 }
  0x54   : > { %v989_v3 = vand.u32 127, %v988_v1  ;;  %1020 = vst [vmem:[#allocation2 + $0x8] sm:$0xff] %v5368_v2  ;;  %5210 = vset.pattern.permute.xlu0 %v5368_v2  ;;  %s4972_s18 = sshll.u32 %s5598_s15, 5 }
  0x55   : > { %1021 = vst [vmem:[#allocation2 + $0x10] sm:$0xff] %v5368_v2  ;;  %s976_s4 = scalar_lea.vmem %s6666_s5, %s4972_s18  ;;  %s6598_s18 = smov 111  }
  0x56   : > { %v990_v4 = vadd.s32 128, %v989_v3  ;;  %v995_v5 = vand.u32 15, %v989_v3  ;;  %1022 = vst [vmem:[#allocation2 + $0x18] sm:$0xff] %v5368_v2  ;;  %v1027_v7 = vld [vmem:[%s976_s4] sm:$0xff]  ;;  %v1028_v11 = vld [vmem:[%s976_s4 + $0x8] sm:$0xff]  ;;  %v1029_v12 = vld [vmem:[%s976_s4 + $0x10] sm:$0xff] }
  0x57   : > { %1023 = vst [vmem:[#allocation2 + $0x20] sm:$0xff] %v5368_v2  ;;  %v5616_v13 = vpack.c.bf16 %v1028_v11, %v1027_v7  ;;  %v1030_v14 = vld [vmem:[%s976_s4 + $0x18] sm:$0xff]  ;;  %s6604_s4 = smov 113   ;;  %s6697_s5 = smov 111  }
  0x58   : > { %v1002_v6 = vand.u32 15, %v990_v4  ;;  %vm1015_vm0 = vcmp.ge.s32.totalorder %v995_v5, 1  ;;  %1024 = vst [vmem:[#allocation2 + $0x28] sm:$0xff] %v5368_v2  ;;  %vm5606_vm3 = vcmp.le.s32.totalorder %v995_v5, 14  ;;  %v5619_v15 = vpack.c.bf16 %v1030_v14, %v1029_v12 }
  0x59   : > { %1025 = vst [vmem:[#allocation2 + $0x30] sm:$0xff] %v5368_v2  ;;  %v6686_v14 = vmov 0 }
  0x5a   : > { %vm1016_vm1 = vcmp.ge.s32.totalorder %v1002_v6, 1  ;;  %1026 = vst [vmem:[#allocation2 + $0x38] sm:$0xff] %v5368_v2  ;;  %vm5610_vm4 = vcmp.le.s32.totalorder %v1002_v6, 14  ;;  %v6683_v6 = vmov 0 }
  0x5b   : > { %vm1043_vm2 = vmpackc.low %vm1016_vm1, %vm1015_vm0  ;;  %1033 = vst [vmem:[#allocation2 + $0x4] sm:$0xff] %v5616_v13  ;;  %v1338_v17 = vld [vmem:[#allocation2 + $0xc] sm:$0xf] }
  0x5c   : > { %v1044_v8 = vsel %vm1043_vm2, 65537, %v5368_v2  ;;  %vm1131_vm5 = vmpackc.low %vm5610_vm4, %vm5606_vm3  ;;  %1034 = vst [vmem:[#allocation2 + $0x14] sm:$0xff] %v5619_v15  ;;  %v1288_v49 = vld [vmem:[#allocation2 + $0xc] sm:$0xf]  ;;  %vm6616_vm3 = vcmask 7168  }
  0x5d   : > { %1185 = vrot.lane.b32.xlu1 %v1044_v8, %s6600_s2  ;;  %1291 = vrot.lane.b32.xlu0 %v1044_v8, %s6602_s10  ;;  %1235 = vst [vmem:[#allocation3 + $0x40] sm:$0xff] %v5616_v13  ;;  %v1132_v16 = vsel %vm1131_vm5, 65537, %v5368_v2  ;;  %s6610_s2 = smov 17   ;;  %v1340_v18 = vld [vmem:[#allocation2 + $0x1c] sm:$0xf]  ;;  %s6608_s10 = smov 112  }
  0x5e   : > { %1045 = vrot.lane.b32.xlu2 %v1044_v8, %s6598_s18  ;;  %1236 = vst [vmem:[#allocation3 + $0x48] sm:$0xff] %v5619_v15  ;;  %s6621_s18 = smov 1   ;;  %v5188_v19 = vpack.i.bf16 %v1340_v18, %v1338_v17  ;;  %v1290_v50 = vld [vmem:[#allocation2 + $0x1c] sm:$0xf]  ;;  %v1238_v0 = vld [vmem:[#allocation2 + $0xc] sm:$0xf] }
  0x5f   : > { %v1240_v1 = vld [vmem:[#allocation2 + $0x1c] sm:$0xf]  ;;  %v6680_v2 = vmov 0 }
  0x62   : > { %v1095_v21 = vld [vmem:[#allocation2 + $0x8] sm:$0xf]  ;;  %v5640_v22 = vld [vmem:[#allocation2] sm:$0xff] }
  0x63   : > { %v5638_v20 = vld [vmem:[#allocation2 + $0x10] sm:$0xff]  ;;  %v1097_v23 = vld [vmem:[#allocation2 + $0x18] sm:$0xf]  ;;  %v1124_v58 = vld [vmem:[#allocation2 + $0x8] sm:$0xf] }
  0x64   : > { %v1184_v36 = vld [vmem:[#allocation2 + $0x18] sm:$0xf]  ;;  %v1182_v18 = vld [vmem:[#allocation2 + $0x8] sm:$0xf] }
  0x65   : > { %1133 = vrot.lane.b32.xlu1 %v1132_v16, %s6604_s4  ;;  %1241 = vrot.lane.b32.xlu0 %v1132_v16, %s6621_s18  ;;  %s6606_s4 = smov 16   ;;  %v1038_v44 = vld [vmem:[#allocation2 + $0x18] sm:$0xf] }
  0x66   : > { %1370 = vrot.lane.b32.xlu2 %v1132_v16, %s6610_s2 }
  0x6d   : > { %5189 = vrot.lane.b32.xlu1 %v5188_v19, %s6608_s10  ;;  %1345 = vrot.lane.b32.xlu0 %v5616_v13, %s6608_s10 }
  0x6e   : > { %1349 = vrot.lane.b32.xlu2 %v5619_v15, %s6608_s10  ;;  %s6682_s10 = smov 113  }
  0x75   : > { %1106 = vrot.lane.b32.xlu1 %v5638_v20, %s6606_s4  ;;  %1104 = vrot.lane.b32.xlu0 %v1095_v21, %s6606_s4 }
  0x76   : > { %1102 = vrot.lane.b32.xlu2 %v5640_v22, %s6606_s4 }
  0x7e   : > { %1108 = vrot.lane.b32.xlu2 %v1097_v23, %s6606_s4  ;;  %s6679_s4 = smov 15  }
  0xb8   : > { %v5648_v24 = vpop.permute.xlu2 %1045 }
  0xb9   : > { %v5651_v25 = vrot.slane %v5648_v24, 4 }
  0xbb   : > { %v1057_v28 = vunpack.c.l.b16 %v5651_v25  ;;  %v1058_v29 = vunpack.c.h.b16 %v5651_v25 }
  0xbd   : > { %vm1061_vm6 = vcmp.ne.s32.totalorder %v1057_v28, %v5658_v30  ;;  %vm1062_vm7 = vcmp.ne.s32.totalorder %v1058_v29, %v5661_v31  ;;  %v1126_v29 = vld [vmem:[#allocation2 + $0x18] sm:$0xf] }
  0xbe   : > { %vm5680_vm14 = vmpackc.low %vm1062_vm7, %vm1061_vm6 }
  0xbf   : > { %v1067_v53 = vsel %vm5680_vm14, %v1038_v44, 0 }
  0xcf   : > { %v5653_v26 = vpop.permute.xlu1 %1185  ;;  %v1292_v27 = vpop.permute.xlu0 %1291 }
  0xd0   : > { %v5664_v32 = vrot.slane %v5653_v26, 4  ;;  %v1293_v33 = vrot.slane %v1292_v27, 4 }
  0xd2   : > { %v1197_v34 = vunpack.c.l.b16 %v5664_v32  ;;  %v1198_v35 = vunpack.c.h.b16 %v5664_v32  ;;  %v1302_v37 = vunpack.c.l.b16 %v1293_v33  ;;  %v1303_v38 = vunpack.c.h.b16 %v1293_v33 }
  0xd3   : > { %v1294_v45 = vsel %vm6613_vm11, %v1293_v33, %v1292_v27 }
  0xd4   : > { %vm1201_vm8 = vcmp.ne.s32.totalorder %v1197_v34, %v5658_v30  ;;  %vm1202_vm9 = vcmp.ne.s32.totalorder %v1198_v35, %v5661_v31  ;;  %vm1306_vm12 = vcmp.ne.s32.totalorder %v1302_v37, %v5658_v30  ;;  %vm1307_vm13 = vcmp.ne.s32.totalorder %v1303_v38, %v5661_v31 }
  0xd5   : > { %vm5672_vm10 = vmpackc.low %vm1202_vm9, %vm1201_vm8  ;;  %v1295_v54 = vunpack.c.l.b16 %v1294_v45  ;;  %v1296_v55 = vunpack.c.h.b16 %v1294_v45  ;;  %v1036_v45 = vld [vmem:[#allocation2 + $0x8] sm:$0xf] }
  0xd6   : > { %v1207_v40 = vsel %vm5672_vm10, %v1184_v36, 0  ;;  %vm5688_vm15 = vmpackc.low %vm1307_vm13, %vm1306_vm12  ;;  %vm6614_vm12 = vcmask 1039360   ;;  %v1205_v23 = vsel %vm5672_vm10, %v1182_v18, 0  ;;  %v1661_v18 = vld [vmem:[%s6663_s17] sm:$0xff] }
  0xd7   : > { %v5684_v42 = vpop.permute.xlu1 %1133  ;;  %v1242_v43 = vpop.permute.xlu0 %1241  ;;  %1218 = vrot.lane.b32.xlu0 %v1207_v40, %s6621_s18  ;;  %v1310_v56 = vsel %vm5688_vm15, %v1288_v49, 0  ;;  %v1312_v57 = vsel %vm5688_vm15, %v1290_v50, 0  ;;  %vm1299_vm6 = vcmp.ne.s32.totalorder %v1295_v54, %v5658_v30  ;;  %vm1300_vm7 = vcmp.ne.s32.totalorder %v1296_v55, %v5661_v31  ;;  %v1369_v49 = vld [vmem:[#allocation2 + $0x1c] sm:$0xf] }
  0xd8   : > { %v5693_v47 = vrot.slane %v5684_v42, 4  ;;  %v1243_v48 = vrot.slane %v1242_v43, 4  ;;  %v5193_v62 = vpack.i.bf16 %v1312_v57, %v1310_v56  ;;  %vm5727_vm9 = vmpackc.low %vm1300_vm7, %vm1299_vm6  ;;  %v1189_v12 = vsel %vm6614_vm12, %v5664_v32, %v5653_v26  ;;  %v1371_v26 = vpop.permute.xlu2 %1370 }
  0xd9   : > { %v6684_v6 = vsel %vm5727_vm9, 4294967295, %v6683_v6  ;;  %v1309_v10 = vsel %vm5727_vm9, %v5616_v13, 0  ;;  %v1311_v11 = vsel %vm5727_vm9, %v5619_v15, 0  ;;  %v1190_v16 = vunpack.c.l.b16 %v1189_v12 }
  0xda   : > { %v1145_v51 = vunpack.c.l.b16 %v5693_v47  ;;  %v1146_v52 = vunpack.c.h.b16 %v5693_v47  ;;  %v1252_v59 = vunpack.c.l.b16 %v1243_v48  ;;  %v1253_v60 = vunpack.c.h.b16 %v1243_v48  ;;  %5194 = vrot.lane.b32.xlu1 %v5193_v62, %s6682_s10  ;;  %v1632_v62 = vld [vmem:[%s6661_s13 + $0x18] sm:$0xff] }
  0xdb   : > { %v1244_v3 = vsel %vm6616_vm3, %v1243_v48, %v1242_v43  ;;  %v1191_v17 = vunpack.c.h.b16 %v1189_v12  ;;  %vm1194_vm6 = vcmp.ne.s32.totalorder %v1190_v16, %v5658_v30  ;;  %v1372_v32 = vrot.slane %v1371_v26, 4  ;;  %v1367_v48 = vld [vmem:[#allocation2 + $0xc] sm:$0xf] }
  0xdc   : > { %vm1149_vm0 = vcmp.ne.s32.totalorder %v1145_v51, %v5658_v30  ;;  %vm1150_vm1 = vcmp.ne.s32.totalorder %v1146_v52, %v5661_v31  ;;  %vm1256_vm4 = vcmp.ne.s32.totalorder %v1252_v59, %v5658_v30  ;;  %vm1257_vm5 = vcmp.ne.s32.totalorder %v1253_v60, %v5661_v31 }
  0xdd   : > { %vm5705_vm2 = vmpackc.low %vm1150_vm1, %vm1149_vm0  ;;  %v1245_v7 = vunpack.c.l.b16 %v1244_v3  ;;  %v1246_v8 = vunpack.c.h.b16 %v1244_v3  ;;  %vm1195_vm7 = vcmp.ne.s32.totalorder %v1191_v17, %v5661_v31  ;;  %v1381_v40 = vunpack.c.l.b16 %v1372_v32 }
  0xde   : > { %v1153_v63 = vsel %vm5705_vm2, %v1124_v58, 0  ;;  %vm5717_vm8 = vmpackc.low %vm1257_vm5, %vm1256_vm4  ;;  %vm6612_vm4 = vcmask 908288   ;;  %vm6615_vm5 = vcmask 924672   ;;  %v1155_v38 = vsel %vm5705_vm2, %v1126_v29, 0 }
  0xdf   : > { %1078 = vrot.lane.b32.xlu0 %v1067_v53, %s6610_s2  ;;  %1162 = vrot.lane.b32.xlu2 %v1153_v63, %s6679_s4  ;;  %v6681_v2 = vsel %vm5717_vm8, 4294967295, %v6680_v2  ;;  %v1260_v4 = vsel %vm5717_vm8, %v1238_v0, 0  ;;  %v1262_v5 = vsel %vm5717_vm8, %v1240_v1, 0  ;;  %vm1249_vm13 = vcmp.ne.s32.totalorder %v1245_v7, %v5658_v30  ;;  %s6685_s2 = smov 127   ;;  %v5190_v63 = vpop.permute.xlu1 %5189  ;;  %v1346_v0 = vpop.permute.xlu0 %1345  ;;  %v1629_v7 = vld [vmem:[%s6661_s13] sm:$0xff] }
  0xe0   : > { %v5198_v9 = vpack.i.bf16 %v1262_v5, %v1260_v4  ;;  %vm1250_vm0 = vcmp.ne.s32.totalorder %v1246_v8, %v5661_v31  ;;  %v1049_v27 = vsel %vm6612_vm4, %v5651_v25, %v5648_v24  ;;  %v1137_v28 = vsel %vm6615_vm5, %v5693_v47, %v5684_v42  ;;  %v1663_v8 = vld [vmem:[%s6663_s17 + $0x10] sm:$0xff] }
  0xe1   : > { %vm5745_vm1 = vmpackc.low %vm1250_vm0, %vm1249_vm13  ;;  %v1050_v34 = vunpack.c.l.b16 %v1049_v27  ;;  %v1051_v35 = vunpack.c.h.b16 %v1049_v27  ;;  %v1138_v36 = vunpack.c.l.b16 %v1137_v28  ;;  %v1139_v37 = vunpack.c.h.b16 %v1137_v28  ;;  %v2114_v27 = vld [vmem:[#allocation2 + $0x2c] sm:$0xf]  ;;  %v2116_v28 = vld [vmem:[#allocation2 + $0x3c] sm:$0xf] }
  0xe2   : > { %5199 = vrot.lane.b32.xlu1 %v5198_v9, %s6685_s2  ;;  %v6687_v14 = vsel %vm5745_vm1, 4294967295, %v6686_v14  ;;  %v1259_v19 = vsel %vm5745_vm1, %v5616_v13, 0  ;;  %v1261_v21 = vsel %vm5745_vm1, %v5619_v15, 0  ;;  %vm5768_vm13 = vmpackc.low %vm1195_vm7, %vm1194_vm6  ;;  %v1382_v42 = vunpack.c.h.b16 %v1372_v32  ;;  %v1631_v9 = vld [vmem:[%s6661_s13 + $0x10] sm:$0xff] }
  0xe3   : > { %v1204_v24 = vsel %vm5768_vm13, %v5640_v22, 0  ;;  %v1206_v25 = vsel %vm5768_vm13, %v5638_v20, 0  ;;  %vm1054_vm0 = vcmp.ne.s32.totalorder %v1050_v34, %v5658_v30  ;;  %vm1055_vm6 = vcmp.ne.s32.totalorder %v1051_v35, %v5661_v31 }
  0xe4   : > { %vm1142_vm7 = vcmp.ne.s32.totalorder %v1138_v36, %v5658_v30  ;;  %vm1143_vm4 = vcmp.ne.s32.totalorder %v1139_v37, %v5661_v31  ;;  %vm5787_vm11 = vmpackc.low %vm1055_vm6, %vm1054_vm0  ;;  %vm1385_vm12 = vcmp.ne.s32.totalorder %v1381_v40, %v5658_v30  ;;  %vm1386_vm5 = vcmp.ne.s32.totalorder %v1382_v42, %v5661_v31 }
  0xe5   : > { %vm5793_vm3 = vmpackc.low %vm1143_vm4, %vm1142_vm7  ;;  %vm6625_vm1 = vcmask 138240   ;;  %v1066_v51 = vsel %vm5787_vm11, %v5638_v20, 0  ;;  %v1065_v52 = vsel %vm5680_vm14, %v1036_v45, 0  ;;  %v1064_v58 = vsel %vm5787_vm11, %v5640_v22, 0 }
  0xe6   : > { %vm5797_vm9 = vmpackc.low %vm1386_vm5, %vm1385_vm12  ;;  %v1154_v50 = vsel %vm5793_vm3, %v5638_v20, 0  ;;  %v1373_v53 = vsel %vm6625_vm1, %v1372_v32, %v1371_v26  ;;  %v1152_v59 = vsel %vm5793_vm3, %v5640_v22, 0  ;;  %v5192_v3 = vunpack.i.h.bf16 %v5190_v63  ;;  %v2052_v26 = vld [vmem:[#allocation2 + $0x3c] sm:$0xf] }
  0xe7   : > { %1317 = vrot.lane.b32.xlu0 %v1309_v10, %s6682_s10  ;;  %1321 = vrot.lane.b32.xlu2 %v1311_v11, %s6682_s10  ;;  %v1389_v54 = vsel %vm5797_vm9, %v1367_v48, 0  ;;  %v1391_v55 = vsel %vm5797_vm9, %v1369_v49, 0  ;;  %v1374_v56 = vunpack.c.l.b16 %v1373_v53  ;;  %v1375_v20 = vunpack.c.h.b16 %v1373_v53  ;;  %v1107_v45 = vpop.permute.xlu1 %1106  ;;  %v1105_v48 = vpop.permute.xlu0 %1104 }
  0xe8   : > { %v5203_v57 = vpack.i.bf16 %v1391_v55, %v1389_v54  ;;  %v5191_v4 = vunpack.i.l.bf16 %v5190_v63  ;;  %v1353_v5 = vrot.slane %v1346_v0, 4  ;;  %vm1084_vm0 = vcmask 1043456   ;;  %v2046_v54 = vld [vmem:[#allocation2 + $0xc] sm:$0xf] }
  0xe9   : > { %vm1378_vm12 = vcmp.ne.s32.totalorder %v1374_v56, %v5658_v30  ;;  %vm1379_vm4 = vcmp.ne.s32.totalorder %v1375_v20, %v5661_v31  ;;  %v1350_v31 = vpop.permute.xlu2 %1349  ;;  %vm6624_vm6 = vcmask 916480   ;;  %v2060_v32 = vsel %vm5688_vm15, %v2052_v26, 0  ;;  %v1982_v55 = vld [vmem:[#allocation2 + $0xc] sm:$0xf]  ;;  %v1984_v56 = vld [vmem:[#allocation2 + $0x1c] sm:$0xf] }
  0xea   : > { %1214 = vrot.lane.b32.xlu1 %v1205_v23, %s6621_s18  ;;  %vm5828_vm5 = vmpackc.low %vm1379_vm4, %vm1378_vm12  ;;  %v1355_v1 = vrot.slane %v1350_v31, 4  ;;  %v2050_v23 = vld [vmem:[#allocation2 + $0x2c] sm:$0xf]  ;;  %vm6628_vm7 = vcmask 130048   ;;  %v1111_v53 = vrot.slane %v1105_v48, 4  ;;  %v1992_v63 = vsel %vm5717_vm8, %v1984_v56, 0 }
  0xeb   : > { %v1388_v30 = vsel %vm5828_vm5, %v5616_v13, 0  ;;  %v1390_v22 = vsel %vm5828_vm5, %v5619_v15, 0  ;;  %v1356_v13 = vrot.slane %v5192_v3, 4  ;;  %v1354_v15 = vrot.slane %v5191_v4, 4 }
  0xec   : > { %v2058_v29 = vsel %vm5688_vm15, %v2050_v23, 0  ;;  %vm6701_vm12 = vcmask 7168   ;;  %vm6702_vm4 = vcmask 924672  }
  0xed   : > { %v1360_v10 = vsel %vm1084_vm0, %v1355_v1, %v1356_v13  ;;  %v1357_v11 = vsel %vm1084_vm0, %v1353_v5, %v1354_v15  ;;  %v1986_v13 = vld [vmem:[#allocation2 + $0x2c] sm:$0xf]  ;;  %v1988_v15 = vld [vmem:[#allocation2 + $0x3c] sm:$0xf] }
  0xee   : > { %v1361_v12 = vsel %vm6624_vm6, %v1350_v31, %v1360_v10  ;;  %v1359_v16 = vsel %vm6624_vm6, %v1346_v0, %v1357_v11  ;;  %v1990_v31 = vsel %vm5717_vm8, %v1982_v55, 0  ;;  %v2054_v0 = vsel %vm5688_vm15, %v2046_v54, 0 }
  0xef   : > { %1267 = vrot.lane.b32.xlu0 %v1259_v19, %s6685_s2  ;;  %1271 = vrot.lane.b32.xlu2 %v1261_v21, %s6685_s2  ;;  %1365 = vst [vmem:[#allocation3 + $0x78] sm:$0xff] %v1361_v12  ;;  %v1662_v19 = vld [vmem:[%s6663_s17 + $0x8] sm:$0xff]  ;;  %v1664_v21 = vld [vmem:[%s6663_s17 + $0x18] sm:$0xff]  ;;  %s6700_s17 = smov 112   ;;  %v5236_v4 = vpack.i.bf16 %v1992_v63, %v1990_v31 }
  0xf0   : > { %1364 = vst [vmem:[#allocation3 + $0x70] sm:$0xff] %v1359_v16 }
  0xf1   : > { %v1103_v17 = vpop.permute.xlu2 %1102 }
  0xf2   : > { %1166 = vrot.lane.b32.xlu1 %v1155_v38, %s6679_s4  ;;  %v5211_v38 = vpack.i.bf16 %v2116_v28, %v2114_v27 }
  0xf6   : > { %v4992_v36 = vld [vmem:[#allocation3 + $0x74] sm:$0xf0]  ;;  %v4447_v42 = vld [vmem:[#allocation3 + $0x78] sm:$0xf0] }
  0xf7   : > { %1212 = vrot.lane.b32.xlu0 %v1204_v24, %s6621_s18  ;;  %1216 = vrot.lane.b32.xlu2 %v1206_v25, %s6621_s18  ;;  %s6696_s18 = smov 17   ;;  %v4445_v35 = vld [vmem:[#allocation3 + $0x70] sm:$0xf]  ;;  %v4991_v37 = vld [vmem:[#allocation3 + $0x74] sm:$0xf]  ;;  %v1110_v24 = vrot.slane %v1103_v17, 4 }
  0xf8   : > { %v4446_v40 = vor.u32 %v4992_v36, %v4445_v35  ;;  %v4450_v49 = vor.u32 %v4991_v37, %v4447_v42 }
  0xf9   : > { %v1109_v34 = vpop.permute.xlu2 %1108 }
  0xfa   : > { %1074 = vrot.lane.b32.xlu1 %v1065_v52, %s6696_s18  ;;  %v1113_v25 = vrot.slane %v1109_v34, 4  ;;  %v1112_v52 = vrot.slane %v1107_v45, 4  ;;  %1553 = vmatpush.bf16.msra.mxu0 %v4446_v40 }
  0xfb   : > { %1591 = vmatpush.bf16.msra.mxu2 %v4450_v49 }
  0xfc   : > { %v1117_v20 = vsel %vm1084_vm0, %v1112_v52, %v1113_v25 }
  0xff   : > { %1164 = vrot.lane.b32.xlu0 %v1154_v50, %s6679_s4  ;;  %1076 = vrot.lane.b32.xlu2 %v1066_v51, %s6696_s18  ;;  %v1630_v50 = vld [vmem:[%s6661_s13 + $0x8] sm:$0xff]  ;;  %v5221_v51 = vpack.i.bf16 %v2060_v32, %v2058_v29  ;;  %s6712_s13 = smov 1  }
 0x102   : > { %1160 = vrot.lane.b32.xlu1 %v1152_v59, %s6679_s4  ;;  %v2110_v59 = vld [vmem:[#allocation2 + $0xc] sm:$0xf] }
 0x107   : > { %5204 = vrot.lane.b32.xlu2 %v5203_v57, %s6697_s5  ;;  %1072 = vrot.lane.b32.xlu0 %v1064_v58, %s6696_s18  ;;  %v1114_v57 = vsel %vm1084_vm0, %v1110_v24, %v1111_v53  ;;  %v2048_v58 = vld [vmem:[#allocation2 + $0x1c] sm:$0xf] }
 0x108   : > { %v2056_v1 = vsel %vm5688_vm15, %v2048_v58, 0 }
 0x109   : > { %v5226_v5 = vpack.i.bf16 %v2056_v1, %v2054_v0 }
 0x10a   : > { %1396 = vrot.lane.b32.xlu1 %v1388_v30, %s6697_s5  ;;  %v1118_v30 = vsel %vm6628_vm7, %v1107_v45, %v1117_v20 }
 0x10b   : > { %1122 = vst [vmem:[#allocation3 + $0x18] sm:$0xff] %v1118_v30 }
 0x10f   : > { %1650 = vperm.xlu2 %5209, %v1632_v62   ;;  %1400 = vrot.lane.b32.xlu0 %v1390_v22, %s6697_s5  ;;  %v2112_v62 = vld [vmem:[#allocation2 + $0x1c] sm:$0xf]  ;;  %v1116_v22 = vsel %vm6628_vm7, %v1103_v17, %v1114_v57 }
 0x110   : > { %1121 = vst [vmem:[#allocation3 + $0x10] sm:$0xff] %v1116_v22  ;;  %v5216_v3 = vpack.i.bf16 %v2112_v62, %v2110_v59 }
 0x112   : > { %1645 = vperm.xlu1 %5208, %v1631_v9  }
 0x117   : > { %1635 = vperm.xlu2 %5209, %v1629_v7   ;;  %1677 = vperm.xlu0 %5210, %v1663_v8   ;;  %v1994_v7 = vsel %vm5717_vm8, %v1986_v13, 0  ;;  %v1996_v8 = vsel %vm5717_vm8, %v1988_v15, 0 }
 0x118   : > { %v5231_v9 = vpack.i.bf16 %v1996_v8, %v1994_v7  ;;  %v4421_v8 = vld [vmem:[#allocation3 + $0x40] sm:$0xf] }
 0x11a   : > { %1682 = vperm.xlu1 %5208, %v1664_v21  }
 0x11f   : > { %1667 = vperm.xlu2 %5209, %v1661_v18   ;;  %1672 = vperm.xlu0 %5210, %v1662_v19  }
 0x122   : > { %1640 = vperm.xlu1 %5208, %v1630_v50  }
 0x127   : > { %5212 = vrot.lane.b32.xlu2 %v5211_v38, %s6700_s17  ;;  %5222 = vrot.lane.b32.xlu0 %v5221_v51, %s6682_s10 }
 0x12a   : > { %5227 = vrot.lane.b32.xlu1 %v5226_v5, %s6682_s10 }
 0x12f   : > { %5217 = vrot.lane.b32.xlu2 %v5216_v3, %s6700_s17  ;;  %5237 = vrot.lane.b32.xlu0 %v5236_v4, %s6685_s2 }
 0x137   : > { %5232 = vrot.lane.b32.xlu2 %v5231_v9, %s6685_s2  ;;  %v4986_v9 = vld [vmem:[#allocation3 + $0x44] sm:$0xf0] }
 0x139   : > { %v5878_v10 = vpop.permute.xlu2 %1162 }
 0x141   : > { %v1322_v11 = vpop.permute.xlu2 %1321 }
 0x142   : > { %v1327_v28 = vrot.slane %v1322_v11, 4 }
 0x149   : > { %v1219_v12 = vpop.permute.xlu0 %1218  ;;  %v1272_v16 = vpop.permute.xlu2 %1271 }
 0x14a   : > { %v1223_v19 = vrot.slane %v1219_v12, 4  ;;  %v1277_v51 = vrot.slane %v1272_v16, 4 }
 0x14c   : > { %v5195_v21 = vpop.permute.xlu1 %5194 }
 0x14d   : > { %v5197_v26 = vunpack.i.h.bf16 %v5195_v21  ;;  %v5196_v34 = vunpack.i.l.bf16 %v5195_v21 }
 0x14f   : > { %v1328_v29 = vrot.slane %v5197_v26, 4  ;;  %v1326_v24 = vrot.slane %v5196_v34, 4 }
 0x151   : > { %v1079_v17 = vpop.permute.xlu0 %1078  ;;  %v1217_v18 = vpop.permute.xlu2 %1216  ;;  %v1331_v35 = vsel %vm1084_vm0, %v1327_v28, %v1328_v29  ;;  %v4422_v28 = vor.u32 %v4986_v9, %v4421_v8 }
 0x152   : > { %v1222_v23 = vrot.slane %v1217_v18, 4  ;;  %v1332_v36 = vsel %vm6702_vm4, %v1322_v11, %v1331_v35  ;;  %v1083_v25 = vrot.slane %v1079_v17, 4  ;;  %v4423_v17 = vld [vmem:[#allocation3 + $0x48] sm:$0xf0] }
 0x153   : > { %1336 = vst [vmem:[#allocation3 + $0x68] sm:$0xff] %v1332_v36 }
 0x154   : > { %v1227_v27 = vsel %vm1084_vm0, %v1222_v23, %v1223_v19  ;;  %v5200_v40 = vpop.permute.xlu1 %5199 }
 0x155   : > { %v1228_v32 = vsel %vm6701_vm12, %v1217_v18, %v1227_v27  ;;  %v5202_v48 = vunpack.i.h.bf16 %v5200_v40  ;;  %vm6703_vm12 = vmmov %vm6702_vm4  ;;  %v5201_v55 = vunpack.i.l.bf16 %v5200_v40  ;;  %vm6704_vm4 = vcmask 1039360  }
 0x156   : > { %1232 = vst [vmem:[#allocation3 + $0x38] sm:$0xff] %v1228_v32  ;;  %vm6705_vm6 = vmmov %vm6704_vm4 }
 0x157   : > { %v1278_v52 = vrot.slane %v5202_v48, 4  ;;  %v1276_v58 = vrot.slane %v5201_v55, 4 }
 0x159   : > { %v1318_v37 = vpop.permute.xlu0 %1317  ;;  %v1077_v38 = vpop.permute.xlu2 %1076  ;;  %v1281_v56 = vsel %vm1084_vm0, %v1277_v51, %v1278_v52 }
 0x15a   : > { %v1325_v42 = vrot.slane %v1318_v37, 4  ;;  %v1082_v45 = vrot.slane %v1077_v38, 4  ;;  %v1282_v20 = vsel %vm6704_vm4, %v1272_v16, %v1281_v56  ;;  %v4990_v22 = vld [vmem:[#allocation3 + $0x64] sm:$0xf0]  ;;  %v4439_v1 = vld [vmem:[#allocation3 + $0x68] sm:$0xf0] }
 0x15b   : > { %1286 = vst [vmem:[#allocation3 + $0x58] sm:$0xff] %v1282_v20  ;;  %v4985_v16 = vld [vmem:[#allocation3 + $0x44] sm:$0xf] }
 0x15c   : > { %v1329_v49 = vsel %vm1084_vm0, %v1325_v42, %v1326_v24  ;;  %v1088_v50 = vsel %vm1084_vm0, %v1082_v45, %v1083_v25  ;;  %v1215_v59 = vpop.permute.xlu1 %1214  ;;  %v4426_v29 = vor.u32 %v4985_v16, %v4423_v17  ;;  %v4980_v16 = vld [vmem:[#allocation3 + $0x14] sm:$0xf0]  ;;  %v4979_v17 = vld [vmem:[#allocation3 + $0x14] sm:$0xf] }
 0x15d   : > { %v1330_v53 = vsel %vm6703_vm12, %v1318_v37, %v1329_v49  ;;  %v1089_v54 = vsel %vm6625_vm1, %v1077_v38, %v1088_v50  ;;  %v1221_v13 = vrot.slane %v1215_v59, 4  ;;  %v4984_v38 = vld [vmem:[#allocation3 + $0x34] sm:$0xf0]  ;;  %vm6707_vm12 = vcmask 121856   ;;  %v4415_v42 = vld [vmem:[#allocation3 + $0x38] sm:$0xf0] }
 0x15e   : > { %1335 = vst [vmem:[#allocation3 + $0x60] sm:$0xff] %v1330_v53  ;;  %v1169_v53 = vrot.slane %v5878_v10, 4  ;;  %vm6708_vm4 = vmmov %vm6707_vm12 }
 0x15f   : > { %1093 = vst [vmem:[#allocation3 + $0x8] sm:$0xff] %v1089_v54 }
 0x161   : > { %v1268_v57 = vpop.permute.xlu0 %1267  ;;  %v5205_v56 = vpop.permute.xlu2 %5204 }
 0x162   : > { %v1275_v62 = vrot.slane %v1268_v57, 4  ;;  %v4988_v12 = vld [vmem:[#allocation3 + $0x54] sm:$0xf0]  ;;  %v4431_v23 = vld [vmem:[#allocation3 + $0x58] sm:$0xf0] }
 0x164   : > { %v1279_v30 = vsel %vm1084_vm0, %v1275_v62, %v1276_v58  ;;  %v1167_v15 = vpop.permute.xlu1 %1166  ;;  %v5207_v58 = vunpack.i.h.bf16 %v5205_v56  ;;  %v5206_v62 = vunpack.i.l.bf16 %v5205_v56 }
 0x165   : > { %v1280_v31 = vsel %vm6705_vm6, %v1268_v57, %v1279_v30  ;;  %v4437_v63 = vld [vmem:[#allocation3 + $0x60] sm:$0xf]  ;;  %v4989_v0 = vld [vmem:[#allocation3 + $0x64] sm:$0xf]  ;;  %vm6706_vm6 = vcmask 7168   ;;  %v1171_v34 = vrot.slane %v1167_v15, 4 }
 0x166   : > { %1285 = vst [vmem:[#allocation3 + $0x50] sm:$0xff] %v1280_v31  ;;  %v4438_v3 = vor.u32 %v4990_v22, %v4437_v63  ;;  %v4442_v4 = vor.u32 %v4989_v0, %v4439_v1  ;;  %v1407_v22 = vrot.slane %v5207_v58, 4  ;;  %v1405_v0 = vrot.slane %v5206_v62, 4 }
 0x168   : > { %1554 = vmatpush.bf16.msra.mxu0 %v4438_v3  ;;  %1592 = vmatpush.bf16.msra.mxu2 %v4442_v4 }
 0x169   : > { %v1213_v5 = vpop.permute.xlu0 %1212  ;;  %v5917_v56 = vpop.permute.xlu2 %1650 }
 0x16a   : > { %v1220_v7 = vrot.slane %v1213_v5, 4 }
 0x16c   : > { %v1224_v11 = vsel %vm1084_vm0, %v1220_v7, %v1221_v13  ;;  %v1075_v35 = vpop.permute.xlu1 %1074 }
 0x16d   : > { %v1226_v18 = vsel %vm6706_vm6, %v1213_v5, %v1224_v11  ;;  %v4429_v19 = vld [vmem:[#allocation3 + $0x50] sm:$0xf]  ;;  %v4987_v21 = vld [vmem:[#allocation3 + $0x54] sm:$0xf]  ;;  %v1081_v50 = vrot.slane %v1075_v35, 4  ;;  %vm6709_vm6 = vcmask 908288  }
 0x16e   : > { %1231 = vst [vmem:[#allocation3 + $0x30] sm:$0xff] %v1226_v18  ;;  %v4430_v26 = vor.u32 %v4988_v12, %v4429_v19  ;;  %v4434_v27 = vor.u32 %v4987_v21, %v4431_v23  ;;  %v4397_v12 = vld [vmem:[#allocation3 + $0x10] sm:$0xf]  ;;  %v4399_v18 = vld [vmem:[#allocation3 + $0x18] sm:$0xf0] }
 0x16f   : > { %v4398_v19 = vor.u32 %v4980_v16, %v4397_v12  ;;  %v4402_v21 = vor.u32 %v4979_v17, %v4399_v18  ;;  %v4373_v23 = vld [vmem:[%s6662_s9] sm:$0xf] }
 0x170   : > { %1555 = vmatpush.bf16.msra.mxu0 %v4430_v26  ;;  %1593 = vmatpush.bf16.msra.mxu2 %v4434_v27  ;;  %v4978_v27 = vld [vmem:[#allocation3 + $0x4] sm:$0xf0] }
 0x171   : > { %v1165_v32 = vpop.permute.xlu0 %1164 }
 0x172   : > { %v1170_v36 = vrot.slane %v1165_v32, 4 }
 0x174   : > { %v1175_v37 = vsel %vm1084_vm0, %v1170_v36, %v1171_v34  ;;  %1556 = vmatpush.bf16.msra.mxu0 %v4422_v28  ;;  %1594 = vmatpush.bf16.msra.mxu2 %v4426_v29  ;;  %v1161_v51 = vpop.permute.xlu1 %1160  ;;  %v4391_v29 = vld [vmem:[#allocation3 + $0x8] sm:$0xf0]  ;;  %v4973_v36 = vld [vmem:[%s6662_s9 + $0x4] sm:$0xf] }
 0x175   : > { %v1176_v24 = vsel %vm6707_vm12, %v1165_v32, %v1175_v37  ;;  %v4413_v25 = vld [vmem:[#allocation3 + $0x30] sm:$0xf]  ;;  %v4983_v40 = vld [vmem:[#allocation3 + $0x34] sm:$0xf]  ;;  %v1168_v54 = vrot.slane %v1161_v51, 4  ;;  %vm6710_vm12 = vmmov %vm6709_vm6 }
 0x176   : > { %1180 = vst [vmem:[#allocation3 + $0x28] sm:$0xff] %v1176_v24  ;;  %v4414_v45 = vor.u32 %v4984_v38, %v4413_v25  ;;  %v4418_v48 = vor.u32 %v4983_v40, %v4415_v42  ;;  %v4974_v32 = vld [vmem:[%s6662_s9 + $0x4] sm:$0xf0]  ;;  %v4375_v24 = vld [vmem:[%s6662_s9 + $0x8] sm:$0xf0] }
 0x177   : > { %v1172_v20 = vsel %vm1084_vm0, %v1168_v54, %v1169_v53  ;;  %v4383_v53 = vld [vmem:[%s6662_s9 + $0x18] sm:$0xf0] }
 0x178   : > { %1557 = vmatpush.bf16.msra.mxu0 %v4414_v45  ;;  %1595 = vmatpush.bf16.msra.mxu2 %v4418_v48  ;;  %v1174_v59 = vsel %vm6708_vm4, %v1161_v51, %v1172_v20  ;;  %v4374_v48 = vor.u32 %v4974_v32, %v4373_v23  ;;  %v4976_v51 = vld [vmem:[%s6662_s9 + $0x14] sm:$0xf0] }
 0x179   : > { %v1073_v49 = vpop.permute.xlu0 %1072  ;;  %1179 = vst [vmem:[#allocation3 + $0x20] sm:$0xff] %v1174_v59 }
 0x17a   : > { %v1080_v52 = vrot.slane %v1073_v49, 4 }
 0x17c   : > { %v1085_v55 = vsel %vm1084_vm0, %v1080_v52, %v1081_v50  ;;  %v1397_v31 = vpop.permute.xlu1 %1396  ;;  %v4381_v50 = vld [vmem:[%s6662_s9 + $0x10] sm:$0xf]  ;;  %v4975_v52 = vld [vmem:[%s6662_s9 + $0x14] sm:$0xf]  ;;  %s6711_s9 = smov 16  }
 0x17d   : > { %v1087_v57 = vsel %vm6625_vm1, %v1073_v49, %v1085_v55  ;;  %v1404_v10 = vrot.slane %v1397_v31, 4  ;;  %v4982_v5 = vld [vmem:[#allocation3 + $0x24] sm:$0xf0]  ;;  %v4407_v13 = vld [vmem:[#allocation3 + $0x28] sm:$0xf0]  ;;  %v4378_v49 = vor.u32 %v4973_v36, %v4375_v24  ;;  %v4382_v54 = vor.u32 %v4976_v51, %v4381_v50 }
 0x17e   : > { %1092 = vst [vmem:[#allocation3] sm:$0xff] %v1087_v57  ;;  %v4386_v55 = vor.u32 %v4975_v52, %v4383_v53  ;;  %v1636_v57 = vpop.permute.xlu2 %1635 }
 0x17f   : > { %v1408_v3 = vsel %vm1084_vm0, %v1404_v10, %v1405_v0 }
 0x180   : > { %v1409_v15 = vsel %vm6710_vm12, %v1397_v31, %v1408_v3  ;;  %v4405_v7 = vld [vmem:[#allocation3 + $0x20] sm:$0xf]  ;;  %v4981_v8 = vld [vmem:[#allocation3 + $0x24] sm:$0xf] }
 0x181   : > { %v1401_v30 = vpop.permute.xlu0 %1400  ;;  %1414 = vst [vmem:[#allocation3 + $0x80] sm:$0xff] %v1409_v15  ;;  %v4406_v9 = vor.u32 %v4982_v5, %v4405_v7  ;;  %v4410_v11 = vor.u32 %v4981_v8, %v4407_v13 }
 0x182   : > { %v1406_v63 = vrot.slane %v1401_v30, 4 }
 0x183   : > { %1558 = vmatpush.bf16.msra.mxu0 %v4406_v9  ;;  %1596 = vmatpush.bf16.msra.mxu2 %v4410_v11 }
 0x184   : > { %v1410_v1 = vsel %vm1084_vm0, %v1406_v63, %v1407_v22  ;;  %v1646_v20 = vpop.permute.xlu1 %1645 }
 0x185   : > { %v1411_v4 = vsel %vm6709_vm6, %v1401_v30, %v1410_v1  ;;  %v4389_v26 = vld [vmem:[#allocation3] sm:$0xf]  ;;  %v4977_v28 = vld [vmem:[#allocation3 + $0x4] sm:$0xf] }
 0x186   : > { %1415 = vst [vmem:[#allocation3 + $0x88] sm:$0xff] %v1411_v4  ;;  %v4390_v25 = vor.u32 %v4978_v27, %v4389_v26  ;;  %v4394_v40 = vor.u32 %v4977_v28, %v4391_v29  ;;  %v1668_v0 = vpop.permute.xlu2 %1667 }
 0x187   : > { %1559 = vmatpush.bf16.msra.mxu0 %v4398_v19  ;;  %1597 = vmatpush.bf16.msra.mxu2 %v4402_v21 }
 0x188   : > { %v4453_v37 = vld [vmem:[#allocation3 + $0x80] sm:$0xf]  ;;  %v4993_v38 = vld [vmem:[#allocation3 + $0x84] sm:$0xf] }
 0x189   : > { %v1678_v31 = vpop.permute.xlu0 %1677 }
 0x18b   : > { %1560 = vmatpush.bf16.msra.mxu0 %v4390_v25  ;;  %1598 = vmatpush.bf16.msra.mxu2 %v4394_v40 }
 0x18c   : > { %v5919_v59 = vpop.permute.xlu1 %1682 }
 0x18d   : > { %v4994_v34 = vld [vmem:[#allocation3 + $0x84] sm:$0xf0]  ;;  %v4455_v35 = vld [vmem:[#allocation3 + $0x88] sm:$0xf0] }
 0x18e   : > { %v4454_v42 = vor.u32 %v4994_v34, %v4453_v37  ;;  %v4458_v45 = vor.u32 %v4993_v38, %v4455_v35  ;;  %1599 = vmatmul.bf16.vlgmr.msra.gmra.mxu2 %v4374_v48  ;;  %1561 = vmatmul.bf16.vlgmr.msra.gmra.mxu0 %v4374_v48 }
 0x190   : > { %1579 = vmatpush.bf16.msra.mxu1 %v4454_v42  ;;  %1617 = vmatpush.bf16.msra.mxu3 %v4458_v45 }
 0x191   : > { %v1673_v17 = vpop.permute.xlu0 %1672 }
 0x193   : > { %4459 = vmatmul.msk.bf16.vlgmr.msra.gmra.mxu1 %vm6628_vm7, %v4378_v49  ;;  %4461 = vmatmul.msk.bf16.vlgmr.msra.gmra.mxu3 %vm6628_vm7, %v4378_v49 }
 0x194   : > { %v1641_v7 = vpop.permute.xlu1 %1640 }
 0x19e   : > { %1566 = vmatmul.bf16.gmra.mxu0 %v4382_v54  ;;  %1604 = vmatmul.bf16.gmra.mxu2 %v4382_v54 }
 0x1a3   : > { %4460 = vmatmul.msk.bf16.gmra.mxu1 %vm6628_vm7, %v4386_v55  ;;  %4462 = vmatmul.msk.bf16.gmra.mxu3 %vm6628_vm7, %v4386_v55 }
 0x20b   : > { %v1562_v58 = vpop.f32.mrf.mxu0 }
 0x210   : > { %v1581_v62 = vpop.f32.mrf.mxu1 }
 0x211   : > { %v1582_v30 = vadd.f32 %v1581_v62, %v1562_v58  ;;  %v1600_v63 = vpop.f32.mrf.mxu2 }
 0x213   : > { %v1653_v22 = vmul.f32 %v1636_v57, %v1582_v30  ;;  %v1564_v3 = vpop.f32.mrf.mxu0 }
 0x215   : > { %v1685_v1 = vadd.f32 %v1668_v0, %v1653_v22 }
 0x216   : > { %v1619_v10 = vpop.f32.mrf.mxu3 }
 0x217   : > { %v1620_v4 = vadd.f32 %v1619_v10, %v1600_v63  ;;  %v1701_v8 = vmul.f32 0.1, %v1685_v1  ;;  %vm1693_vm4 = vcmp.gt.f32.partialorder %v1685_v1, 0.0 }
 0x218   : > { %v1583_v5 = vpop.f32.mrf.mxu1 }
 0x219   : > { %v1654_v13 = vmul.f32 %v1636_v57, %v1620_v4  ;;  %v1584_v15 = vadd.f32 %v1583_v5, %v1564_v3  ;;  %v1602_v16 = vpop.f32.mrf.mxu2  ;;  %v1709_v19 = vsel %vm1693_vm4, %v1685_v1, %v1701_v8 }
 0x21b   : > { %v1686_v9 = vadd.f32 %v1668_v0, %v1654_v13  ;;  %v1655_v11 = vmul.f32 %v1641_v7, %v1584_v15  ;;  %v1567_v27 = vpop.f32.mrf.mxu0 }
 0x21d   : > { %vm1694_vm6 = vcmp.gt.f32.partialorder %v1686_v9, 0.0  ;;  %v1702_v12 = vmul.f32 0.1, %v1686_v9  ;;  %v1687_v23 = vadd.f32 %v1673_v17, %v1655_v11 }
 0x21e   : > { %v1621_v18 = vpop.f32.mrf.mxu3 }
 0x21f   : > { %v1710_v21 = vsel %vm1694_vm6, %v1686_v9, %v1702_v12  ;;  %v1622_v26 = vadd.f32 %v1621_v18, %v1602_v16  ;;  %v1703_v35 = vmul.f32 0.1, %v1687_v23  ;;  %vm1695_vm12 = vcmp.gt.f32.partialorder %v1687_v23, 0.0 }
 0x220   : > { %v5921_v28 = vpack.c.bf16 %v1710_v21, %v1709_v19  ;;  %v1586_v29 = vpop.f32.mrf.mxu1 }
 0x221   : > { %v1656_v32 = vmul.f32 %v1641_v7, %v1622_v26  ;;  %v1587_v34 = vadd.f32 %v1586_v29, %v1567_v27  ;;  %v1605_v24 = vpop.f32.mrf.mxu2  ;;  %v1711_v40 = vsel %vm1695_vm12, %v1687_v23, %v1703_v35 }
 0x222   : > { %1721 = vst [vmem:[#allocation2 + $0x4] sm:$0xff] %v5921_v28  ;;  %2125 = vrot.lane.b32.xlu1 %v5921_v28, %s6700_s17 }
 0x223   : > { %v1688_v36 = vadd.f32 %v1673_v17, %v1656_v32  ;;  %v1657_v37 = vmul.f32 %v1646_v20, %v1587_v34  ;;  %v1569_v49 = vpop.f32.mrf.mxu0 }
 0x225   : > { %vm1696_vm1 = vcmp.gt.f32.partialorder %v1688_v36, 0.0  ;;  %v1704_v38 = vmul.f32 0.1, %v1688_v36  ;;  %v1689_v45 = vadd.f32 %v1678_v31, %v1657_v37 }
 0x226   : > { %v1624_v25 = vpop.f32.mrf.mxu3 }
 0x227   : > { %v1712_v42 = vsel %vm1696_vm1, %v1688_v36, %v1704_v38  ;;  %v1625_v48 = vadd.f32 %v1624_v25, %v1605_v24  ;;  %v1705_v58 = vmul.f32 0.1, %v1689_v45  ;;  %vm1697_vm1 = vcmp.gt.f32.partialorder %v1689_v45, 0.0 }
 0x228   : > { %v5926_v50 = vpack.c.bf16 %v1712_v42, %v1711_v40  ;;  %v1588_v51 = vpop.f32.mrf.mxu1 }
 0x229   : > { %v1658_v52 = vmul.f32 %v1646_v20, %v1625_v48  ;;  %v1589_v53 = vadd.f32 %v1588_v51, %v1569_v49  ;;  %v5928_v54 = vld [vmem:[#allocation2] sm:$0xff]  ;;  %v1790_v55 = vld [vmem:[#allocation2 + $0x8] sm:$0xf]  ;;  %v1607_v63 = vpop.f32.mrf.mxu2  ;;  %v1713_v1 = vsel %vm1697_vm1, %v1689_v45, %v1705_v58  ;;  %vm6713_vm1 = vnez %v6684_v6 }
 0x22a   : > { %1722 = vst [vmem:[#allocation2 + $0x14] sm:$0xff] %v5926_v50  ;;  %1805 = vrot.lane.b32.xlu0 %v5928_v54, %s6711_s9  ;;  %v1917_v57 = vsel %vm5768_vm13, %v5928_v54, 0  ;;  %1807 = vrot.lane.b32.xlu1 %v1790_v55, %s6711_s9  ;;  %v1973_v20 = vld [vmem:[#allocation2 + $0x4] sm:$0xff]  ;;  %v1853_v8 = vsel %vm5793_vm3, %v5928_v54, 0  ;;  %v2053_v23 = vsel %vm6713_vm1, %v5921_v28, 0  ;;  %v2055_v38 = vsel %vm6713_vm1, %v5926_v50, 0 }
 0x22b   : > { %v1690_v62 = vadd.f32 %v1678_v31, %v1658_v52  ;;  %v1659_v30 = vmul.f32 %v5917_v56, %v1589_v53  ;;  %1933 = vrot.lane.b32.xlu2 %v1917_v57, %s6712_s13  ;;  %1977 = vst [vmem:[#allocation3 + $0x80] sm:$0xff] %v1973_v20  ;;  %v1910_v10 = vld [vmem:[#allocation2 + $0x8] sm:$0xf]  ;;  %v6013_v52 = vpop.permute.xlu2 %5212 }
 0x22c   : > { %v1846_v13 = vld [vmem:[#allocation2 + $0x8] sm:$0xf]  ;;  %v1918_v7 = vsel %vm5672_vm10, %v1910_v10, 0 }
 0x22d   : > { %vm1698_vm4 = vcmp.gt.f32.partialorder %v1690_v62, 0.0  ;;  %v1706_v22 = vmul.f32 0.1, %v1690_v62  ;;  %v1691_v4 = vadd.f32 %v5919_v59, %v1659_v30  ;;  %v1854_v9 = vsel %vm5705_vm2, %v1846_v13, 0 }
 0x22e   : > { %v1626_v0 = vpop.f32.mrf.mxu3 }
 0x22f   : > { %v1714_v3 = vsel %vm1698_vm4, %v1690_v62, %v1706_v22  ;;  %v1627_v5 = vadd.f32 %v1626_v0, %v1607_v63  ;;  %v1707_v11 = vmul.f32 0.1, %v1691_v4  ;;  %vm1699_vm6 = vcmp.gt.f32.partialorder %v1691_v4, 0.0 }
 0x230   : > { %v5940_v15 = vpack.c.bf16 %v1714_v3, %v1713_v1  ;;  %vm6714_vm4 = vnez %v6687_v14 }
 0x231   : > { %v1660_v31 = vmul.f32 %v5917_v56, %v1627_v5  ;;  %v1974_v56 = vld [vmem:[#allocation2 + $0x14] sm:$0xff]  ;;  %v1715_v18 = vsel %vm1699_vm6, %v1691_v4, %v1707_v11  ;;  %v1989_v26 = vsel %vm6714_vm4, %v5921_v28, 0  ;;  %v1991_v35 = vsel %vm6714_vm4, %v5926_v50, 0 }
 0x232   : > { %1723 = vst [vmem:[#allocation2 + $0x24] sm:$0xff] %v5940_v15  ;;  %1935 = vrot.lane.b32.xlu0 %v1918_v7, %s6712_s13  ;;  %1869 = vrot.lane.b32.xlu1 %v1853_v8, %s6679_s4  ;;  %v5956_v17 = vld [vmem:[#allocation2 + $0x10] sm:$0xff]  ;;  %v1848_v27 = vld [vmem:[#allocation2 + $0x18] sm:$0xf]  ;;  %v1993_v53 = vsel %vm6714_vm4, %v5940_v15, 0  ;;  %v2057_v55 = vsel %vm6713_vm1, %v5940_v15, 0 }
 0x233   : > { %v1692_v12 = vadd.f32 %v5919_v59, %v1660_v31  ;;  %1871 = vrot.lane.b32.xlu2 %v1854_v9, %s6679_s4  ;;  %1979 = vst [vmem:[#allocation3 + $0x90] sm:$0xff] %v5940_v15  ;;  %v1919_v59 = vsel %vm5768_vm13, %v5956_v17, 0  ;;  %v1856_v29 = vsel %vm5705_vm2, %v1848_v27, 0  ;;  %v1912_v32 = vld [vmem:[#allocation2 + $0x18] sm:$0xf]  ;;  %v1855_v37 = vsel %vm5793_vm3, %v5956_v17, 0  ;;  %v6029_v30 = vpop.permute.xlu2 %5217  ;;  %v6054_v31 = vpop.permute.xlu0 %5222 }
 0x234   : > { %1978 = vst [vmem:[#allocation3 + $0x88] sm:$0xff] %v1974_v56  ;;  %v1792_v34 = vld [vmem:[#allocation2 + $0x18] sm:$0xf]  ;;  %v1920_v36 = vsel %vm5672_vm10, %v1912_v32, 0  ;;  %v1726_v8 = vld [vmem:[#allocation2 + $0x8] sm:$0xf]  ;;  %v6068_v56 = vpop.permute.xlu1 %5227 }
 0x235   : > { %vm1700_vm12 = vcmp.gt.f32.partialorder %v1692_v12, 0.0  ;;  %v1708_v16 = vmul.f32 0.1, %v1692_v12  ;;  %v1734_v9 = vsel %vm5680_vm14, %v1726_v8, 0  ;;  %vm6715_vm6 = vcmask 916480  }
 0x237   : > { %v1716_v19 = vsel %vm1700_vm12, %v1692_v12, %v1708_v16  ;;  %v1733_v12 = vsel %vm5787_vm11, %v5928_v54, 0  ;;  %v1735_v54 = vsel %vm5787_vm11, %v5956_v17, 0  ;;  %vm6716_vm12 = vcmask 1039360  }
 0x238   : > { %v5958_v21 = vpack.c.bf16 %v1716_v19, %v1715_v18  ;;  %v5219_v18 = vunpack.i.l.bf16 %v6029_v30 }
 0x239   : > { %v1793_v24 = vld [vmem:[#allocation2 + $0x20] sm:$0xff]  ;;  %v1794_v25 = vld [vmem:[#allocation2 + $0x28] sm:$0xf] }
 0x23a   : > { %1724 = vst [vmem:[#allocation2 + $0x34] sm:$0xff] %v5958_v21  ;;  %2069 = vrot.lane.b32.xlu0 %v2053_v23, %s6682_s10  ;;  %1937 = vrot.lane.b32.xlu1 %v1919_v59, %s6712_s13  ;;  %v1921_v40 = vsel %vm5768_vm13, %v1793_v24, 0  ;;  %v1850_v42 = vld [vmem:[#allocation2 + $0x28] sm:$0xf]  ;;  %v1857_v48 = vsel %vm5793_vm3, %v1793_v24, 0  ;;  %v1995_v4 = vsel %vm6714_vm4, %v5958_v21, 0 }
 0x23b   : > { %2005 = vrot.lane.b32.xlu2 %v1989_v26, %s6685_s2  ;;  %1980 = vst [vmem:[#allocation3 + $0x98] sm:$0xff] %v5958_v21  ;;  %v1914_v45 = vld [vmem:[#allocation2 + $0x28] sm:$0xf]  ;;  %v1858_v49 = vsel %vm5705_vm2, %v1850_v42, 0  ;;  %v6041_v3 = vpop.permute.xlu2 %5232  ;;  %v2059_v5 = vsel %vm6713_vm1, %v5958_v21, 0  ;;  %v1737_v11 = vsel %vm5787_vm11, %v1793_v24, 0  ;;  %v6073_v19 = vpop.permute.xlu0 %5237 }
 0x23c   : > { %v1922_v51 = vsel %vm5672_vm10, %v1914_v45, 0  ;;  %v1730_v63 = vld [vmem:[#allocation2 + $0x28] sm:$0xf]  ;;  %v1728_v23 = vld [vmem:[#allocation2 + $0x18] sm:$0xf]  ;;  %v5239_v26 = vunpack.i.l.bf16 %v6073_v19  ;;  %v2177_v42 = vsel %vm5828_vm5, %v5940_v15, 0 }
 0x23d   : > { %v1738_v1 = vsel %vm5680_vm14, %v1730_v63, 0  ;;  %v1736_v27 = vsel %vm5680_vm14, %v1728_v23, 0 }
 0x241   : > { %v1915_v57 = vld [vmem:[#allocation2 + $0x30] sm:$0xff]  ;;  %v1796_v62 = vld [vmem:[#allocation2 + $0x38] sm:$0xf] }
 0x242   : > { %2129 = vrot.lane.b32.xlu0 %v5926_v50, %s6700_s17  ;;  %1875 = vrot.lane.b32.xlu1 %v1856_v29, %s6679_s4  ;;  %v1923_v58 = vsel %vm5768_vm13, %v1915_v57, 0  ;;  %v1852_v20 = vld [vmem:[#allocation2 + $0x38] sm:$0xf]  ;;  %v1859_v13 = vsel %vm5793_vm3, %v1915_v57, 0  ;;  %v1739_v59 = vsel %vm5787_vm11, %v1915_v57, 0  ;;  %v2142_v29 = vrot.slane %v5219_v18, 4 }
 0x243   : > { %1809 = vrot.lane.b32.xlu2 %v5956_v17, %s6711_s9  ;;  %v1916_v22 = vld [vmem:[#allocation2 + $0x38] sm:$0xf]  ;;  %v1860_v0 = vsel %vm5705_vm2, %v1852_v20, 0 }
 0x244   : > { %v1924_v10 = vsel %vm5672_vm10, %v1916_v22, 0 }
 0x24a   : > { %1811 = vrot.lane.b32.xlu0 %v1792_v34, %s6711_s9  ;;  %2009 = vrot.lane.b32.xlu1 %v1991_v35, %s6685_s2 }
 0x24b   : > { %1939 = vrot.lane.b32.xlu2 %v1920_v36, %s6712_s13  ;;  %v2022_v36 = vrot.slane %v5239_v26, 4 }
 0x252   : > { %1873 = vrot.lane.b32.xlu0 %v1855_v37, %s6679_s4  ;;  %2133 = vrot.lane.b32.xlu1 %v5940_v15, %s6700_s17 }
 0x253   : > { %2073 = vrot.lane.b32.xlu2 %v2055_v38, %s6682_s10  ;;  %v1732_v38 = vld [vmem:[#allocation2 + $0x38] sm:$0xf] }
 0x254   : > { %v1740_v45 = vsel %vm5680_vm14, %v1732_v38, 0 }
 0x25a   : > { %1815 = vrot.lane.b32.xlu0 %v1794_v25, %s6711_s9  ;;  %1941 = vrot.lane.b32.xlu1 %v1921_v40, %s6712_s13 }
 0x25b   : > { %1813 = vrot.lane.b32.xlu2 %v1793_v24, %s6711_s9 }
 0x262   : > { %1877 = vrot.lane.b32.xlu0 %v1857_v48, %s6679_s4  ;;  %1879 = vrot.lane.b32.xlu1 %v1858_v49, %s6679_s4  ;;  %v2179_v48 = vsel %vm5828_vm5, %v5958_v21, 0  ;;  %v2170_v49 = vld [vmem:[#allocation2 + $0x2c] sm:$0xf] }
 0x263   : > { %1943 = vrot.lane.b32.xlu2 %v1922_v51, %s6712_s13  ;;  %v2172_v51 = vld [vmem:[#allocation2 + $0x3c] sm:$0xf] }
 0x264   : > { %v2180_v20 = vsel %vm5797_vm9, %v2172_v51, 0 }
 0x26a   : > { %2137 = vrot.lane.b32.xlu0 %v5958_v21, %s6700_s17  ;;  %2013 = vrot.lane.b32.xlu1 %v1993_v53, %s6685_s2 }
 0x26b   : > { %2077 = vrot.lane.b32.xlu2 %v2057_v55, %s6682_s10 }
 0x272   : > { %1945 = vrot.lane.b32.xlu0 %v1923_v58, %s6712_s13  ;;  %1817 = vrot.lane.b32.xlu1 %v1915_v57, %s6711_s9 }
 0x273   : > { %1819 = vrot.lane.b32.xlu2 %v1796_v62, %s6711_s9  ;;  %v2178_v62 = vsel %vm5797_vm9, %v2170_v49, 0 }
 0x274   : > { %v5241_v63 = vpack.i.bf16 %v2180_v20, %v2178_v62  ;;  %v5220_v62 = vunpack.i.h.bf16 %v6029_v30 }
 0x27a   : > { %1883 = vrot.lane.b32.xlu0 %v1860_v0, %s6679_s4  ;;  %1947 = vrot.lane.b32.xlu1 %v1924_v10, %s6712_s13  ;;  %v2173_v0 = vsel %vm5828_vm5, %v5921_v28, 0  ;;  %v2166_v10 = vld [vmem:[#allocation2 + $0xc] sm:$0xf] }
 0x27b   : > { %1759 = vrot.lane.b32.xlu2 %v1738_v1, %s6696_s18  ;;  %v2168_v1 = vld [vmem:[#allocation2 + $0x1c] sm:$0xf]  ;;  %v2174_v28 = vsel %vm5797_vm9, %v2166_v10, 0 }
 0x27c   : > { %v2176_v8 = vsel %vm5797_vm9, %v2168_v1, 0 }
 0x282   : > { %2017 = vrot.lane.b32.xlu0 %v1995_v4, %s6685_s2  ;;  %2081 = vrot.lane.b32.xlu1 %v2059_v5, %s6682_s10  ;;  %v2175_v4 = vsel %vm5828_vm5, %v5926_v50, 0 }
 0x283   : > { %1881 = vrot.lane.b32.xlu2 %v1859_v13, %s6679_s4 }
 0x285   : > { %v6056_v7 = vpop.permute.xlu2 %1933 }
 0x28a   : > { %1751 = vrot.lane.b32.xlu0 %v1734_v9, %s6696_s18  ;;  %1757 = vrot.lane.b32.xlu1 %v1737_v11, %s6696_s18  ;;  %v1949_v9 = vrot.slane %v6056_v7, 4 }
 0x28b   : > { %1749 = vrot.lane.b32.xlu2 %v1733_v12, %s6696_s18 }
 0x28d   : > { %v6070_v16 = vpop.permute.xlu2 %1871 }
 0x28e   : > { %v1886_v11 = vrot.slane %v6070_v16, 4  ;;  %v5230_v16 = vunpack.i.h.bf16 %v6068_v56 }
 0x292   : > { %1761 = vrot.lane.b32.xlu0 %v1739_v59, %s6696_s18  ;;  %1753 = vrot.lane.b32.xlu1 %v1735_v54, %s6696_s18  ;;  %v2552_v59 = vld [vmem:[%s5410_s25] sm:$0xff] }
 0x293   : > { %1755 = vrot.lane.b32.xlu2 %v1736_v27, %s6696_s18  ;;  %v2568_v27 = vld [vmem:[%s5415_s29] sm:$0xff] }
 0x294   : > { %v2126_v32 = vpop.permute.xlu1 %2125 }
 0x295   : > { %v2006_v34 = vpop.permute.xlu2 %2005  ;;  %v2141_v35 = vrot.slane %v2126_v32, 4 }
 0x296   : > { %v2021_v37 = vrot.slane %v2006_v34, 4 }
 0x297   : > { %v2149_v17 = vsel %vm1084_vm0, %v2141_v35, %v2142_v29 }
 0x298   : > { %v2029_v24 = vsel %vm1084_vm0, %v2021_v37, %v2022_v36  ;;  %v2150_v25 = vsel %vm6715_vm6, %v2126_v32, %v2149_v17  ;;  %vm6717_vm6 = vcmask 7168   ;;  %v5246_v32 = vpack.i.bf16 %v2176_v8, %v2174_v28  ;;  %v2793_v36 = vld [vmem:[#allocation2 + $0xc] sm:$0xf]  ;;  %v2795_v37 = vld [vmem:[#allocation2 + $0x1c] sm:$0xf] }
 0x299   : > { %v2030_v40 = vsel %vm6716_vm12, %v2006_v34, %v2029_v24  ;;  %2161 = vst [vmem:[#allocation3 + $0xe0] sm:$0xff] %v2150_v25  ;;  %vm6718_vm12 = vcmask 121856   ;;  %v5229_v34 = vunpack.i.l.bf16 %v6068_v56  ;;  %v5251_v49 = vpack.i.bf16 %v2795_v37, %v2793_v36 }
 0x29a   : > { %2041 = vst [vmem:[#allocation3 + $0xa0] sm:$0xff] %v2030_v40  ;;  %2197 = vrot.lane.b32.xlu0 %v2177_v42, %s6697_s5  ;;  %1763 = vrot.lane.b32.xlu1 %v1740_v45, %s6696_s18  ;;  %v2088_v42 = vrot.slane %v5230_v16, 4 }
 0x29b   : > { %2201 = vrot.lane.b32.xlu2 %v2179_v48, %s6697_s5  ;;  %v2086_v38 = vrot.slane %v5229_v34, 4  ;;  %v2569_v48 = vld [vmem:[%s5415_s29 + $0x8] sm:$0xff] }
 0x29c   : > { %v1806_v53 = vpop.permute.xlu0 %1805  ;;  %v1808_v55 = vpop.permute.xlu1 %1807 }
 0x29d   : > { %v1821_v15 = vrot.slane %v1806_v53, 4  ;;  %v6101_v57 = vpop.permute.xlu2 %1809  ;;  %v1822_v58 = vrot.slane %v1808_v55, 4 }
 0x29f   : > { %v1829_v21 = vsel %vm1084_vm0, %v1821_v15, %v1822_v58 }
 0x2a0   : > { %v1830_v22 = vsel %vm6628_vm7, %v1806_v53, %v1829_v21  ;;  %v2553_v53 = vld [vmem:[%s5410_s25 + $0x8] sm:$0xff] }
 0x2a1   : > { %1841 = vst [vmem:[#allocation3 + $0x20] sm:$0xff] %v1830_v22  ;;  %v2821_v21 = vld [vmem:[#allocation2 + $0xc] sm:$0xf]  ;;  %v2823_v22 = vld [vmem:[#allocation2 + $0x1c] sm:$0xf] }
 0x2a2   : > { %2189 = vrot.lane.b32.xlu0 %v2173_v0, %s6697_s5  ;;  %5242 = vrot.lane.b32.xlu1 %v5241_v63, %s6697_s5  ;;  %v2761_v63 = vld [vmem:[#allocation2 + $0xc] sm:$0xf]  ;;  %v2763_v0 = vld [vmem:[#allocation2 + $0x1c] sm:$0xf]  ;;  %v2825_v30 = vsel %vm5797_vm9, %v2821_v21, 0  ;;  %v2827_v28 = vsel %vm5797_vm9, %v2823_v22, 0 }
 0x2a3   : > { %2193 = vrot.lane.b32.xlu2 %v2175_v4, %s6697_s5  ;;  %v2144_v4 = vrot.slane %v5220_v62, 4  ;;  %v2765_v8 = vsel %vm5688_vm15, %v2761_v63, 0 }
 0x2a4   : > { %v1936_v5 = vpop.permute.xlu0 %1935  ;;  %v1870_v13 = vpop.permute.xlu1 %1869 }
 0x2a5   : > { %v1950_v12 = vrot.slane %v1936_v5, 4  ;;  %v1940_v18 = vpop.permute.xlu2 %1939  ;;  %v1885_v50 = vrot.slane %v1870_v13, 4 }
 0x2a6   : > { %v1952_v17 = vrot.slane %v1940_v18, 4  ;;  %v5266_v18 = vpack.i.bf16 %v2827_v28, %v2825_v30 }
 0x2a7   : > { %v1957_v23 = vsel %vm1084_vm0, %v1949_v9, %v1950_v12  ;;  %v1893_v54 = vsel %vm1084_vm0, %v1885_v50, %v1886_v11  ;;  %v2767_v9 = vsel %vm5688_vm15, %v2763_v0, 0  ;;  %v5240_v50 = vunpack.i.h.bf16 %v6073_v19 }
 0x2a8   : > { %v1958_v26 = vsel %vm6717_vm6, %v6056_v7, %v1957_v23  ;;  %v1894_v29 = vsel %vm6718_vm12, %v1870_v13, %v1893_v54  ;;  %vm6719_vm6 = vcmask 924672   ;;  %vm6720_vm12 = vcmask 7168   ;;  %v2731_v54 = vld [vmem:[#allocation2 + $0x1c] sm:$0xf] }
 0x2a9   : > { %1969 = vst [vmem:[#allocation3 + $0x60] sm:$0xff] %v1958_v26  ;;  %vm6721_vm7 = vmmov %vm6719_vm6  ;;  %v5256_v23 = vpack.i.bf16 %v2767_v9, %v2765_v8  ;;  %v2735_v19 = vsel %vm5717_vm8, %v2731_v54, 0 }
 0x2aa   : > { %2556 = vperm.xlu0 %5210, %v2552_v59   ;;  %1905 = vst [vmem:[#allocation3 + $0x40] sm:$0xff] %v1894_v29  ;;  %5247 = vrot.lane.b32.xlu1 %v5246_v32, %s6697_s5  ;;  %v2729_v59 = vld [vmem:[#allocation2 + $0xc] sm:$0xf]  ;;  %v2024_v29 = vrot.slane %v5240_v50, 4  ;;  %v1823_v32 = vrot.slane %v6101_v57, 4 }
 0x2ab   : > { %2572 = vperm.xlu2 %5209, %v2568_v27   ;;  %v2733_v36 = vsel %vm5717_vm8, %v2729_v59, 0  ;;  %vm6729_vm8 = vcmask 7168  }
 0x2ac   : > { %v2070_v35 = vpop.permute.xlu0 %2069  ;;  %v1938_v7 = vpop.permute.xlu1 %1937 }
 0x2ad   : > { %v2085_v24 = vrot.slane %v2070_v35, 4  ;;  %v2074_v25 = vpop.permute.xlu2 %2073  ;;  %v1951_v40 = vrot.slane %v1938_v7, 4 }
 0x2ae   : > { %v2087_v45 = vrot.slane %v2074_v25, 4 }
 0x2af   : > { %v2093_v56 = vsel %vm1084_vm0, %v2085_v24, %v2086_v38  ;;  %v1959_v51 = vsel %vm1084_vm0, %v1951_v40, %v1952_v17  ;;  %v5214_v24 = vunpack.i.l.bf16 %v6013_v52  ;;  %v5224_v40 = vunpack.i.l.bf16 %v6054_v31 }
 0x2b0   : > { %v2094_v55 = vsel %vm6719_vm6, %v2070_v35, %v2093_v56  ;;  %v2095_v15 = vsel %vm1084_vm0, %v2087_v45, %v2088_v42  ;;  %v1960_v58 = vsel %vm6720_vm12, %v1938_v7, %v1959_v51  ;;  %vm6723_vm6 = vcmask 130048  }
 0x2b1   : > { %2105 = vst [vmem:[#allocation3 + $0xc0] sm:$0xff] %v2094_v55  ;;  %v2096_v20 = vsel %vm6721_vm7, %v2074_v25, %v2095_v15  ;;  %vm6722_vm7 = vcmask 916480   ;;  %vm6724_vm12 = vcmask 1039360   ;;  %v5261_v25 = vpack.i.bf16 %v2735_v19, %v2733_v36 }
 0x2b2   : > { %2106 = vst [vmem:[#allocation3 + $0xc8] sm:$0xff] %v2096_v20  ;;  %2577 = vperm.xlu0 %5210, %v2569_v48   ;;  %2561 = vperm.xlu1 %5208, %v2553_v53   ;;  %v2146_v56 = vrot.slane %v5214_v24, 4  ;;  %v2090_v55 = vrot.slane %v5224_v40, 4 }
 0x2b3   : > { %5252 = vrot.lane.b32.xlu2 %v5251_v49, %s6700_s17  ;;  %1970 = vst [vmem:[#allocation3 + $0x68] sm:$0xff] %v1960_v58 }
 0x2b4   : > { %v2130_v10 = vpop.permute.xlu0 %2129  ;;  %v1876_v1 = vpop.permute.xlu1 %1875 }
 0x2b5   : > { %v2143_v5 = vrot.slane %v2130_v10, 4  ;;  %v1814_v13 = vpop.permute.xlu2 %1813  ;;  %v1888_v48 = vrot.slane %v1876_v1, 4 }
 0x2b7   : > { %v2151_v11 = vsel %vm1084_vm0, %v2143_v5, %v2144_v4 }
 0x2b8   : > { %v2152_v12 = vsel %vm6722_vm7, %v2130_v10, %v2151_v11  ;;  %vm6725_vm7 = vcmask 121856   ;;  %v1825_v10 = vrot.slane %v1814_v13, 4 }
 0x2b9   : > { %2162 = vst [vmem:[#allocation3 + $0xe8] sm:$0xff] %v2152_v12 }
 0x2ba   : > { %5267 = vrot.lane.b32.xlu1 %v5266_v18, %s6697_s5 }
 0x2bb   : > { %5257 = vrot.lane.b32.xlu2 %v5256_v23, %s6682_s10 }
 0x2bc   : > { %v1812_v26 = vpop.permute.xlu0 %1811  ;;  %v2010_v27 = vpop.permute.xlu1 %2009 }
 0x2bd   : > { %v1824_v34 = vrot.slane %v1812_v26, 4  ;;  %v1944_v16 = vpop.permute.xlu2 %1943  ;;  %v2023_v35 = vrot.slane %v2010_v27, 4  ;;  %v5215_v26 = vunpack.i.h.bf16 %v6013_v52 }
 0x2be   : > { %v1954_v1 = vrot.slane %v1944_v16, 4 }
 0x2bf   : > { %v1831_v37 = vsel %vm1084_vm0, %v1823_v32, %v1824_v34  ;;  %v2031_v7 = vsel %vm1084_vm0, %v2023_v35, %v2024_v29  ;;  %v2148_v32 = vrot.slane %v5215_v26, 4 }
 0x2c0   : > { %v1832_v38 = vsel %vm6723_vm6, %v6101_v57, %v1831_v37  ;;  %v2032_v17 = vsel %vm6724_vm12, %v2010_v27, %v2031_v7  ;;  %vm6726_vm6 = vcmask 916480   ;;  %vm6727_vm12 = vcmask 924672  }
 0x2c1   : > { %1842 = vst [vmem:[#allocation3 + $0x28] sm:$0xff] %v1832_v38  ;;  %v5234_v27 = vunpack.i.l.bf16 %v6041_v3 }
 0x2c2   : > { %2042 = vst [vmem:[#allocation3 + $0xa8] sm:$0xff] %v2032_v17 }
 0x2c3   : > { %5262 = vrot.lane.b32.xlu2 %v5261_v25, %s6685_s2  ;;  %v2026_v34 = vrot.slane %v5234_v27, 4 }
 0x2c4   : > { %v1874_v42 = vpop.permute.xlu0 %1873  ;;  %v2134_v45 = vpop.permute.xlu1 %2133 }
 0x2c5   : > { %v1887_v49 = vrot.slane %v1874_v42, 4  ;;  %v2078_v51 = vpop.permute.xlu2 %2077  ;;  %v2145_v53 = vrot.slane %v2134_v45, 4 }
 0x2c6   : > { %v2089_v57 = vrot.slane %v2078_v51, 4 }
 0x2c7   : > { %v1895_v15 = vsel %vm1084_vm0, %v1887_v49, %v1888_v48  ;;  %v2153_v58 = vsel %vm1084_vm0, %v2145_v53, %v2146_v56 }
 0x2c8   : > { %v1896_v62 = vsel %vm6725_vm7, %v1874_v42, %v1895_v15  ;;  %v2097_v20 = vsel %vm1084_vm0, %v2089_v57, %v2090_v55  ;;  %v2154_v21 = vsel %vm6726_vm6, %v2134_v45, %v2153_v58  ;;  %vm6728_vm7 = vcmask 130048   ;;  %v5027_v55 = vld [vmem:[#allocation3 + $0xe4] sm:$0xf0]  ;;  %v4591_v57 = vld [vmem:[#allocation3 + $0xe8] sm:$0xf0] }
 0x2c9   : > { %1906 = vst [vmem:[#allocation3 + $0x48] sm:$0xff] %v1896_v62  ;;  %v2098_v22 = vsel %vm6727_vm12, %v2078_v51, %v2097_v20  ;;  %vm6730_vm6 = vcmask 121856   ;;  %vm6732_vm12 = vcmask 1039360   ;;  %v4589_v58 = vld [vmem:[#allocation3 + $0xe0] sm:$0xf] }
 0x2ca   : > { %2107 = vst [vmem:[#allocation3 + $0xd0] sm:$0xff] %v2098_v22  ;;  %v5026_v62 = vld [vmem:[#allocation3 + $0xe4] sm:$0xf] }
 0x2cb   : > { %2163 = vst [vmem:[#allocation3 + $0xf0] sm:$0xff] %v2154_v21  ;;  %v4590_v21 = vor.u32 %v5027_v55, %v4589_v58  ;;  %v4594_v22 = vor.u32 %v5026_v62, %v4591_v57 }
 0x2cc   : > { %v1816_v63 = vpop.permute.xlu0 %1815  ;;  %v1942_v0 = vpop.permute.xlu1 %1941 }
 0x2cd   : > { %v1826_v4 = vrot.slane %v1816_v63, 4  ;;  %v1953_v5 = vrot.slane %v1942_v0, 4  ;;  %v1820_v23 = vpop.permute.xlu2 %1819 }
 0x2ce   : > { %v1828_v24 = vrot.slane %v1820_v23, 4 }
 0x2cf   : > { %v1833_v30 = vsel %vm1084_vm0, %v1825_v10, %v1826_v4  ;;  %v1961_v28 = vsel %vm1084_vm0, %v1953_v5, %v1954_v1 }
 0x2d0   : > { %v1834_v8 = vsel %vm6728_vm7, %v1814_v13, %v1833_v30  ;;  %v1962_v9 = vsel %vm6729_vm8, %v1942_v0, %v1961_v28  ;;  %vm6731_vm8 = vcmask 916480  }
 0x2d1   : > { %1843 = vst [vmem:[#allocation3 + $0x30] sm:$0xff] %v1834_v8  ;;  %v4581_v55 = vld [vmem:[#allocation3 + $0xd0] sm:$0xf]  ;;  %v5024_v62 = vld [vmem:[#allocation3 + $0xd4] sm:$0xf] }
 0x2d2   : > { %1971 = vst [vmem:[#allocation3 + $0x70] sm:$0xff] %v1962_v9  ;;  %v4597_v40 = vld [vmem:[#allocation3 + $0xf0] sm:$0xf]  ;;  %v5028_v56 = vld [vmem:[#allocation3 + $0xf4] sm:$0xf]  ;;  %v5235_v9 = vunpack.i.h.bf16 %v6041_v3 }
 0x2d4   : > { %v1878_v11 = vpop.permute.xlu0 %1877  ;;  %v1880_v12 = vpop.permute.xlu1 %1879 }
 0x2d5   : > { %v1889_v18 = vrot.slane %v1878_v11, 4  ;;  %v1890_v50 = vrot.slane %v1880_v12, 4  ;;  %v6186_v37 = vpop.permute.xlu2 %1759 }
 0x2d7   : > { %v1897_v59 = vsel %vm1084_vm0, %v1889_v18, %v1890_v50  ;;  %v2028_v50 = vrot.slane %v5235_v9, 4  ;;  %v4511_v9 = vld [vmem:[#allocation3 + $0x48] sm:$0xf0] }
 0x2d8   : > { %v1898_v54 = vsel %vm6730_vm6, %v1878_v11, %v1897_v59  ;;  %v5225_v11 = vunpack.i.h.bf16 %v6054_v31 }
 0x2d9   : > { %1907 = vst [vmem:[#allocation3 + $0x50] sm:$0xff] %v1898_v54  ;;  %v4533_v3 = vld [vmem:[#allocation3 + $0x70] sm:$0xf] }
 0x2da   : > { %v2092_v23 = vrot.slane %v5225_v11, 4  ;;  %v5022_v11 = vld [vmem:[#allocation3 + $0xc4] sm:$0xf] }
 0x2dc   : > { %v2138_v29 = vpop.permute.xlu0 %2137  ;;  %v2014_v13 = vpop.permute.xlu1 %2013 }
 0x2dd   : > { %v2147_v16 = vrot.slane %v2138_v29, 4  ;;  %v2025_v35 = vrot.slane %v2014_v13, 4  ;;  %v1882_v15 = vpop.permute.xlu2 %1881 }
 0x2de   : > { %v1891_v0 = vrot.slane %v1882_v15, 4 }
 0x2df   : > { %v2155_v36 = vsel %vm1084_vm0, %v2147_v16, %v2148_v32  ;;  %v2033_v19 = vsel %vm1084_vm0, %v2025_v35, %v2026_v34  ;;  %v5012_v34 = vld [vmem:[#allocation3 + $0x74] sm:$0xf] }
 0x2e0   : > { %v2156_v7 = vsel %vm6731_vm8, %v2138_v29, %v2155_v36  ;;  %v2034_v38 = vsel %vm6732_vm12, %v2014_v13, %v2033_v19  ;;  %vm6733_vm8 = vcmask 7168   ;;  %v5011_v19 = vld [vmem:[#allocation3 + $0x64] sm:$0xf0]  ;;  %v4517_v58 = vld [vmem:[#allocation3 + $0x50] sm:$0xf] }
 0x2e1   : > { %2164 = vst [vmem:[#allocation3 + $0xf8] sm:$0xff] %v2156_v7  ;;  %v4527_v7 = vld [vmem:[#allocation3 + $0x68] sm:$0xf0] }
 0x2e2   : > { %2043 = vst [vmem:[#allocation3 + $0xb0] sm:$0xff] %v2034_v38 }
 0x2e4   : > { %v1946_v52 = vpop.permute.xlu0 %1945  ;;  %v1818_v17 = vpop.permute.xlu1 %1817 }
 0x2e5   : > { %v1827_v25 = vrot.slane %v1818_v17, 4  ;;  %v1955_v10 = vrot.slane %v1946_v52, 4  ;;  %v1750_v29 = vpop.permute.xlu2 %1749 }
 0x2e7   : > { %v1835_v42 = vsel %vm1084_vm0, %v1827_v25, %v1828_v24  ;;  %v1770_v24 = vrot.slane %v6186_v37, 4  ;;  %v1765_v25 = vrot.slane %v1750_v29, 4 }
 0x2e8   : > { %v5029_v45 = vld [vmem:[#allocation3 + $0xf4] sm:$0xf0]  ;;  %v4599_v48 = vld [vmem:[#allocation3 + $0xf8] sm:$0xf0]  ;;  %v1836_v49 = vsel %vm6728_vm7, %v1818_v17, %v1835_v42  ;;  %vm6734_vm7 = vcmask 924672  }
 0x2e9   : > { %v4598_v51 = vor.u32 %v5029_v45, %v4597_v40  ;;  %v4602_v53 = vor.u32 %v5028_v56, %v4599_v48  ;;  %1844 = vst [vmem:[#allocation3 + $0x38] sm:$0xff] %v1836_v49  ;;  %v4525_v17 = vld [vmem:[#allocation3 + $0x60] sm:$0xf]  ;;  %v5010_v45 = vld [vmem:[#allocation3 + $0x64] sm:$0xf] }
 0x2ea   : > { %v4526_v56 = vor.u32 %v5011_v19, %v4525_v17  ;;  %v4530_v48 = vor.u32 %v5010_v45, %v4527_v7  ;;  %v4565_v19 = vld [vmem:[#allocation3 + $0xb0] sm:$0xf]  ;;  %v5020_v17 = vld [vmem:[#allocation3 + $0xb4] sm:$0xf] }
 0x2eb   : > { %2482 = vmatpush.bf16.msrb.mxu3 %v4598_v51  ;;  %2524 = vmatpush.bf16.msrb.mxu2 %v4602_v53 }
 0x2ec   : > { %v1884_v20 = vpop.permute.xlu0 %1883  ;;  %v1948_v63 = vpop.permute.xlu1 %1947 }
 0x2ed   : > { %v1892_v1 = vrot.slane %v1884_v20, 4  ;;  %v1956_v4 = vrot.slane %v1948_v63, 4 }
 0x2ef   : > { %v1899_v5 = vsel %vm1084_vm0, %v1891_v0, %v1892_v1  ;;  %2483 = vmatpush.bf16.msrb.mxu3 %v4590_v21  ;;  %2525 = vmatpush.bf16.msrb.mxu2 %v4594_v22  ;;  %v1963_v30 = vsel %vm1084_vm0, %v1955_v10, %v1956_v4  ;;  %v1756_v22 = vpop.permute.xlu2 %1755  ;;  %v5008_v10 = vld [vmem:[#allocation3 + $0x54] sm:$0xf] }
 0x2f0   : > { %v1900_v28 = vsel %vm6730_vm6, %v1882_v15, %v1899_v5  ;;  %v1964_v8 = vsel %vm6733_vm8, %v1946_v52, %v1963_v30  ;;  %vm6735_vm6 = vcmask 138240   ;;  %v5007_v5 = vld [vmem:[#allocation3 + $0x44] sm:$0xf0]  ;;  %v4573_v30 = vld [vmem:[#allocation3 + $0xc0] sm:$0xf] }
 0x2f1   : > { %1908 = vst [vmem:[#allocation3 + $0x58] sm:$0xff] %v1900_v28  ;;  %vm6736_vm8 = vmmov %vm6735_vm6  ;;  %v5023_v28 = vld [vmem:[#allocation3 + $0xc4] sm:$0xf0] }
 0x2f2   : > { %1972 = vst [vmem:[#allocation3 + $0x78] sm:$0xff] %v1964_v8 }
 0x2f4   : > { %v2018_v12 = vpop.permute.xlu0 %2017  ;;  %v2082_v18 = vpop.permute.xlu1 %2081 }
 0x2f5   : > { %v2027_v59 = vrot.slane %v2018_v12, 4  ;;  %v2091_v54 = vrot.slane %v2082_v18, 4 }
 0x2f7   : > { %v2035_v26 = vsel %vm1084_vm0, %v2027_v59, %v2028_v50  ;;  %v2099_v27 = vsel %vm1084_vm0, %v2091_v54, %v2092_v23  ;;  %v4509_v23 = vld [vmem:[#allocation3 + $0x40] sm:$0xf]  ;;  %v4574_v54 = vor.u32 %v5023_v28, %v4573_v30  ;;  %v5016_v30 = vld [vmem:[#allocation3 + $0x94] sm:$0xf] }
 0x2f8   : > { %v2036_v13 = vsel %vm6732_vm12, %v2018_v12, %v2035_v26  ;;  %v2100_v32 = vsel %vm6734_vm7, %v2082_v18, %v2099_v27  ;;  %v5009_v53 = vld [vmem:[#allocation3 + $0x54] sm:$0xf0]  ;;  %v4519_v37 = vld [vmem:[#allocation3 + $0x58] sm:$0xf0]  ;;  %v4575_v12 = vld [vmem:[#allocation3 + $0xc8] sm:$0xf0]  ;;  %v4510_v59 = vor.u32 %v5007_v5, %v4509_v23 }
 0x2f9   : > { %2044 = vst [vmem:[#allocation3 + $0xb8] sm:$0xff] %v2036_v13  ;;  %v5013_v31 = vld [vmem:[#allocation3 + $0x74] sm:$0xf0]  ;;  %v4535_v16 = vld [vmem:[#allocation3 + $0x78] sm:$0xf0]  ;;  %v4518_v63 = vor.u32 %v5009_v53, %v4517_v58  ;;  %v4522_v4 = vor.u32 %v5008_v10, %v4519_v37  ;;  %v1768_v18 = vrot.slane %v1756_v22, 4  ;;  %v4578_v13 = vor.u32 %v5022_v11, %v4575_v12  ;;  %vm6737_vm12 = vmmov %vm6735_vm6  ;;  %v2202_v10 = vpop.permute.xlu2 %2201 }
 0x2fa   : > { %2108 = vst [vmem:[#allocation3 + $0xd8] sm:$0xff] %v2100_v32  ;;  %v4534_v35 = vor.u32 %v5013_v31, %v4533_v3  ;;  %v4538_v36 = vor.u32 %v5012_v34, %v4535_v16  ;;  %v5006_v26 = vld [vmem:[#allocation3 + $0x44] sm:$0xf]  ;;  %v5005_v32 = vld [vmem:[#allocation3 + $0x34] sm:$0xf0]  ;;  %vm6738_vm7 = vmmov %vm6735_vm6 }
 0x2fb   : > { %v4503_v16 = vld [vmem:[#allocation3 + $0x38] sm:$0xf0]  ;;  %v4493_v53 = vld [vmem:[#allocation3 + $0x20] sm:$0xf]  ;;  %v5002_v58 = vld [vmem:[#allocation3 + $0x24] sm:$0xf] }
 0x2fc   : > { %v1752_v38 = vpop.permute.xlu0 %1751  ;;  %2468 = vmatpush.bf16.msrb.mxu1 %v4534_v35  ;;  %2510 = vmatpush.bf16.msrb.mxu0 %v4538_v36  ;;  %v1758_v52 = vpop.permute.xlu1 %1757  ;;  %v4501_v36 = vld [vmem:[#allocation3 + $0x30] sm:$0xf]  ;;  %v5018_v37 = vld [vmem:[#allocation3 + $0xa4] sm:$0xf]  ;;  %v5017_v22 = vld [vmem:[#allocation3 + $0x94] sm:$0xf0] }
 0x2fd   : > { %v1766_v40 = vrot.slane %v1752_v38, 4  ;;  %v1769_v42 = vrot.slane %v1758_v52, 4  ;;  %v4502_v7 = vor.u32 %v5005_v32, %v4501_v36  ;;  %v4995_v12 = vld [vmem:[%s5405_s21 + $0x4] sm:$0xf] }
 0x2ff   : > { %v1773_v49 = vsel %vm1084_vm0, %v1765_v25, %v1766_v40  ;;  %v1777_v51 = vsel %vm1084_vm0, %v1769_v42, %v1770_v24  ;;  %v5003_v40 = vld [vmem:[#allocation3 + $0x24] sm:$0xf0] }
 0x300   : > { %v1774_v57 = vsel %vm6735_vm6, %v1750_v29, %v1773_v49  ;;  %v1778_v15 = vsel %vm6736_vm8, %v1758_v52, %v1777_v51  ;;  %2469 = vmatpush.bf16.msrb.mxu1 %v4526_v56  ;;  %2511 = vmatpush.bf16.msrb.mxu0 %v4530_v48  ;;  %v4514_v29 = vor.u32 %v5006_v26, %v4511_v9  ;;  %v5021_v3 = vld [vmem:[#allocation3 + $0xb4] sm:$0xf0]  ;;  %v4567_v35 = vld [vmem:[#allocation3 + $0xb8] sm:$0xf0]  ;;  %v5004_v52 = vld [vmem:[#allocation3 + $0x34] sm:$0xf] }
 0x301   : > { %1785 = vst [vmem:[#allocation3] sm:$0xff] %v1774_v57  ;;  %v5025_v20 = vld [vmem:[#allocation3 + $0xd4] sm:$0xf0]  ;;  %v4583_v21 = vld [vmem:[#allocation3 + $0xd8] sm:$0xf0]  ;;  %v4566_v38 = vor.u32 %v5021_v3, %v4565_v19  ;;  %v4506_v24 = vor.u32 %v5004_v52, %v4503_v16  ;;  %v4570_v25 = vor.u32 %v5020_v17, %v4567_v35  ;;  %v4494_v57 = vor.u32 %v5003_v40, %v4493_v53 }
 0x302   : > { %1787 = vst [vmem:[#allocation3 + $0x10] sm:$0xff] %v1778_v15  ;;  %v4582_v0 = vor.u32 %v5025_v20, %v4581_v55  ;;  %v4586_v1 = vor.u32 %v5024_v62, %v4583_v21  ;;  %v5019_v42 = vld [vmem:[#allocation3 + $0xa4] sm:$0xf0]  ;;  %v4495_v56 = vld [vmem:[#allocation3 + $0x28] sm:$0xf0]  ;;  %v2211_v26 = vrot.slane %v2202_v10, 4 }
 0x303   : > { %v4559_v48 = vld [vmem:[#allocation3 + $0xa8] sm:$0xf0]  ;;  %v4557_v55 = vld [vmem:[#allocation3 + $0xa0] sm:$0xf]  ;;  %v4498_v20 = vor.u32 %v5002_v58, %v4495_v56  ;;  %vm6739_vm6 = vcmask 908288  }
 0x304   : > { %2470 = vmatpush.bf16.msrb.mxu1 %v4518_v63  ;;  %2484 = vmatpush.bf16.msrb.mxu3 %v4582_v0  ;;  %v1754_v8 = vpop.permute.xlu1 %1753  ;;  %v1762_v34 = vpop.permute.xlu0 %1761  ;;  %v4558_v15 = vor.u32 %v5019_v42, %v4557_v55  ;;  %v4562_v21 = vor.u32 %v5018_v37, %v4559_v48  ;;  %v4551_v0 = vld [vmem:[#allocation3 + $0x98] sm:$0xf0]  ;;  %v4543_v9 = vld [vmem:[#allocation3 + $0x88] sm:$0xf0]  ;;  %vm6740_vm8 = vmmov %vm6739_vm6 }
 0x305   : > { %2512 = vmatpush.bf16.msrb.mxu0 %v4522_v4  ;;  %2526 = vmatpush.bf16.msrb.mxu2 %v4586_v1  ;;  %v1767_v50 = vrot.slane %v1754_v8, 4  ;;  %v1771_v49 = vrot.slane %v1762_v34, 4  ;;  %v4549_v1 = vld [vmem:[#allocation3 + $0x90] sm:$0xf]  ;;  %v4554_v28 = vor.u32 %v5016_v30, %v4551_v0  ;;  %v4465_v40 = vld [vmem:[%s5405_s21] sm:$0xf]  ;;  %v2194_v42 = vpop.permute.xlu2 %2193 }
 0x306   : > { %v4550_v5 = vor.u32 %v5017_v22, %v4549_v1  ;;  %v4996_v56 = vld [vmem:[%s5405_s21 + $0x8] sm:$0xf0] }
 0x307   : > { %v1775_v27 = vsel %vm1084_vm0, %v1767_v50, %v1768_v18  ;;  %v4467_v18 = vld [vmem:[%s5405_s21 + $0xc] sm:$0xf0]  ;;  %v4466_v37 = vor.u32 %v4996_v56, %v4465_v40 }
 0x308   : > { %v1776_v31 = vsel %vm6737_vm12, %v1754_v8, %v1775_v27  ;;  %2471 = vmatpush.bf16.msrb.mxu1 %v4510_v59  ;;  %2485 = vmatpush.bf16.msrb.mxu3 %v4574_v54  ;;  %v5015_v8 = vld [vmem:[#allocation3 + $0x84] sm:$0xf0]  ;;  %v4541_v59 = vld [vmem:[#allocation3 + $0x80] sm:$0xf]  ;;  %v5014_v54 = vld [vmem:[#allocation3 + $0x84] sm:$0xf] }
 0x309   : > { %1786 = vst [vmem:[#allocation3 + $0x8] sm:$0xff] %v1776_v31  ;;  %2513 = vmatpush.bf16.msrb.mxu0 %v4514_v29  ;;  %2527 = vmatpush.bf16.msrb.mxu2 %v4578_v13  ;;  %v4542_v27 = vor.u32 %v5015_v8, %v4541_v59  ;;  %v4546_v29 = vor.u32 %v5014_v54, %v4543_v9  ;;  %v4485_v31 = vld [vmem:[#allocation3 + $0x10] sm:$0xf]  ;;  %v5000_v35 = vld [vmem:[#allocation3 + $0x14] sm:$0xf]  ;;  %vm6741_vm12 = vmmov %vm6739_vm6 }
 0x30c   : > { %2472 = vmatpush.bf16.msrb.mxu1 %v4502_v7  ;;  %2486 = vmatpush.bf16.msrb.mxu3 %v4566_v38  ;;  %v1764_v45 = vpop.permute.xlu1 %1763  ;;  %v2198_v4 = vpop.permute.xlu0 %2197 }
 0x30d   : > { %2514 = vmatpush.bf16.msrb.mxu0 %v4506_v24  ;;  %2528 = vmatpush.bf16.msrb.mxu2 %v4570_v25  ;;  %v1772_v51 = vrot.slane %v1764_v45, 4  ;;  %v2209_v13 = vrot.slane %v2198_v4, 4 }
 0x30f   : > { %v1779_v62 = vsel %vm1084_vm0, %v1771_v49, %v1772_v51  ;;  %v4477_v51 = vld [vmem:[#allocation3] sm:$0xf] }
 0x310   : > { %v1780_v63 = vsel %vm6738_vm7, %v1762_v34, %v1779_v62  ;;  %2473 = vmatpush.bf16.msrb.mxu1 %v4494_v57  ;;  %2487 = vmatpush.bf16.msrb.mxu3 %v4558_v15  ;;  %v4470_v34 = vor.u32 %v4995_v12, %v4467_v18  ;;  %v4999_v25 = vld [vmem:[#allocation3 + $0x4] sm:$0xf0]  ;;  %v4479_v45 = vld [vmem:[#allocation3 + $0x8] sm:$0xf0]  ;;  %v4998_v15 = vld [vmem:[#allocation3 + $0x4] sm:$0xf] }
 0x311   : > { %1788 = vst [vmem:[#allocation3 + $0x18] sm:$0xff] %v1780_v63  ;;  %2515 = vmatpush.bf16.msrb.mxu0 %v4498_v20  ;;  %2529 = vmatpush.bf16.msrb.mxu2 %v4562_v21  ;;  %v4478_v57 = vor.u32 %v4999_v25, %v4477_v51  ;;  %v4482_v58 = vor.u32 %v4998_v15, %v4479_v45  ;;  %v2207_v62 = vrot.slane %v2194_v42, 4  ;;  %vm6742_vm7 = vmmov %vm6739_vm6 }
 0x314   : > { %2488 = vmatpush.bf16.msrb.mxu3 %v4550_v5  ;;  %v5243_v11 = vpop.permute.xlu1 %5242  ;;  %v2190_v48 = vpop.permute.xlu0 %2189 }
 0x315   : > { %2530 = vmatpush.bf16.msrb.mxu2 %v4554_v28  ;;  %v5245_v50 = vunpack.i.h.bf16 %v5243_v11  ;;  %v5244_v23 = vunpack.i.l.bf16 %v5243_v11  ;;  %v2205_v20 = vrot.slane %v2190_v48, 4  ;;  %v4473_v11 = vld [vmem:[%s5405_s21 + $0x8] sm:$0xf] }
 0x317   : > { %v2212_v32 = vrot.slane %v5245_v50, 4  ;;  %v2210_v3 = vrot.slane %v5244_v23, 4  ;;  %v4997_v50 = vld [vmem:[%s5405_s21 + $0x10] sm:$0xf0] }
 0x318   : > { %2489 = vmatpush.bf16.msrb.mxu3 %v4542_v27  ;;  %v5001_v16 = vld [vmem:[#allocation3 + $0x14] sm:$0xf0]  ;;  %v4487_v36 = vld [vmem:[#allocation3 + $0x18] sm:$0xf0]  ;;  %v4474_v27 = vor.u32 %v4997_v50, %v4473_v11 }
 0x319   : > { %v2219_v19 = vsel %vm1084_vm0, %v2211_v26, %v2212_v32  ;;  %v2217_v7 = vsel %vm1084_vm0, %v2209_v13, %v2210_v3  ;;  %2531 = vmatpush.bf16.msrb.mxu2 %v4546_v29  ;;  %v4486_v38 = vor.u32 %v5001_v16, %v4485_v31  ;;  %v4490_v52 = vor.u32 %v5000_v35, %v4487_v36 }
 0x31a   : > { %v2220_v17 = vsel %vm6739_vm6, %v2202_v10, %v2219_v19  ;;  %v2218_v24 = vsel %vm6740_vm8, %v2198_v4, %v2217_v7  ;;  %vm6631_vm6 = vcmask 261120  }
 0x31b   : > { %2228 = vst [vmem:[#allocation3 + $0x118] sm:$0xff] %v2220_v17  ;;  %2490 = vmatmul.bf16.vlgmr.msrb.gmra.mxu3 %v4470_v34  ;;  %2474 = vmatpush.bf16.msrb.mxu1 %v4486_v38 }
 0x31c   : > { %2227 = vst [vmem:[#allocation3 + $0x110] sm:$0xff] %v2218_v24  ;;  %2516 = vmatpush.bf16.msrb.mxu0 %v4490_v52  ;;  %v5248_v49 = vpop.permute.xlu1 %5247  ;;  %2532 = vmatmul.bf16.vlgmr.msrb.gmra.mxu2 %v4470_v34  ;;  %v2557_v19 = vpop.permute.xlu0 %2556 }
 0x31d   : > { %v5250_v53 = vunpack.i.h.bf16 %v5248_v49  ;;  %v5249_v55 = vunpack.i.l.bf16 %v5248_v49  ;;  %v2573_v52 = vpop.permute.xlu2 %2572 }
 0x31f   : > { %v2208_v21 = vrot.slane %v5250_v53, 4  ;;  %v2206_v22 = vrot.slane %v5249_v55, 4  ;;  %2475 = vmatpush.bf16.msrb.mxu1 %v4478_v57 }
 0x320   : > { %2517 = vmatpush.bf16.msrb.mxu0 %v4482_v58 }
 0x321   : > { %v2215_v63 = vsel %vm1084_vm0, %v2207_v62, %v2208_v21  ;;  %v2213_v0 = vsel %vm1084_vm0, %v2205_v20, %v2206_v22 }
 0x322   : > { %v2216_v10 = vsel %vm6741_vm12, %v2194_v42, %v2215_v63  ;;  %v2214_v1 = vsel %vm6742_vm7, %v2190_v48, %v2213_v0  ;;  %2476 = vmatmul.bf16.vlgmr.msrb.gmra.mxu1 %v4466_v37  ;;  %v5033_v4 = vld [vmem:[#allocation3 + $0x114] sm:$0xf0]  ;;  %v4615_v5 = vld [vmem:[#allocation3 + $0x118] sm:$0xf0] }
 0x323   : > { %2226 = vst [vmem:[#allocation3 + $0x108] sm:$0xff] %v2216_v10  ;;  %v4613_v30 = vld [vmem:[#allocation3 + $0x110] sm:$0xf]  ;;  %v5032_v28 = vld [vmem:[#allocation3 + $0x114] sm:$0xf]  ;;  %2518 = vmatmul.bf16.vlgmr.msrb.gmra.mxu0 %v4466_v37 }
 0x324   : > { %2225 = vst [vmem:[#allocation3 + $0x100] sm:$0xff] %v2214_v1  ;;  %v4614_v8 = vor.u32 %v5033_v4, %v4613_v30  ;;  %v4618_v9 = vor.u32 %v5032_v28, %v4615_v5  ;;  %v2562_v51 = vpop.permute.xlu1 %2561  ;;  %v2578_v37 = vpop.permute.xlu0 %2577 }
 0x326   : > { %2502 = vmatpush.bf16.msra.mxu1 %v4614_v8  ;;  %2544 = vmatpush.bf16.msra.mxu3 %v4618_v9 }
 0x32a   : > { %v5031_v12 = vld [vmem:[#allocation3 + $0x104] sm:$0xf0]  ;;  %v4607_v18 = vld [vmem:[#allocation3 + $0x108] sm:$0xf0] }
 0x32b   : > { %v4605_v23 = vld [vmem:[#allocation3 + $0x100] sm:$0xf]  ;;  %v5030_v59 = vld [vmem:[#allocation3 + $0x104] sm:$0xf] }
 0x32c   : > { %v4606_v54 = vor.u32 %v5031_v12, %v4605_v23  ;;  %v4610_v26 = vor.u32 %v5030_v59, %v4607_v18 }
 0x32e   : > { %2503 = vmatpush.bf16.msra.mxu1 %v4606_v54  ;;  %2545 = vmatpush.bf16.msra.mxu3 %v4610_v26 }
 0x331   : > { %4620 = vmatmul.msk.bf16.vlgmr.msra.gmra.mxu3 %vm6631_vm6, %v4474_v27 }
 0x332   : > { %4619 = vmatmul.msk.bf16.vlgmr.msra.gmra.mxu1 %vm6631_vm6, %v4474_v27 }
 0x39e   : > { %v2491_v13 = vpop.f32.mrf.mxu3 }
 0x39f   : > { %v2477_v29 = vpop.f32.mrf.mxu1  ;;  %v2533_v16 = vpop.f32.mrf.mxu2 }
 0x3a0   : > { %v2492_v34 = vadd.f32 %v2491_v13, %v2477_v29  ;;  %v2519_v31 = vpop.f32.mrf.mxu0 }
 0x3a1   : > { %v2534_v7 = vadd.f32 %v2533_v16, %v2519_v31 }
 0x3a6   : > { %v2493_v3 = vpop.f32.mrf.mxu3 }
 0x3a7   : > { %v2479_v32 = vpop.f32.mrf.mxu1  ;;  %v2535_v48 = vpop.f32.mrf.mxu2 }
 0x3a8   : > { %v2494_v40 = vadd.f32 %v2493_v3, %v2479_v32  ;;  %v2521_v56 = vpop.f32.mrf.mxu0 }
 0x3a9   : > { %v2536_v15 = vadd.f32 %v2535_v48, %v2521_v56  ;;  %v3127_v48 = vld [vmem:[#allocation2 + $0xc] sm:$0xf] }
 0x3af   : > { %v2505_v35 = vpop.f32.mrf.mxu1 }
 0x3b0   : > { %v2506_v36 = vadd.f32 %v2505_v35, %v2492_v34 }
 0x3b2   : > { %v2564_v38 = vmul.f32 %v2557_v19, %v2506_v36 }
 0x3b4   : > { %v2547_v17 = vpop.f32.mrf.mxu3  ;;  %v2580_v24 = vadd.f32 %v2573_v52, %v2564_v38 }
 0x3b5   : > { %v2548_v25 = vadd.f32 %v2547_v17, %v2534_v7 }
 0x3b6   : > { %v2588_v53 = vmul.f32 0.1, %v2580_v24  ;;  %vm2584_vm8 = vcmp.gt.f32.partialorder %v2580_v24, 0.0 }
 0x3b7   : > { %v2565_v42 = vmul.f32 %v2557_v19, %v2548_v25  ;;  %v2507_v45 = vpop.f32.mrf.mxu1 }
 0x3b8   : > { %v2508_v49 = vadd.f32 %v2507_v45, %v2494_v40  ;;  %v2592_v20 = vsel %vm2584_vm8, %v2580_v24, %v2588_v53  ;;  %v3157_v40 = vld [vmem:[#allocation2 + $0xc] sm:$0xf]  ;;  %vm6746_vm8 = vcmask 916480  }
 0x3b9   : > { %v2581_v55 = vadd.f32 %v2573_v52, %v2565_v42  ;;  %v3022_v52 = vld [vmem:[%s6743_s8] sm:$0xff]  ;;  %v3159_v56 = vsel %vm5797_vm9, %v3157_v40, 0 }
 0x3ba   : > { %v2566_v57 = vmul.f32 %v2562_v51, %v2508_v49  ;;  %v3111_v49 = vld [vmem:[#allocation2 + $0xc] sm:$0xf] }
 0x3bb   : > { %vm2585_vm12 = vcmp.gt.f32.partialorder %v2581_v55, 0.0  ;;  %v2589_v58 = vmul.f32 0.1, %v2581_v55 }
 0x3bc   : > { %v2549_v62 = vpop.f32.mrf.mxu3  ;;  %v2582_v22 = vadd.f32 %v2578_v37, %v2566_v57 }
 0x3bd   : > { %v2593_v21 = vsel %vm2585_vm12, %v2581_v55, %v2589_v58  ;;  %v2550_v63 = vadd.f32 %v2549_v62, %v2536_v15  ;;  %v3129_v55 = vsel %vm5688_vm15, %v3127_v48, 0  ;;  %v3030_v15 = vld [vmem:[%s6744_s14] sm:$0xff]  ;;  %vm6747_vm12 = vcmask 130048  }
 0x3be   : > { %v2596_v0 = vpack.c.bf16 %v2593_v21, %v2592_v20  ;;  %v2590_v1 = vmul.f32 0.1, %v2582_v22  ;;  %vm2586_vm7 = vcmp.gt.f32.partialorder %v2582_v22, 0.0  ;;  %v5268_v20 = vpop.permute.xlu1 %5267 }
 0x3bf   : > { %v2567_v10 = vmul.f32 %v2562_v51, %v2550_v63  ;;  %v6288_v51 = vpop.permute.xlu2 %5252 }
 0x3c0   : > { %2598 = vst [vmem:[#allocation2 + $0x4] sm:$0xff] %v2596_v0  ;;  %2800 = vrot.lane.b32.xlu1 %v2596_v0, %s6700_s17  ;;  %v2594_v30 = vsel %vm2586_vm7, %v2582_v22, %v2590_v1  ;;  %v2764_v59 = vsel %vm6713_vm1, %v2596_v0, 0  ;;  %v2824_v26 = vsel %vm5828_vm5, %v2596_v0, 0  ;;  %v2732_v27 = vsel %vm6714_vm4, %v2596_v0, 0 }
 0x3c1   : > { %v2583_v4 = vadd.f32 %v2578_v37, %v2567_v10  ;;  %2726 = vst [vmem:[#allocation3 + $0x40] sm:$0xff] %v2596_v0  ;;  %v5254_v22 = vunpack.i.l.bf16 %v6288_v51  ;;  %vm6748_vm7 = vcmask 121856  }
 0x3c3   : > { %vm2587_vm6 = vcmp.gt.f32.partialorder %v2583_v4, 0.0  ;;  %v2591_v5 = vmul.f32 0.1, %v2583_v4  ;;  %v2809_v63 = vrot.slane %v5254_v22, 4 }
 0x3c5   : > { %v2595_v28 = vsel %vm2587_vm6, %v2583_v4, %v2591_v5  ;;  %vm6745_vm6 = vnez %v6681_v2 }
 0x3c6   : > { %v2597_v8 = vpack.c.bf16 %v2595_v28, %v2594_v30  ;;  %v3113_v57 = vsel %vm6745_vm6, %v3111_v49, 0 }
 0x3c7   : > { %v2632_v9 = vld [vmem:[#allocation2] sm:$0xff]  ;;  %v2693_v11 = vld [vmem:[#allocation2 + $0x8] sm:$0xf]  ;;  %v6300_v58 = vpop.permute.xlu2 %5257 }
 0x3c8   : > { %v2633_v12 = vld [vmem:[#allocation2 + $0x8] sm:$0xf]  ;;  %2599 = vst [vmem:[#allocation2 + $0x14] sm:$0xff] %v2597_v8  ;;  %2640 = vrot.lane.b32.xlu0 %v2632_v9, %s6711_s9  ;;  %v2697_v18 = vsel %vm5672_vm10, %v2693_v11, 0  ;;  %v2664_v54 = vsel %vm5793_vm3, %v2632_v9, 0  ;;  %v2696_v32 = vsel %vm5768_vm13, %v2632_v9, 0 }
 0x3c9   : > { %2642 = vrot.lane.b32.xlu1 %v2633_v12, %s6711_s9  ;;  %2706 = vrot.lane.b32.xlu2 %v2697_v18, %s6712_s13  ;;  %2727 = vst [vmem:[#allocation3 + $0x48] sm:$0xff] %v2597_v8  ;;  %v2661_v50 = vld [vmem:[#allocation2 + $0x8] sm:$0xf]  ;;  %v2766_v34 = vsel %vm6713_vm1, %v2597_v8, 0  ;;  %v2604_v31 = vsel %vm5787_vm11, %v2632_v9, 0  ;;  %v2826_v16 = vsel %vm5828_vm5, %v2597_v8, 0 }
 0x3ca   : > { %v2665_v23 = vsel %vm5705_vm2, %v2661_v50, 0  ;;  %v2601_v36 = vld [vmem:[#allocation2 + $0x8] sm:$0xf]  ;;  %v2734_v19 = vsel %vm6714_vm4, %v2597_v8, 0  ;;  %v5259_v50 = vunpack.i.l.bf16 %v6300_v58 }
 0x3cb   : > { %v2605_v38 = vsel %vm5680_vm14, %v2601_v36, 0 }
 0x3cf   : > { %v2634_v29 = vld [vmem:[#allocation2 + $0x10] sm:$0xff]  ;;  %v2663_v13 = vld [vmem:[#allocation2 + $0x18] sm:$0xf]  ;;  %v6302_v37 = vpop.permute.xlu2 %5262 }
 0x3d0   : > { %2674 = vrot.lane.b32.xlu0 %v2665_v23, %s6679_s4  ;;  %v2667_v3 = vsel %vm5705_vm2, %v2663_v13, 0  ;;  %v2695_v35 = vld [vmem:[#allocation2 + $0x18] sm:$0xf]  ;;  %v2698_v17 = vsel %vm5768_vm13, %v2634_v29, 0  ;;  %v2666_v24 = vsel %vm5793_vm3, %v2634_v29, 0  ;;  %v2606_v53 = vsel %vm5787_vm11, %v2634_v29, 0 }
 0x3d1   : > { %2772 = vrot.lane.b32.xlu1 %v2764_v59, %s6682_s10  ;;  %2672 = vrot.lane.b32.xlu2 %v2664_v54, %s6679_s4  ;;  %v2699_v7 = vsel %vm5672_vm10, %v2695_v35, 0  ;;  %v2603_v25 = vld [vmem:[#allocation2 + $0x18] sm:$0xf]  ;;  %v5270_v23 = vunpack.i.h.bf16 %v5268_v20 }
 0x3d2   : > { %v2635_v42 = vld [vmem:[#allocation2 + $0x18] sm:$0xf]  ;;  %v2607_v45 = vsel %vm5680_vm14, %v2603_v25, 0 }
 0x3d8   : > { %2832 = vrot.lane.b32.xlu0 %v2824_v26, %s6697_s5  ;;  %v2781_v26 = vrot.slane %v5259_v50, 4 }
 0x3d9   : > { %2740 = vrot.lane.b32.xlu1 %v2732_v27, %s6685_s2  ;;  %2644 = vrot.lane.b32.xlu2 %v2634_v29, %s6711_s9 }
 0x3e0   : > { %2804 = vrot.lane.b32.xlu0 %v2597_v8, %s6700_s17 }
 0x3e1   : > { %2704 = vrot.lane.b32.xlu1 %v2696_v32, %s6712_s13  ;;  %2678 = vrot.lane.b32.xlu2 %v2667_v3, %s6679_s4  ;;  %v2843_v3 = vrot.slane %v5270_v23, 4 }
 0x3e8   : > { %2776 = vrot.lane.b32.xlu0 %v2766_v34, %s6682_s10 }
 0x3e9   : > { %2612 = vrot.lane.b32.xlu1 %v2604_v31, %s6696_s18  ;;  %2836 = vrot.lane.b32.xlu2 %v2826_v16, %s6697_s5 }
 0x3f0   : > { %2744 = vrot.lane.b32.xlu0 %v2734_v19, %s6685_s2 }
 0x3f1   : > { %2710 = vrot.lane.b32.xlu1 %v2699_v7, %s6712_s13  ;;  %2614 = vrot.lane.b32.xlu2 %v2605_v38, %s6696_s18  ;;  %v5264_v7 = vunpack.i.l.bf16 %v6302_v37  ;;  %v5269_v38 = vunpack.i.l.bf16 %v5268_v20 }
 0x3f3   : > { %v2749_v25 = vrot.slane %v5264_v7, 4  ;;  %v2841_v40 = vrot.slane %v5269_v38, 4  ;;  %v6340_v7 = vld [vmem:[%s6755_s3] sm:$0xff]  ;;  %s6635_s3 = sand.u32 1, %s5327_s23  }
 0x3f4   : > { %v2873_v38 = vunpack.c.h.b16 %v6340_v7 }
 0x3f8   : > { %2708 = vrot.lane.b32.xlu0 %v2698_v17, %s6712_s13 }
 0x3f9   : > { %2676 = vrot.lane.b32.xlu1 %v2666_v24, %s6679_s4  ;;  %3025 = vperm.xlu2 %5209, %v3022_v52  }
 0x400   : > { %2646 = vrot.lane.b32.xlu0 %v2635_v42, %s6711_s9 }
 0x401   : > { %2618 = vrot.lane.b32.xlu1 %v2607_v45, %s6696_s18  ;;  %3164 = vrot.lane.b32.xlu2 %v3159_v56, %s6697_s5 }
 0x408   : > { %2616 = vrot.lane.b32.xlu0 %v2606_v53, %s6696_s18 }
 0x409   : > { %3134 = vrot.lane.b32.xlu1 %v3129_v55, %s6682_s10  ;;  %3118 = vrot.lane.b32.xlu2 %v3113_v57, %s6685_s2  ;;  %v5255_v55 = vunpack.i.h.bf16 %v6288_v51 }
 0x40b   : > { %v2811_v20 = vrot.slane %v5255_v55, 4 }
 0x410   : > { %3033 = vperm.xlu0 %5210, %v3030_v15  }
 0x423   : > { %v6304_v62 = vpop.permute.xlu2 %2706 }
 0x42b   : > { %v2673_v21 = vpop.permute.xlu2 %2672 }
 0x42c   : > { %v2680_v27 = vrot.slane %v2673_v21, 4 }
 0x432   : > { %v2801_v0 = vpop.permute.xlu1 %2800 }
 0x433   : > { %v6307_v10 = vpop.permute.xlu2 %2644  ;;  %v2808_v1 = vrot.slane %v2801_v0, 4 }
 0x435   : > { %v2812_v4 = vsel %vm1084_vm0, %v2808_v1, %v2809_v63 }
 0x436   : > { %v2813_v5 = vsel %vm6746_vm8, %v2801_v0, %v2812_v4  ;;  %vm6749_vm8 = vcmask 924672  }
 0x437   : > { %2818 = vst [vmem:[#allocation3 + $0x70] sm:$0xff] %v2813_v5 }
 0x43a   : > { %v2641_v30 = vpop.permute.xlu0 %2640 }
 0x43b   : > { %v2643_v28 = vpop.permute.xlu1 %2642  ;;  %v2648_v8 = vrot.slane %v2641_v30, 4  ;;  %v6311_v9 = vpop.permute.xlu2 %2678 }
 0x43c   : > { %v2649_v11 = vrot.slane %v2643_v28, 4 }
 0x43e   : > { %v2652_v12 = vsel %vm1084_vm0, %v2648_v8, %v2649_v11  ;;  %v5260_v11 = vunpack.i.h.bf16 %v6300_v58 }
 0x43f   : > { %v2653_v18 = vsel %vm6747_vm12, %v2641_v30, %v2652_v12  ;;  %vm6750_vm12 = vcmask 908288  }
 0x440   : > { %2658 = vst [vmem:[#allocation3 + $0x10] sm:$0xff] %v2653_v18 }
 0x442   : > { %v2675_v59 = vpop.permute.xlu0 %2674 }
 0x443   : > { %v2773_v54 = vpop.permute.xlu1 %2772  ;;  %v2681_v29 = vrot.slane %v2675_v59, 4  ;;  %v2837_v13 = vpop.permute.xlu2 %2836  ;;  %v2783_v59 = vrot.slane %v5260_v11, 4 }
 0x444   : > { %v2780_v32 = vrot.slane %v2773_v54, 4  ;;  %v2842_v34 = vrot.slane %v2837_v13, 4 }
 0x445   : > { %v2684_v31 = vsel %vm1084_vm0, %v2680_v27, %v2681_v29 }
 0x446   : > { %v2784_v16 = vsel %vm1084_vm0, %v2780_v32, %v2781_v26  ;;  %v2685_v35 = vsel %vm6748_vm7, %v2673_v21, %v2684_v31  ;;  %v2846_v36 = vsel %vm1084_vm0, %v2842_v34, %v2843_v3  ;;  %vm6751_vm7 = vmmov %vm6750_vm12  ;;  %v2713_v21 = vrot.slane %v6304_v62, 4  ;;  %v5048_v34 = vld [vmem:[#allocation3 + $0x74] sm:$0xf] }
 0x447   : > { %v2785_v19 = vsel %vm6749_vm8, %v2773_v54, %v2784_v16  ;;  %2690 = vst [vmem:[#allocation3 + $0x20] sm:$0xff] %v2685_v35  ;;  %v2847_v52 = vsel %vm6750_vm12, %v2837_v13, %v2846_v36  ;;  %vm6752_vm8 = vcmask 1039360   ;;  %vm6753_vm12 = vcmask 916480   ;;  %v4679_v13 = vld [vmem:[#allocation3 + $0x70] sm:$0xf] }
 0x448   : > { %2851 = vst [vmem:[#allocation3 + $0x88] sm:$0xff] %v2847_v52  ;;  %v5265_v35 = vunpack.i.h.bf16 %v6302_v37 }
 0x449   : > { %2790 = vst [vmem:[#allocation3 + $0x60] sm:$0xff] %v2785_v19 }
 0x44a   : > { %v2833_v17 = vpop.permute.xlu0 %2832 }
 0x44b   : > { %v2741_v24 = vpop.permute.xlu1 %2740  ;;  %v2840_v42 = vrot.slane %v2833_v17, 4  ;;  %v2615_v62 = vpop.permute.xlu2 %2614 }
 0x44c   : > { %v2748_v45 = vrot.slane %v2741_v24, 4  ;;  %v2621_v54 = vrot.slane %v2615_v62, 4 }
 0x44d   : > { %v2844_v56 = vsel %vm1084_vm0, %v2840_v42, %v2841_v40 }
 0x44e   : > { %v2752_v48 = vsel %vm1084_vm0, %v2748_v45, %v2749_v25  ;;  %v2845_v49 = vsel %vm6751_vm7, %v2833_v17, %v2844_v56  ;;  %vm6754_vm7 = vcmask 7168   ;;  %v2751_v25 = vrot.slane %v5265_v35, 4 }
 0x44f   : > { %v2753_v53 = vsel %vm6752_vm8, %v2741_v24, %v2752_v48  ;;  %2850 = vst [vmem:[#allocation3 + $0x80] sm:$0xff] %v2845_v49  ;;  %v5051_v1 = vld [vmem:[#allocation3 + $0x84] sm:$0xf0]  ;;  %v4689_v8 = vld [vmem:[#allocation3 + $0x88] sm:$0xf0]  ;;  %vm6756_vm8 = vcmask 924672   ;;  %v2875_v24 = vpack.c.b16 %v2873_v38, %v2873_v38 }
 0x450   : > { %2758 = vst [vmem:[#allocation3 + $0x50] sm:$0xff] %v2753_v53  ;;  %v4671_v42 = vld [vmem:[#allocation3 + $0x60] sm:$0xf]  ;;  %v5046_v48 = vld [vmem:[#allocation3 + $0x64] sm:$0xf] }
 0x452   : > { %v2805_v57 = vpop.permute.xlu0 %2804 }
 0x453   : > { %v2705_v15 = vpop.permute.xlu1 %2704  ;;  %v2810_v22 = vrot.slane %v2805_v57, 4 }
 0x454   : > { %v2712_v63 = vrot.slane %v2705_v15, 4 }
 0x455   : > { %v2814_v0 = vsel %vm1084_vm0, %v2810_v22, %v2811_v20  ;;  %v2683_v20 = vrot.slane %v6311_v9, 4  ;;  %v5043_v9 = vld [vmem:[#allocation3 + $0x44] sm:$0xf0] }
 0x456   : > { %v2716_v4 = vsel %vm1084_vm0, %v2712_v63, %v2713_v21  ;;  %v2815_v5 = vsel %vm6753_vm12, %v2805_v57, %v2814_v0  ;;  %v4687_v30 = vld [vmem:[#allocation3 + $0x80] sm:$0xf]  ;;  %v5050_v28 = vld [vmem:[#allocation3 + $0x84] sm:$0xf]  ;;  %vm6757_vm12 = vcmask 138240  }
 0x457   : > { %v2717_v51 = vsel %vm6754_vm7, %v2705_v15, %v2716_v4  ;;  %2819 = vst [vmem:[#allocation3 + $0x78] sm:$0xff] %v2815_v5  ;;  %v4688_v12 = vor.u32 %v5051_v1, %v4687_v30  ;;  %v4692_v18 = vor.u32 %v5050_v28, %v4689_v8  ;;  %vm6758_vm7 = vcmask 130048   ;;  %v4663_v1 = vld [vmem:[#allocation3 + $0x50] sm:$0xf]  ;;  %v5044_v28 = vld [vmem:[#allocation3 + $0x54] sm:$0xf] }
 0x458   : > { %2722 = vst [vmem:[#allocation3 + $0x30] sm:$0xff] %v2717_v51 }
 0x459   : > { %2990 = vmatpush.bf16.msrb.mxu3 %v4688_v12  ;;  %3016 = vmatpush.bf16.msra.mxu2 %v4692_v18  ;;  %v4657_v18 = vld [vmem:[#allocation3 + $0x48] sm:$0xf0] }
 0x45a   : > { %v2777_v50 = vpop.permute.xlu0 %2776 }
 0x45b   : > { %v2613_v23 = vpop.permute.xlu1 %2612  ;;  %v2782_v26 = vrot.slane %v2777_v50, 4 }
 0x45c   : > { %v2620_v27 = vrot.slane %v2613_v23, 4  ;;  %4693 = vmatmul.msk.bf16.vlgmr.msrb.gmra.mxu3 %vm6758_vm7, %v2875_v24 }
 0x45d   : > { %v2786_v29 = vsel %vm1084_vm0, %v2782_v26, %v2783_v59  ;;  %v2650_v59 = vrot.slane %v6307_v10, 4 }
 0x45e   : > { %v2624_v32 = vsel %vm1084_vm0, %v2620_v27, %v2621_v54  ;;  %v2787_v58 = vsel %vm6756_vm8, %v2777_v50, %v2786_v29  ;;  %v5049_v3 = vld [vmem:[#allocation3 + $0x74] sm:$0xf0]  ;;  %v4681_v31 = vld [vmem:[#allocation3 + $0x78] sm:$0xf0]  ;;  %vm6759_vm8 = vmmov %vm6758_vm7  ;;  %vm6761_vm7 = vcmask 7168  }
 0x45f   : > { %v2625_v16 = vsel %vm6757_vm12, %v2613_v23, %v2624_v32  ;;  %2791 = vst [vmem:[#allocation3 + $0x68] sm:$0xff] %v2787_v58  ;;  %v4680_v36 = vor.u32 %v5049_v3, %v4679_v13  ;;  %v4684_v19 = vor.u32 %v5048_v34, %v4681_v31  ;;  %4694 = vmatmul.msk.bf16.vlgmr.msra.gmra.mxu2 %vm6759_vm8, %v2875_v24  ;;  %vm6760_vm12 = vcmask 1039360   ;;  %v4655_v50 = vld [vmem:[#allocation3 + $0x40] sm:$0xf]  ;;  %v5042_v23 = vld [vmem:[#allocation3 + $0x44] sm:$0xf] }
 0x460   : > { %2630 = vst [vmem:[#allocation3] sm:$0xff] %v2625_v16  ;;  %vm6762_vm8 = vcmask 121856   ;;  %v4656_v26 = vor.u32 %v5043_v9, %v4655_v50  ;;  %v4660_v27 = vor.u32 %v5042_v23, %v4657_v18  ;;  %v4647_v13 = vld [vmem:[#allocation3 + $0x30] sm:$0xf]  ;;  %v5040_v3 = vld [vmem:[#allocation3 + $0x34] sm:$0xf]  ;;  %v3026_v9 = vpop.permute.xlu2 %3025 }
 0x461   : > { %2970 = vmatpush.bf16.msrb.mxu1 %v4680_v36  ;;  %2996 = vmatpush.bf16.msra.mxu0 %v4684_v19 }
 0x462   : > { %v2745_v52 = vpop.permute.xlu0 %2744 }
 0x463   : > { %v2711_v17 = vpop.permute.xlu1 %2710  ;;  %v2750_v40 = vrot.slane %v2745_v52, 4 }
 0x464   : > { %v2715_v22 = vrot.slane %v2711_v17, 4  ;;  %v5038_v17 = vld [vmem:[#allocation3 + $0x24] sm:$0xf] }
 0x465   : > { %v2754_v37 = vsel %vm1084_vm0, %v2750_v40, %v2751_v25 }
 0x466   : > { %v2755_v45 = vsel %vm6760_vm12, %v2745_v52, %v2754_v37  ;;  %v5047_v56 = vld [vmem:[#allocation3 + $0x64] sm:$0xf0]  ;;  %v4673_v49 = vld [vmem:[#allocation3 + $0x68] sm:$0xf0]  ;;  %vm6763_vm12 = vcmask 130048  }
 0x467   : > { %2759 = vst [vmem:[#allocation3 + $0x58] sm:$0xff] %v2755_v45  ;;  %v4672_v53 = vor.u32 %v5047_v56, %v4671_v42  ;;  %v4676_v55 = vor.u32 %v5046_v48, %v4673_v49  ;;  %v4639_v52 = vld [vmem:[#allocation3 + $0x20] sm:$0xf]  ;;  %v4631_v42 = vld [vmem:[#allocation3 + $0x10] sm:$0xf] }
 0x468   : > { %v5036_v48 = vld [vmem:[#allocation3 + $0x14] sm:$0xf] }
 0x469   : > { %2971 = vmatpush.bf16.msrb.mxu1 %v4672_v53  ;;  %2997 = vmatpush.bf16.msra.mxu0 %v4676_v55 }
 0x46a   : > { %v2709_v57 = vpop.permute.xlu0 %2708 }
 0x46b   : > { %v2677_v15 = vpop.permute.xlu1 %2676  ;;  %v2714_v21 = vrot.slane %v2709_v57, 4 }
 0x46c   : > { %v2682_v63 = vrot.slane %v2677_v15, 4 }
 0x46d   : > { %v2718_v0 = vsel %vm1084_vm0, %v2714_v21, %v2715_v22  ;;  %v5034_v21 = vld [vmem:[#allocation3 + $0x4] sm:$0xf] }
 0x46e   : > { %v2686_v4 = vsel %vm1084_vm0, %v2682_v63, %v2683_v20  ;;  %v2719_v5 = vsel %vm6761_vm7, %v2709_v57, %v2718_v0  ;;  %v5045_v30 = vld [vmem:[#allocation3 + $0x54] sm:$0xf0]  ;;  %v4665_v8 = vld [vmem:[#allocation3 + $0x58] sm:$0xf0]  ;;  %vm6764_vm7 = vcmask 138240   ;;  %v2872_v57 = vunpack.c.l.b16 %v6340_v7 }
 0x46f   : > { %v2687_v51 = vsel %vm6762_vm8, %v2677_v15, %v2686_v4  ;;  %2723 = vst [vmem:[#allocation3 + $0x38] sm:$0xff] %v2719_v5  ;;  %v4664_v11 = vor.u32 %v5045_v30, %v4663_v1  ;;  %v4668_v12 = vor.u32 %v5044_v28, %v4665_v8  ;;  %v4623_v15 = vld [vmem:[#allocation3] sm:$0xf]  ;;  %v3143_v4 = vld [vmem:[#allocation2 + $0xc] sm:$0xf] }
 0x470   : > { %2691 = vst [vmem:[#allocation3 + $0x28] sm:$0xff] %v2687_v51  ;;  %v2874_v1 = vpack.c.b16 %v2872_v57, %v2872_v57  ;;  %3148 = vrot.lane.b32.xlu0 %v3143_v4, %s6700_s17 }
 0x471   : > { %2972 = vmatpush.bf16.msrb.mxu1 %v4664_v11  ;;  %2998 = vmatpush.bf16.msra.mxu0 %v4668_v12 }
 0x472   : > { %v2647_v62 = vpop.permute.xlu0 %2646 }
 0x473   : > { %v2651_v54 = vrot.slane %v2647_v62, 4  ;;  %v2619_v35 = vpop.permute.xlu1 %2618 }
 0x474   : > { %v2623_v25 = vrot.slane %v2619_v35, 4 }
 0x475   : > { %v2654_v29 = vsel %vm1084_vm0, %v2650_v59, %v2651_v54  ;;  %2973 = vmatpush.bf16.msrb.mxu1 %v4656_v26  ;;  %2999 = vmatpush.bf16.msra.mxu0 %v4660_v27 }
 0x476   : > { %v2655_v32 = vsel %vm6763_vm12, %v6307_v10, %v2654_v29  ;;  %v5041_v58 = vld [vmem:[#allocation3 + $0x34] sm:$0xf0]  ;;  %v4649_v34 = vld [vmem:[#allocation3 + $0x38] sm:$0xf0] }
 0x477   : > { %2659 = vst [vmem:[#allocation3 + $0x18] sm:$0xff] %v2655_v32  ;;  %v4648_v31 = vor.u32 %v5041_v58, %v4647_v13  ;;  %v4652_v16 = vor.u32 %v5040_v3, %v4649_v34  ;;  %v5039_v36 = vld [vmem:[#allocation3 + $0x24] sm:$0xf0]  ;;  %v4641_v19 = vld [vmem:[#allocation3 + $0x28] sm:$0xf0] }
 0x478   : > { %v4640_v40 = vor.u32 %v5039_v36, %v4639_v52  ;;  %v4644_v37 = vor.u32 %v5038_v17, %v4641_v19 }
 0x479   : > { %2974 = vmatpush.bf16.msrb.mxu1 %v4648_v31  ;;  %3000 = vmatpush.bf16.msra.mxu0 %v4652_v16 }
 0x47a   : > { %v2617_v38 = vpop.permute.xlu0 %2616 }
 0x47b   : > { %v2622_v24 = vrot.slane %v2617_v38, 4 }
 0x47d   : > { %v2626_v10 = vsel %vm1084_vm0, %v2622_v24, %v2623_v25  ;;  %2975 = vmatpush.bf16.msrb.mxu1 %v4640_v40  ;;  %3001 = vmatpush.bf16.msra.mxu0 %v4644_v37  ;;  %v3264_v40 = vld [vmem:[%s5440_s24] sm:$0xf] }
 0x47e   : > { %v2627_v45 = vsel %vm6764_vm7, %v2617_v38, %v2626_v10  ;;  %v5037_v56 = vld [vmem:[#allocation3 + $0x14] sm:$0xf0]  ;;  %v4633_v49 = vld [vmem:[#allocation3 + $0x18] sm:$0xf0]  ;;  %v3272_v10 = vld [vmem:[%s5445_s30] sm:$0xf] }
 0x47f   : > { %2631 = vst [vmem:[#allocation3 + $0x8] sm:$0xff] %v2627_v45  ;;  %v4632_v53 = vor.u32 %v5037_v56, %v4631_v42  ;;  %v4636_v55 = vor.u32 %v5036_v48, %v4633_v49  ;;  %v3165_v45 = vpop.permute.xlu2 %3164  ;;  %vm6765_vm7 = vcmask 916480  }
 0x481   : > { %2976 = vmatpush.bf16.msrb.mxu1 %v4632_v53  ;;  %3002 = vmatpush.bf16.msra.mxu0 %v4636_v55 }
 0x482   : > { %v3034_v50 = vpop.permute.xlu0 %3033 }
 0x486   : > { %v5035_v20 = vld [vmem:[#allocation3 + $0x4] sm:$0xf0]  ;;  %v4625_v22 = vld [vmem:[#allocation3 + $0x8] sm:$0xf0] }
 0x487   : > { %v4624_v63 = vor.u32 %v5035_v20, %v4623_v15  ;;  %v4628_v0 = vor.u32 %v5034_v21, %v4625_v22  ;;  %v3119_v56 = vpop.permute.xlu2 %3118  ;;  %v3135_v20 = vpop.permute.xlu1 %3134 }
 0x488   : > { %v3137_v22 = vrot.slane %v3135_v20, 4 }
 0x489   : > { %2977 = vmatpush.bf16.msrb.mxu1 %v4624_v63  ;;  %3003 = vmatpush.bf16.msra.mxu0 %v4628_v0 }
 0x48c   : > { %2978 = vmatmul.bf16.vlgmr.msrb.gmra.mxu1 %v2874_v1  ;;  %3004 = vmatmul.bf16.vlgmr.msra.gmra.mxu0 %v2874_v1  ;;  %v3167_v1 = vrot.slane %v3165_v45, 4 }
 0x4df   : > { %v2992_v5 = vpop.f32.mrf.mxu3 }
 0x4e2   : > { %v3018_v30 = vpop.f32.mrf.mxu2  ;;  %v3149_v48 = vpop.permute.xlu0 %3148 }
 0x4e3   : > { %v3151_v49 = vrot.slane %v3149_v48, 4 }
 0x4e7   : > { %v2994_v28 = vpop.f32.mrf.mxu3 }
 0x4ea   : > { %v3020_v8 = vpop.f32.mrf.mxu2 }
 0x509   : > { %v2979_v51 = vpop.f32.mrf.mxu1  ;;  %v3005_v7 = vpop.f32.mrf.mxu0 }
 0x50a   : > { %v2993_v11 = vadd.f32 %v2992_v5, %v2979_v51  ;;  %v3019_v12 = vadd.f32 %v3018_v30, %v3005_v7 }
 0x50c   : > { %v3028_v18 = vmul.f32 %v3026_v9, %v2993_v11  ;;  %v3029_v62 = vmul.f32 %v3026_v9, %v3019_v12 }
 0x50e   : > { %v3036_v23 = vadd.f32 %v3034_v50, %v3028_v18  ;;  %v3037_v59 = vadd.f32 %v3034_v50, %v3029_v62  ;;  %v3121_v62 = vrot.slane %v3119_v56, 4 }
 0x510   : > { %vm3038_vm8 = vcmp.gt.f32.partialorder %v3036_v23, 0.0  ;;  %v3040_v54 = vmul.f32 0.1, %v3036_v23  ;;  %vm3039_vm12 = vcmp.gt.f32.partialorder %v3037_v59, 0.0  ;;  %v3041_v26 = vmul.f32 0.1, %v3037_v59 }
 0x511   : > { %v2981_v27 = vpop.f32.mrf.mxu1  ;;  %v3007_v29 = vpop.f32.mrf.mxu0 }
 0x512   : > { %v3042_v13 = vsel %vm3038_vm8, %v3036_v23, %v3040_v54  ;;  %v3043_v32 = vsel %vm3039_vm12, %v3037_v59, %v3041_v26  ;;  %vm6766_vm8 = vcmask 924672   ;;  %vm6767_vm12 = vcmask 908288  }
 0x513   : > { %v3044_v58 = vpack.c.bf16 %v3043_v32, %v3042_v13 }
 0x515   : > { %3045 = vst [vmem:[#allocation2 + $0x4] sm:$0xff] %v3044_v58  ;;  %3146 = vrot.lane.b32.xlu2 %v3044_v58, %s6700_s17  ;;  %v3158_v3 = vsel %vm5828_vm5, %v3044_v58, 0  ;;  %v3128_v34 = vsel %vm6713_vm1, %v3044_v58, 0  ;;  %v3112_v35 = vsel %vm6714_vm4, %v3044_v58, 0 }
 0x516   : > { %3162 = vrot.lane.b32.xlu1 %v3158_v3, %s6697_s5  ;;  %3132 = vrot.lane.b32.xlu0 %v3128_v34, %s6682_s10  ;;  %3109 = vst [vmem:[#allocation3 + $0x20] sm:$0xff] %v3044_v58 }
 0x51c   : > { %v3092_v31 = vld [vmem:[#allocation2] sm:$0xff]  ;;  %v3047_v19 = vld [vmem:[#allocation2 + $0x8] sm:$0xf] }
 0x51d   : > { %v3094_v16 = vsel %vm5768_vm13, %v3092_v31, 0  ;;  %v3078_v36 = vsel %vm5793_vm3, %v3092_v31, 0  ;;  %v3077_v38 = vld [vmem:[#allocation2 + $0x8] sm:$0xf]  ;;  %v3049_v17 = vsel %vm5680_vm14, %v3047_v19, 0  ;;  %v3048_v37 = vsel %vm5787_vm11, %v3092_v31, 0 }
 0x51e   : > { %3098 = vrot.lane.b32.xlu2 %v3094_v16, %s6712_s13  ;;  %3116 = vrot.lane.b32.xlu1 %v3112_v35, %s6685_s2  ;;  %v3093_v52 = vld [vmem:[#allocation2 + $0x8] sm:$0xf]  ;;  %v3079_v24 = vsel %vm5705_vm2, %v3077_v38, 0 }
 0x51f   : > { %3082 = vrot.lane.b32.xlu0 %v3078_v36, %s6679_s4  ;;  %v3095_v25 = vsel %vm5672_vm10, %v3093_v52, 0  ;;  %v3063_v42 = vld [vmem:[#allocation2 + $0x8] sm:$0xf] }
 0x526   : > { %3054 = vrot.lane.b32.xlu2 %v3049_v17, %s6696_s18  ;;  %3084 = vrot.lane.b32.xlu1 %v3079_v24, %s6679_s4  ;;  %v4713_v24 = vld [vmem:[#allocation3 + $0x20] sm:$0xf] }
 0x527   : > { %3100 = vrot.lane.b32.xlu0 %v3095_v25, %s6712_s13 }
 0x52e   : > { %3267 = vperm.xlu2 %5209, %v3264_v40   ;;  %3052 = vrot.lane.b32.xlu1 %v3048_v37, %s6696_s18 }
 0x52f   : > { %3066 = vrot.lane.b32.xlu0 %v3092_v31, %s6711_s9 }
 0x536   : > { %3068 = vrot.lane.b32.xlu1 %v3063_v42, %s6711_s9 }
 0x537   : > { %3275 = vperm.xlu0 %5210, %v3272_v10   ;;  %v5056_v10 = vld [vmem:[#allocation3 + $0x24] sm:$0xf] }
 0x56f   : > { %v3147_v53 = vpop.permute.xlu2 %3146 }
 0x570   : > { %v3150_v55 = vrot.slane %v3147_v53, 4 }
 0x572   : > { %v3152_v57 = vsel %vm1084_vm0, %v3150_v55, %v3151_v49 }
 0x573   : > { %v3153_v15 = vsel %vm6765_vm7, %v3147_v53, %v3152_v57  ;;  %vm6768_vm7 = vcmask 1039360  }
 0x574   : > { %3155 = vst [vmem:[#allocation3 + $0x38] sm:$0xff] %v3153_v15 }
 0x578   : > { %v3099_v32 = vpop.permute.xlu2 %3098 }
 0x579   : > { %v3102_v35 = vrot.slane %v3099_v32, 4 }
 0x57b   : > { %v5059_v54 = vld [vmem:[#allocation3 + $0x34] sm:$0xf0]  ;;  %v4723_v13 = vld [vmem:[#allocation3 + $0x38] sm:$0xf0] }
 0x580   : > { %v3055_v48 = vpop.permute.xlu2 %3054 }
 0x581   : > { %v3057_v53 = vrot.slane %v3055_v48, 4 }
 0x588   : > { %v3133_v21 = vpop.permute.xlu0 %3132  ;;  %v3163_v0 = vpop.permute.xlu1 %3162 }
 0x589   : > { %v3136_v63 = vrot.slane %v3133_v21, 4  ;;  %v3166_v4 = vrot.slane %v3163_v0, 4 }
 0x58b   : > { %v3138_v5 = vsel %vm1084_vm0, %v3136_v63, %v3137_v22  ;;  %v3168_v28 = vsel %vm1084_vm0, %v3166_v4, %v3167_v1 }
 0x58c   : > { %v3139_v30 = vsel %vm6766_vm8, %v3133_v21, %v3138_v5  ;;  %v3169_v8 = vsel %vm6767_vm12, %v3163_v0, %v3168_v28  ;;  %vm6769_vm8 = vcmask 7168   ;;  %vm6770_vm12 = vcmask 121856  }
 0x58d   : > { %3141 = vst [vmem:[#allocation3 + $0x30] sm:$0xff] %v3139_v30  ;;  %v3207_v51 = vunpack.c.l.b16 %v3169_v8  ;;  %v3208_v7 = vunpack.c.h.b16 %v3169_v8 }
 0x58e   : > { %3171 = vst [vmem:[#allocation3 + $0x40] sm:$0xff] %v3169_v8 }
 0x58f   : > { %v3217_v11 = vpack.c.b16 %v3207_v51, %v3207_v51  ;;  %v3218_v12 = vpack.c.b16 %v3208_v7, %v3208_v7 }
 0x590   : > { %v3117_v18 = vpop.permute.xlu1 %3116 }
 0x591   : > { %v3083_v9 = vpop.permute.xlu0 %3082  ;;  %v3120_v50 = vrot.slane %v3117_v18, 4  ;;  %v3233_v23 = vsel %vm1084_vm0, %v3217_v11, 0  ;;  %v3236_v59 = vsel %vm1084_vm0, %v3218_v12, 0 }
 0x592   : > { %3241 = vmatpush.bf16.msra.mxu3 %v3233_v23  ;;  %3254 = vmatpush.bf16.msrb.mxu2 %v3236_v59  ;;  %v3086_v36 = vrot.slane %v3083_v9, 4  ;;  %v3268_v23 = vpop.permute.xlu2 %3267 }
 0x593   : > { %v3122_v26 = vsel %vm1084_vm0, %v3120_v50, %v3121_v62  ;;  %v3172_v50 = vld [vmem:[%s5435_s19] sm:$0x3] }
 0x594   : > { %v4721_v27 = vld [vmem:[#allocation3 + $0x30] sm:$0xf]  ;;  %v5058_v29 = vld [vmem:[#allocation3 + $0x34] sm:$0xf]  ;;  %v3123_v58 = vsel %vm6768_vm7, %v3117_v18, %v3122_v26  ;;  %vm6771_vm7 = vcmask 138240  }
 0x595   : > { %v4722_v3 = vor.u32 %v5059_v54, %v4721_v27  ;;  %v4726_v34 = vor.u32 %v5058_v29, %v4723_v13  ;;  %3125 = vst [vmem:[#allocation3 + $0x28] sm:$0xff] %v3123_v58 }
 0x597   : > { %3242 = vmatpush.bf16.msra.mxu3 %v4722_v3  ;;  %3255 = vmatpush.bf16.msrb.mxu2 %v4726_v34 }
 0x598   : > { %v3085_v16 = vpop.permute.xlu1 %3084 }
 0x599   : > { %v3101_v31 = vpop.permute.xlu0 %3100  ;;  %v3087_v38 = vrot.slane %v3085_v16, 4 }
 0x59a   : > { %v3103_v19 = vrot.slane %v3101_v31, 4 }
 0x59b   : > { %v3088_v17 = vsel %vm1084_vm0, %v3086_v36, %v3087_v38 }
 0x59c   : > { %v3104_v52 = vsel %vm1084_vm0, %v3102_v35, %v3103_v19  ;;  %v3089_v40 = vsel %vm6770_vm12, %v3083_v9, %v3088_v17  ;;  %v5057_v37 = vld [vmem:[#allocation3 + $0x24] sm:$0xf0]  ;;  %v4715_v42 = vld [vmem:[#allocation3 + $0x28] sm:$0xf0]  ;;  %vm3227_vm12 = vcmask 588800  }
 0x59d   : > { %v3105_v25 = vsel %vm6769_vm8, %v3099_v32, %v3104_v52  ;;  %v4714_v45 = vor.u32 %v5057_v37, %v4713_v24  ;;  %v4718_v56 = vor.u32 %v5056_v10, %v4715_v42  ;;  %3091 = vst [vmem:[#allocation3 + $0x10] sm:$0xff] %v3089_v40  ;;  %vm6772_vm8 = vcmask 130048  }
 0x59e   : > { %3107 = vst [vmem:[#allocation3 + $0x18] sm:$0xff] %v3105_v25 }
 0x59f   : > { %3243 = vmatpush.bf16.msra.mxu3 %v4714_v45  ;;  %3256 = vmatpush.bf16.msrb.mxu2 %v4718_v56 }
 0x5a0   : > { %v3053_v49 = vpop.permute.xlu1 %3052 }
 0x5a1   : > { %v3056_v55 = vrot.slane %v3053_v49, 4  ;;  %v3067_v0 = vpop.permute.xlu0 %3066 }
 0x5a2   : > { %v3070_v30 = vrot.slane %v3067_v0, 4 }
 0x5a3   : > { %v3058_v57 = vsel %vm1084_vm0, %v3056_v55, %v3057_v53 }
 0x5a4   : > { %v3059_v15 = vsel %vm6771_vm7, %v3053_v49, %v3058_v57  ;;  %v4705_v22 = vld [vmem:[#allocation3 + $0x10] sm:$0xf]  ;;  %v5054_v63 = vld [vmem:[#allocation3 + $0x14] sm:$0xf] }
 0x5a5   : > { %v5055_v20 = vld [vmem:[#allocation3 + $0x14] sm:$0xf0]  ;;  %v4707_v21 = vld [vmem:[#allocation3 + $0x18] sm:$0xf0]  ;;  %3061 = vst [vmem:[#allocation3] sm:$0xff] %v3059_v15 }
 0x5a6   : > { %v4706_v1 = vor.u32 %v5055_v20, %v4705_v22  ;;  %v4710_v4 = vor.u32 %v5054_v63, %v4707_v21  ;;  %v3357_v20 = vld [vmem:[#allocation2 + $0xc] sm:$0x3] }
 0x5a7   : > { %v3375_v21 = vld [vmem:[#allocation2 + $0xc] sm:$0x3]  ;;  %v3359_v14 = vsel %vm6745_vm6, %v3357_v20, 0  ;;  %vm3718_vm6 = vcmask 523264  }
 0x5a8   : > { %3244 = vmatpush.bf16.msra.mxu3 %v4706_v1  ;;  %3257 = vmatpush.bf16.msrb.mxu2 %v4710_v4  ;;  %v3069_v5 = vpop.permute.xlu1 %3068  ;;  %v3377_v39 = vsel %vm5688_vm15, %v3375_v21, 0  ;;  %v3363_v63 = vrot.slane %v3359_v14, 6  ;;  %vm6782_vm15 = vcmask 7168  }
 0x5a9   : > { %v3071_v28 = vrot.slane %v3069_v5, 4  ;;  %v3276_v29 = vpop.permute.xlu0 %3275  ;;  %v3660_v5 = vld [vmem:[%s5460_s20] sm:$0xf] }
 0x5ab   : > { %v3072_v8 = vsel %vm1084_vm0, %v3070_v30, %v3071_v28  ;;  %v3407_v28 = vld [vmem:[#allocation2 + $0xc] sm:$0x3] }
 0x5ac   : > { %v3073_v51 = vsel %vm6772_vm8, %v3067_v0, %v3072_v8  ;;  %v4697_v7 = vld [vmem:[#allocation3] sm:$0xf]  ;;  %v5052_v12 = vld [vmem:[#allocation3 + $0x4] sm:$0xf]  ;;  %v3391_v0 = vld [vmem:[#allocation2 + $0xc] sm:$0x3] }
 0x5ad   : > { %3075 = vst [vmem:[#allocation3 + $0x8] sm:$0xff] %v3073_v51  ;;  %v3395_v2 = vrot.slane %v3391_v0, 6  ;;  %v3409_v60 = vsel %vm5797_vm9, %v3407_v28, 0  ;;  %vm6785_vm9 = vcmask 916480  }
 0x5b4   : > { %v5053_v11 = vld [vmem:[#allocation3 + $0x4] sm:$0xf0]  ;;  %v4699_v9 = vld [vmem:[#allocation3 + $0x8] sm:$0xf0] }
 0x5b5   : > { %v4698_v18 = vor.u32 %v5053_v11, %v4697_v7  ;;  %v4702_v62 = vor.u32 %v5052_v12, %v4699_v9  ;;  %v3916_v12 = vld [vmem:[#allocation4] sm:$0x1] }
 0x5b7   : > { %3245 = vmatpush.bf16.msra.mxu3 %v4698_v18  ;;  %3258 = vmatpush.bf16.msrb.mxu2 %v4702_v62 }
 0x5ba   : > { %4727 = vmatmul.msk.bf16.vlgmr.msra.gmra.mxu3 %vm3227_vm12, %v3172_v50  ;;  %4728 = vmatmul.msk.bf16.vlgmr.msrb.gmra.mxu2 %vm3227_vm12, %v3172_v50  ;;  %vm6791_vm12 = vcmask 261120  }
 0x63d   : > { %v3247_v59 = vpop.f32.mrf.mxu3  ;;  %v3260_v54 = vpop.f32.mrf.mxu2 }
 0x63e   : > { %v3270_v26 = vmul.f32 %v3268_v23, %v3247_v59  ;;  %v3271_v27 = vmul.f32 %v3268_v23, %v3260_v54 }
 0x640   : > { %v3278_v13 = vadd.f32 %v3276_v29, %v3270_v26  ;;  %v3279_v32 = vadd.f32 %v3276_v29, %v3271_v27 }
 0x642   : > { %vm3280_vm7 = vcmp.gt.f32.partialorder %v3278_v13, 0.0  ;;  %v3282_v58 = vmul.f32 0.1, %v3278_v13  ;;  %vm3281_vm8 = vcmp.gt.f32.partialorder %v3279_v32, 0.0  ;;  %v3283_v3 = vmul.f32 0.1, %v3279_v32 }
 0x644   : > { %v3284_v34 = vsel %vm3280_vm7, %v3278_v13, %v3282_v58  ;;  %v3285_v31 = vsel %vm3281_vm8, %v3279_v32, %v3283_v3  ;;  %vm6793_vm7 = vmmov %vm6791_vm12 }
 0x645   : > { %v3286_v16 = vpack.c.bf16 %v3285_v31, %v3284_v34  ;;  %v3249_v35 = vpop.f32.mrf.mxu3  ;;  %v3262_v36 = vpop.f32.mrf.mxu2  ;;  %vm6794_vm8 = vmmov %vm6793_vm7 }
 0x647   : > { %3287 = vst [vmem:[#allocation2 + $0x4] sm:$0x33] %v3286_v16 }
 0x64e   : > { %v3321_v19 = vld [vmem:[#allocation2 + $0x8] sm:$0x3]  ;;  %v3288_v52 = vld [vmem:[#allocation2] sm:$0x33] }
 0x64f   : > { %v3289_v38 = vld [vmem:[#allocation2 + $0x8] sm:$0x3]  ;;  %v3323_v17 = vsel %vm5705_vm2, %v3321_v19, 0  ;;  %v3290_v25 = vsel %vm5787_vm11, %v3288_v52, 0  ;;  %v3304_v40 = vld [vmem:[#allocation2] sm:$0x33] }
 0x650   : > { %v3291_v24 = vsel %vm5680_vm14, %v3289_v38, 0  ;;  %3328 = vrot.lane.b32.xlu0 %v3323_v17, %s6679_s4  ;;  %3294 = vrot.lane.b32.xlu1 %v3290_v25, %s6696_s18  ;;  %v3320_v37 = vld [vmem:[#allocation2] sm:$0x33]  ;;  %v3305_v10 = vld [vmem:[#allocation2 + $0x8] sm:$0x3]  ;;  %v3308_v45 = vrot.slane %v3304_v40, 6 }
 0x651   : > { %3296 = vrot.lane.b32.xlu2 %v3291_v24, %s6696_s18  ;;  %v3354_v42 = vld [vmem:[#allocation2 + $0x4] sm:$0x33]  ;;  %v3322_v61 = vsel %vm5793_vm3, %v3320_v37, 0  ;;  %v3309_v41 = vrot.slane %v3305_v10, 6  ;;  %s6775_s18 = sld [smem:[#allocation19_spill]]  ;;  %vm6780_vm11 = vcmask 138240  }
 0x652   : > { %3355 = vst [vmem:[#allocation3 + $0x10] sm:$0x33] %v3354_v42  ;;  %v3356_v43 = vld [vmem:[#allocation2 + $0x4] sm:$0x33]  ;;  %vm6781_vm14 = vcmask 130048   ;;  %vm6783_vm2 = vcmask 924672  }
 0x653   : > { %v3337_v56 = vld [vmem:[#allocation2 + $0x8] sm:$0x3]  ;;  %v3336_v48 = vld [vmem:[#allocation2] sm:$0x33]  ;;  %v3358_v49 = vsel %vm6714_vm4, %v3356_v43, 0  ;;  %vm6784_vm3 = vcmask 1039360  }
 0x654   : > { %v3339_v53 = vsel %vm5672_vm10, %v3337_v56, 0  ;;  %v3338_v44 = vsel %vm5768_vm13, %v3336_v48, 0  ;;  %v3362_v55 = vrot.slane %v3358_v49, 6  ;;  %v3374_v22 = vld [vmem:[#allocation2 + $0x4] sm:$0x33]  ;;  %vm6779_vm10 = vcmask 121856  }
 0x655   : > { %v3343_v57 = vrot.slane %v3339_v53, 6  ;;  %v3342_v15 = vrot.slane %v3338_v44, 6  ;;  %v3376_v33 = vsel %vm6713_vm1, %v3374_v22, 0  ;;  %v3406_v1 = vld [vmem:[#allocation2 + $0x4] sm:$0x33]  ;;  %vm6786_vm13 = vcmask 908288  }
 0x656   : > { %v3390_v46 = vld [vmem:[#allocation2 + $0x4] sm:$0x33]  ;;  %v3408_v4 = vsel %vm5828_vm5, %v3406_v1, 0  ;;  %vm3636_vm5 = vcmask 1041408   ;;  %vm3632_vm1 = vcmask 293888  }
 0x657   : > { %v3394_v6 = vrot.slane %v3390_v46, 6  ;;  %v4100_v51 = vld [vmem:[%s6775_s18 + $0x8] sm:$0xff]  ;;  %v4099_v7 = vld [vmem:[%s6775_s18] sm:$0xff] }
 0x658   : > { %3310 = vrot.lane.b32.xlu0 %v3308_v45, %s6711_s9  ;;  %3312 = vrot.lane.b32.xlu1 %v3309_v41, %s6711_s9  ;;  %s6773_s9 = sld [smem:[#allocation16_spill]] }
 0x659   : > { %3326 = vrot.lane.b32.xlu2 %v3322_v61, %s6679_s4  ;;  %s6776_s4 = sld [smem:[#allocation22_spill]] }
 0x65e   : > { %v3653_v30 = vld [vmem:[%s6773_s9] sm:$0xf]  ;;  %s6789_s9 = sld [smem:[#allocation25_spill]] }
 0x65f   : > { %v4169_v11 = vld [vmem:[%s6776_s4] sm:$0xff]  ;;  %v4171_v18 = vld [vmem:[%s6776_s4 + $0x10] sm:$0xff]  ;;  %v4170_v62 = vld [vmem:[%s6776_s4 + $0x8] sm:$0xff]  ;;  %s6796_s4 = sld [smem:[#allocation28_spill]] }
 0x660   : > { %3364 = vrot.lane.b32.xlu0 %v3362_v55, %s6685_s2  ;;  %3344 = vrot.lane.b32.xlu1 %v3342_v15, %s6712_s13 }
 0x661   : > { %3346 = vrot.lane.b32.xlu2 %v3343_v57, %s6712_s13  ;;  %s6774_s13 = sld [smem:[#allocation20_spill]] }
 0x667   : > { %v4113_v8 = vld [vmem:[%s6774_s13] sm:$0xff]  ;;  %v4114_v9 = vld [vmem:[%s6774_s13 + $0x8] sm:$0xff] }
 0x668   : > { %3382 = vrot.lane.b32.xlu0 %v3377_v39, %s6682_s10  ;;  %3366 = vrot.lane.b32.xlu1 %v3363_v63, %s6685_s2  ;;  %s6777_s2 = sld [smem:[#allocation23_spill]] }
 0x669   : > { %3380 = vrot.lane.b32.xlu2 %v3376_v33, %s6682_s10  ;;  %s6788_s10 = sld [smem:[#allocation15_spill]] }
 0x66e   : > { %v4190_v47 = vld [vmem:[%s6777_s2] sm:$0xff]  ;;  %v4192_v50 = vld [vmem:[%s6777_s2 + $0x10] sm:$0xff]  ;;  %v4191_v23 = vld [vmem:[%s6777_s2 + $0x8] sm:$0xff]  ;;  %s979_s2 = scalar_lea.vmem %s5525_s27, %s5598_s15 }
 0x670   : > { %3412 = vrot.lane.b32.xlu0 %v3408_v4, %s6697_s5  ;;  %3396 = vrot.lane.b32.xlu1 %v3394_v6, %s6700_s17 }
 0x671   : > { %3398 = vrot.lane.b32.xlu2 %v3395_v2, %s6700_s17  ;;  %s6778_s17 = sld [smem:[#allocation17_spill]] }
 0x677   : > { %v5071_v59 = vld [vmem:[%s6778_s17 + $0x38] sm:$0xff]  ;;  %v5070_v26 = vld [vmem:[%s6778_s17 + $0x30] sm:$0xff]  ;;  %v5069_v29 = vld [vmem:[%s6778_s17 + $0x28] sm:$0xff] }
 0x678   : > { %3663 = vperm.xlu0 %5210, %v3660_v5   ;;  %3414 = vrot.lane.b32.xlu1 %v3409_v60, %s6697_s5  ;;  %v5079_v54 = vld [vmem:[%s6778_s17 + $0x78] sm:$0xff]  ;;  %v5078_v27 = vld [vmem:[%s6778_s17 + $0x70] sm:$0xff]  ;;  %v5077_v13 = vld [vmem:[%s6778_s17 + $0x68] sm:$0xff]  ;;  %s6787_s5 = sld [smem:[#allocation24_spill]] }
 0x679   : > { %3656 = vperm.xlu2 %5209, %v3653_v30   ;;  %3582 = vmatpush.bf16.msra.mxu1 %v5071_v59  ;;  %v5068_v32 = vld [vmem:[%s6778_s17 + $0x20] sm:$0xff]  ;;  %v5067_v3 = vld [vmem:[%s6778_s17 + $0x18] sm:$0xff]  ;;  %v5066_v16 = vld [vmem:[%s6778_s17 + $0x10] sm:$0xff] }
 0x67a   : > { %3605 = vmatpush.bf16.msrb.mxu3 %v5079_v54  ;;  %v5076_v58 = vld [vmem:[%s6778_s17 + $0x60] sm:$0xff]  ;;  %v5075_v34 = vld [vmem:[%s6778_s17 + $0x58] sm:$0xff]  ;;  %v5074_v35 = vld [vmem:[%s6778_s17 + $0x50] sm:$0xff] }
 0x67b   : > { %v5065_v36 = vld [vmem:[%s6778_s17 + $0x8] sm:$0xff]  ;;  %v5064_v52 = vld [vmem:[%s6778_s17] sm:$0xff] }
 0x67c   : > { %v5073_v19 = vld [vmem:[%s6778_s17 + $0x48] sm:$0xff]  ;;  %v5072_v17 = vld [vmem:[%s6778_s17 + $0x40] sm:$0xff] }
 0x67d   : > { %3583 = vmatpush.bf16.msra.mxu1 %v5070_v26 }
 0x67e   : > { %3606 = vmatpush.bf16.msrb.mxu3 %v5078_v27 }
 0x680   : > { %4117 = vperm.xlu0 %5210, %v4113_v8   ;;  %4103 = vperm.xlu1 %5208, %v4099_v7  }
 0x681   : > { %4108 = vperm.xlu2 %5209, %v4100_v51   ;;  %3584 = vmatpush.bf16.msra.mxu1 %v5069_v29 }
 0x682   : > { %3607 = vmatpush.bf16.msrb.mxu3 %v5077_v13 }
 0x685   : > { %3585 = vmatpush.bf16.msra.mxu1 %v5068_v32 }
 0x686   : > { %3608 = vmatpush.bf16.msrb.mxu3 %v5076_v58 }
 0x688   : > { %4174 = vperm.xlu0 %5210, %v4169_v11   ;;  %4122 = vperm.xlu1 %5208, %v4114_v9  }
 0x689   : > { %3919 = vperm.xlu2 %5209, %v3916_v12   ;;  %3586 = vmatpush.bf16.msra.mxu1 %v5067_v3 }
 0x68a   : > { %3609 = vmatpush.bf16.msrb.mxu3 %v5075_v34 }
 0x68d   : > { %3587 = vmatpush.bf16.msra.mxu1 %v5066_v16 }
 0x68e   : > { %3610 = vmatpush.bf16.msrb.mxu3 %v5074_v35 }
 0x690   : > { %4195 = vperm.xlu0 %5210, %v4190_v47   ;;  %4179 = vperm.xlu1 %5208, %v4170_v62  }
 0x691   : > { %4184 = vperm.xlu2 %5209, %v4171_v18   ;;  %3588 = vmatpush.bf16.msra.mxu1 %v5065_v36 }
 0x692   : > { %3611 = vmatpush.bf16.msrb.mxu3 %v5073_v19 }
 0x695   : > { %3589 = vmatpush.bf16.msra.mxu1 %v5064_v52 }
 0x696   : > { %3612 = vmatpush.bf16.msrb.mxu3 %v5072_v17 }
 0x698   : > { %4200 = vperm.xlu1 %5208, %v4191_v23  }
 0x699   : > { %4205 = vperm.xlu2 %5209, %v4192_v50  }
 0x6ab   : > { %v3297_v31 = vpop.permute.xlu2 %3296 }
 0x6ac   : > { %v3299_v10 = vrot.slane %v3297_v31, 4 }
 0x6b3   : > { %v3327_v38 = vpop.permute.xlu2 %3326 }
 0x6b4   : > { %v3330_v25 = vrot.slane %v3327_v38, 4 }
 0x6bb   : > { %v3347_v44 = vpop.permute.xlu2 %3346 }
 0x6bc   : > { %v3349_v21 = vrot.slane %v3347_v44, 4 }
 0x6c2   : > { %v3329_v24 = vpop.permute.xlu0 %3328  ;;  %v3295_v37 = vpop.permute.xlu1 %3294 }
 0x6c3   : > { %v3331_v40 = vrot.slane %v3329_v24, 4  ;;  %v3298_v42 = vrot.slane %v3295_v37, 4  ;;  %v3381_v39 = vpop.permute.xlu2 %3380 }
 0x6c4   : > { %v3384_v0 = vrot.slane %v3381_v39, 4 }
 0x6c5   : > { %v3332_v45 = vsel %vm1084_vm0, %v3330_v25, %v3331_v40  ;;  %v3300_v41 = vsel %vm1084_vm0, %v3298_v42, %v3299_v10 }
 0x6c6   : > { %v3333_v61 = vsel %vm6779_vm10, %v3327_v38, %v3332_v45  ;;  %v3301_v43 = vsel %vm6780_vm11, %v3295_v37, %v3300_v41  ;;  %vm6795_vm10 = vmmov %vm6793_vm7  ;;  %vm3925_vm11 = vcmask 253952  }
 0x6c7   : > { %3335 = vst [vmem:[#allocation3 + $0x8] sm:$0x33] %v3333_v61 }
 0x6c8   : > { %3303 = vst [vmem:[#allocation3] sm:$0x33] %v3301_v43 }
 0x6ca   : > { %v3311_v56 = vpop.permute.xlu0 %3310  ;;  %v3313_v49 = vpop.permute.xlu1 %3312 }
 0x6cb   : > { %v3314_v48 = vrot.slane %v3311_v56, 4  ;;  %v3315_v53 = vrot.slane %v3313_v49, 4  ;;  %v3399_v9 = vpop.permute.xlu2 %3398 }
 0x6cc   : > { %v3401_v47 = vrot.slane %v3399_v9, 4 }
 0x6cd   : > { %v3316_v55 = vsel %vm1084_vm0, %v3314_v48, %v3315_v53 }
 0x6ce   : > { %v3317_v57 = vsel %vm6781_vm14, %v3311_v56, %v3316_v55  ;;  %vm6797_vm14 = vmmov %vm6793_vm7 }
 0x6cf   : > { %3319 = vst [vmem:[#allocation3] sm:$0xcc] %v3317_v57 }
 0x6d2   : > { %v3365_v15 = vpop.permute.xlu0 %3364  ;;  %v3345_v20 = vpop.permute.xlu1 %3344 }
 0x6d3   : > { %v3348_v22 = vrot.slane %v3345_v20, 4  ;;  %v3368_v46 = vrot.slane %v3365_v15, 4 }
 0x6d5   : > { %v3350_v14 = vsel %vm1084_vm0, %v3348_v22, %v3349_v21  ;;  %v5083_v21 = vld [vmem:[%s6787_s5 + $0x18] sm:$0xff] }
 0x6d6   : > { %v3351_v33 = vsel %vm6782_vm15, %v3345_v20, %v3350_v14  ;;  %v4731_v28 = vld [vmem:[#allocation3] sm:$0xf]  ;;  %v5060_v60 = vld [vmem:[#allocation3 + $0x4] sm:$0xf]  ;;  %vm4059_vm15 = vcmask 1040384  }
 0x6d7   : > { %3353 = vst [vmem:[#allocation3 + $0x8] sm:$0xcc] %v3351_v33  ;;  %v3628_v14 = vld [vmem:[%s6788_s10] sm:$0x3]  ;;  %v5087_v33 = vld [vmem:[%s6787_s5 + $0x38] sm:$0xff]  ;;  %s6790_s10 = sld [smem:[#allocation27_spill]] }
 0x6d8   : > { %3726 = vmatpush.bf16.msra.mxu2 %v5087_v33 }
 0x6da   : > { %v3383_v63 = vpop.permute.xlu0 %3382  ;;  %v3367_v2 = vpop.permute.xlu1 %3366 }
 0x6db   : > { %v3385_v1 = vrot.slane %v3383_v63, 4  ;;  %v3369_v4 = vrot.slane %v3367_v2, 4  ;;  %v5081_v63 = vld [vmem:[%s6787_s5 + $0x8] sm:$0xff] }
 0x6dc   : > { %v5085_v2 = vld [vmem:[%s6787_s5 + $0x28] sm:$0xff] }
 0x6dd   : > { %v3386_v6 = vsel %vm1084_vm0, %v3384_v0, %v3385_v1  ;;  %v3370_v30 = vsel %vm1084_vm0, %v3368_v46, %v3369_v4  ;;  %v5086_v0 = vld [vmem:[%s6787_s5 + $0x30] sm:$0xff]  ;;  %v5080_v1 = vld [vmem:[%s6787_s5] sm:$0xff]  ;;  %v5095_v46 = vld [vmem:[%s6787_s5 + $0x78] sm:$0xff] }
 0x6de   : > { %v3387_v5 = vsel %vm6783_vm2, %v3381_v39, %v3386_v6  ;;  %v3371_v8 = vsel %vm6784_vm3, %v3365_v15, %v3370_v30  ;;  %v5061_v51 = vld [vmem:[#allocation3 + $0x4] sm:$0xf0]  ;;  %v4733_v7 = vld [vmem:[#allocation3 + $0x8] sm:$0xf0]  ;;  %v5082_v39 = vld [vmem:[%s6787_s5 + $0x10] sm:$0xff]  ;;  %3727 = vmatpush.bf16.msra.mxu2 %v5086_v0  ;;  %vm4062_vm2 = vcmask 1042432  }
 0x6df   : > { %3389 = vst [vmem:[#allocation3 + $0x18] sm:$0x33] %v3387_v5  ;;  %v4732_v11 = vor.u32 %v5061_v51, %v4731_v28  ;;  %v4736_v12 = vor.u32 %v5060_v60, %v4733_v7  ;;  %v5094_v4 = vld [vmem:[%s6787_s5 + $0x70] sm:$0xff]  ;;  %v5084_v6 = vld [vmem:[%s6787_s5 + $0x20] sm:$0xff]  ;;  %v5091_v5 = vld [vmem:[%s6787_s5 + $0x58] sm:$0xff]  ;;  %v3657_v7 = vpop.permute.xlu2 %3656  ;;  %vm4078_vm3 = vcmask 64512  }
 0x6e0   : > { %3373 = vst [vmem:[#allocation3 + $0x10] sm:$0xcc] %v3371_v8  ;;  %v5093_v30 = vld [vmem:[%s6787_s5 + $0x68] sm:$0xff]  ;;  %v5090_v28 = vld [vmem:[%s6787_s5 + $0x50] sm:$0xff]  ;;  %v5092_v60 = vld [vmem:[%s6787_s5 + $0x60] sm:$0xff] }
 0x6e1   : > { %3590 = vmatmul.bf16.vlgmr.msra.gmra.mxu1 %v4732_v11  ;;  %3613 = vmatmul.bf16.vlgmr.msrb.gmra.mxu3 %v4736_v12  ;;  %v5089_v8 = vld [vmem:[%s6787_s5 + $0x48] sm:$0xff]  ;;  %v5088_v51 = vld [vmem:[%s6787_s5 + $0x40] sm:$0xff]  ;;  %s6798_s5 = sld [smem:[#allocation18_spill]] }
 0x6e2   : > { %v3397_v18 = vpop.permute.xlu1 %3396  ;;  %v3413_v59 = vpop.permute.xlu0 %3412  ;;  %3728 = vmatpush.bf16.msra.mxu2 %v5085_v2 }
 0x6e3   : > { %v3400_v62 = vrot.slane %v3397_v18, 4  ;;  %v3416_v26 = vrot.slane %v3413_v59, 4 }
 0x6e5   : > { %v3402_v50 = vsel %vm1084_vm0, %v3400_v62, %v3401_v47 }
 0x6e6   : > { %v3403_v23 = vsel %vm6785_vm9, %v3397_v18, %v3402_v50  ;;  %3729 = vmatpush.bf16.msra.mxu2 %v5084_v6 }
 0x6e7   : > { %3405 = vst [vmem:[#allocation3 + $0x18] sm:$0xcc] %v3403_v23  ;;  %v4739_v13 = vld [vmem:[#allocation3 + $0x10] sm:$0xf]  ;;  %v5062_v3 = vld [vmem:[#allocation3 + $0x14] sm:$0xf] }
 0x6ea   : > { %v3415_v54 = vpop.permute.xlu1 %3414  ;;  %3816 = vmatpush.bf16.msrb.mxu2 %v5091_v5  ;;  %v3664_v9 = vpop.permute.xlu0 %3663 }
 0x6eb   : > { %v3417_v27 = vrot.slane %v3415_v54, 4 }
 0x6ed   : > { %v3418_v29 = vsel %vm1084_vm0, %v3416_v26, %v3417_v27  ;;  %v5097_v26 = vld [vmem:[%s6789_s9 + $0x8] sm:$0xff] }
 0x6ee   : > { %v3419_v32 = vsel %vm6786_vm13, %v3413_v59, %v3418_v29  ;;  %v5063_v58 = vld [vmem:[#allocation3 + $0x14] sm:$0xf0]  ;;  %v4741_v34 = vld [vmem:[#allocation3 + $0x18] sm:$0xf0]  ;;  %3817 = vmatpush.bf16.msrb.mxu2 %v5090_v28  ;;  %v5096_v29 = vld [vmem:[%s6789_s9] sm:$0xff]  ;;  %vm6800_vm13 = vcmask 130048  }
 0x6ef   : > { %3421 = vst [vmem:[#allocation3 + $0x20] sm:$0x33] %v3419_v32  ;;  %v4740_v31 = vor.u32 %v5063_v58, %v4739_v13  ;;  %v4744_v16 = vor.u32 %v5062_v3, %v4741_v34  ;;  %v3877_v58 = vld [vmem:[%s979_s2] sm:$0x1]  ;;  %s6792_s2 = sld [smem:[#allocation26_spill]]  ;;  %s6802_s9 = sand.u32 1, %s5327_s23  }
 0x6f0   : > { %v3878_v3 = vpack.c.bf16 %v3877_v58, %v3877_v58 }
 0x6f1   : > { %3595 = vmatmul.bf16.gmra.mxu1 %v4740_v31  ;;  %3618 = vmatmul.bf16.gmra.mxu3 %v4744_v16 }
 0x6f2   : > { %3818 = vmatpush.bf16.msrb.mxu2 %v5089_v8 }
 0x6f6   : > { %v3426_v35 = vld [vmem:[#allocation3 + $0x20] sm:$0x33]  ;;  %3819 = vmatpush.bf16.msrb.mxu2 %v5088_v51 }
 0x6f7   : > { %v3472_v36 = vunpack.c.l.b16 %v3426_v35  ;;  %v3473_v19 = vunpack.c.h.b16 %v3426_v35 }
 0x6f9   : > { %v3478_v38 = vpack.c.b16 %v3472_v36, %v3472_v36  ;;  %v3479_v52 = vpack.c.b16 %v3473_v19, %v3473_v19 }
 0x701   : > { %3600 = vmatmul.bf16.gmra.mxu1 %v3478_v38  ;;  %3623 = vmatmul.bf16.gmra.mxu3 %v3479_v52  ;;  %v5099_v38 = vld [vmem:[%s6790_s10 + $0x8] sm:$0xff]  ;;  %v5101_v52 = vld [vmem:[%s6790_s10 + $0x18] sm:$0xff] }
 0x75e   : > { %v3591_v17 = vpop.f32.mrf.mxu1 }
 0x764   : > { %v3614_v24 = vpop.f32.mrf.mxu3 }
 0x765   : > { %v3615_v20 = vadd.f32 %v3614_v24, %v3591_v17  ;;  %v5105_v17 = vld [vmem:[%s6790_s10 + $0x38] sm:$0xff]  ;;  %v5098_v24 = vld [vmem:[%s6790_s10] sm:$0xff] }
 0x766   : > { %v3593_v25 = vpop.f32.mrf.mxu1  ;;  %4043 = vmatpush.bf16.msra.mxu3 %v5105_v17 }
 0x76c   : > { %v3616_v40 = vpop.f32.mrf.mxu3 }
 0x76d   : > { %v3617_v55 = vadd.f32 %v3616_v40, %v3593_v25  ;;  %v5100_v25 = vld [vmem:[%s6790_s10 + $0x10] sm:$0xff] }
 0x76e   : > { %v3596_v37 = vpop.f32.mrf.mxu1  ;;  %v5104_v40 = vld [vmem:[%s6790_s10 + $0x30] sm:$0xff] }
 0x76f   : > { %v3629_v22 = vpack.c.bf16 %v3617_v55, %v3615_v20  ;;  %4044 = vmatpush.bf16.msra.mxu3 %v5104_v40 }
 0x774   : > { %v3619_v10 = vpop.f32.mrf.mxu3 }
 0x775   : > { %v3620_v44 = vadd.f32 %v3619_v10, %v3596_v37  ;;  %v5103_v37 = vld [vmem:[%s6790_s10 + $0x28] sm:$0xff] }
 0x776   : > { %v3598_v42 = vpop.f32.mrf.mxu1 }
 0x77c   : > { %v3621_v45 = vpop.f32.mrf.mxu3 }
 0x77d   : > { %v3622_v49 = vadd.f32 %v3621_v45, %v3598_v42  ;;  %v5102_v42 = vld [vmem:[%s6790_s10 + $0x20] sm:$0xff]  ;;  %s4229_s10 = scalar_lea.sflag [#allocation6], %s6802_s9 }
 0x77e   : > { %v3601_v61 = vpop.f32.mrf.mxu1 }
 0x77f   : > { %v3630_v57 = vpack.c.bf16 %v3622_v49, %v3620_v44  ;;  %v3912_v49 = vld [vmem:[%s6792_s2] sm:$0x1]  ;;  %s6541_s2 = scalar_lea.vmem [#allocation5], %s6635_s3  ;;  %s6799_s3 = sld [smem:[#allocation21_spill]] }
 0x784   : > { %v3624_v41 = vpop.f32.mrf.mxu3 }
 0x785   : > { %v3625_v43 = vadd.f32 %v3624_v41, %v3601_v61 }
 0x786   : > { %v3603_v56 = vpop.f32.mrf.mxu1 }
 0x787   : > { %v3631_v48 = vpack.c.bf16 %v3625_v43, %v3625_v43  ;;  %v4109_v43 = vpop.permute.xlu2 %4108 }
 0x789   : > { %v3638_v53 = vsel %vm3636_vm5, %v3631_v48, 0 }
 0x78a   : > { %3645 = vmatpush.bf16.msrb.mxu0 %v3638_v53 }
 0x78c   : > { %v3626_v15 = vpop.f32.mrf.mxu3 }
 0x78e   : > { %3646 = vmatpush.bf16.msrb.mxu0 %v3630_v57 }
 0x78f   : > { %v3920_v57 = vpop.permute.xlu2 %3919 }
 0x790   : > { %v3922_v20 = vperm.slane %v3920_v57, 0 }
 0x792   : > { %3647 = vmatpush.bf16.msrb.mxu0 %v3629_v22 }
 0x795   : > { %4809 = vmatmul.msk.bf16.vlgmr.msrb.gmra.mxu0 %vm3632_vm1, %v3628_v14 }
 0x796   : > { %3766 = vmatpush.bf16.msra.mxu0 %v5083_v21 }
 0x79a   : > { %3767 = vmatpush.bf16.msra.mxu0 %v5082_v39 }
 0x79e   : > { %3768 = vmatpush.bf16.msra.mxu0 %v5081_v63 }
 0x7a2   : > { %3769 = vmatpush.bf16.msra.mxu0 %v5080_v1 }
 0x7a6   : > { %3867 = vmatpush.bf16.msrb.mxu0 %v5095_v46 }
 0x7aa   : > { %3868 = vmatpush.bf16.msrb.mxu0 %v5094_v4 }
 0x7ae   : > { %3869 = vmatpush.bf16.msrb.mxu0 %v5093_v30 }
 0x7b2   : > { %3870 = vmatpush.bf16.msrb.mxu0 %v5092_v60  ;;  %v4064_v60 = vld [vmem:[%s6796_s4] sm:$0xf]  ;;  %s4240_s4 = scalar_lea.hbm %s5538_s12, %s5561_s0 }
 0x7b3   : > { %s4244_s8 = sshll.u32 %s4240_s4, 4  ;;  %s4245_s8 = int_to_ptr.hbm [resolvable:$true] %s4244_s8 }
 0x7b4   : > { %s5287_s13 = sshra.s32 %s4245_s8, 4  ;;  %s5288_s13 = int_to_ptr.hbm [resolvable:$true] %s5287_s13 }
 0x7b5   : > { %s5289_s14 = scalar_lea.hbm %s5288_s13, 1  ;;  %p5294_p0 = scmp.lt.s32.totalorder %s5288_s13, %s5538_s12 }
 0x7b6   : > { %p5290_p11 = scmp.ne.s32.totalorder %s5288_s13, %s5289_s14 }
 0x7b8   : > { %p5291_p12 = pnand %p5290_p11, %p5578_p5 }
 0x7ba   : > { %p5292_p13 = pneg %p5291_p12 }
 0x812   : > { %v3649_v11 = vpop.f32.mrf.mxu0 }
 0x813   : > { %v3659_v12 = vmul.f32 %v3657_v7, %v3649_v11 }
 0x815   : > { %v3666_v47 = vadd.f32 %v3664_v9, %v3659_v12 }
 0x817   : > { %vm3667_vm4 = vcmp.gt.f32.partialorder %v3666_v47, 0.0  ;;  %v3668_v18 = vmul.f32 0.1, %v3666_v47 }
 0x819   : > { %v6513_v62 = vsel %vm3667_vm4, %v3666_v47, %v3668_v18 }
 0x81a   : > { %v3670_v50 = vpack.c.bf16 %v6513_v62, %v6513_v62  ;;  %v3651_v23 = vpop.f32.mrf.mxu0  ;;  %v4067_v7 = vrot.slane %v6513_v62, 4 }
 0x81b   : > { %v4104_v23 = vpop.permute.xlu1 %4103 }
 0x81c   : > { %v3689_v59 = vunpack.c.l.b16 %v3670_v50  ;;  %4851 = vmatmul.msk.bf16.vlgmr.msra.gmra.mxu0 %vm3718_vm6, %v3670_v50  ;;  %v5106_v50 = vld [vmem:[%s6798_s5] sm:$0xff]  ;;  %s4242_s5 = sshll.u32 %s6541_s2, 4  ;;  %s4243_s5 = int_to_ptr.vmem [resolvable:$true] %s4242_s5 }
 0x81d   : > { %3953 = vmatpush.bf16.msra.mxu0 %v5099_v38 }
 0x81e   : > { %v3690_v54 = vpack.c.b16 %v3689_v59, %v3689_v59 }
 0x820   : > { %v3692_v27 = vshrl.u32 %v3690_v54, 16  ;;  %v3784_v32 = vrot.slane %v3690_v54, 1 }
 0x821   : > { %3954 = vmatpush.bf16.msra.mxu0 %v5098_v24 }
 0x822   : > { %4834 = vmatmul.msk.bf16.vlgmr.msra.gmra.mxu2 %vm3718_vm6, %v3692_v27  ;;  %v3835_v13 = vrot.slane %v3692_v27, 1 }
 0x823   : > { %3904 = vmatpush.bf16.msra.mxu2 %v5097_v26  ;;  %v4118_v26 = vpop.permute.xlu0 %4117 }
 0x827   : > { %3905 = vmatpush.bf16.msra.mxu2 %v5096_v29 }
 0x82c   : > { %4901 = vmatmul.msk.bf16.vlgmr.msrb.gmra.mxu0 %vm3718_vm6, %v3835_v13  ;;  %v4123_v13 = vpop.permute.xlu1 %4122 }
 0x832   : > { %4876 = vmatmul.msk.bf16.vlgmr.msrb.gmra.mxu2 %vm3718_vm6, %v3784_v32 }
 0x833   : > { %3983 = vmatpush.bf16.msrb.mxu2 %v5101_v52 }
 0x837   : > { %3984 = vmatpush.bf16.msrb.mxu2 %v5100_v25 }
 0x842   : > { %4910 = vmatmul.msk.bf16.vlgmr.msra.gmra.mxu2 %vm6791_vm12, %v3878_v3 }
 0x843   : > { %4013 = vmatpush.bf16.msra.mxu2 %v5103_v37 }
 0x847   : > { %4014 = vmatpush.bf16.msra.mxu2 %v5102_v42 }
 0x899   : > { %v3771_v34 = vpop.f32.mrf.mxu0 }
 0x8a1   : > { %v3773_v31 = vpop.f32.mrf.mxu0 }
 0x8a5   : > { %v3731_v16 = vpop.f32.mrf.mxu2 }
 0x8a6   : > { %v3772_v61 = vadd.f32 %v3771_v34, %v3731_v16 }
 0x8a9   : > { %v3872_v35 = vpop.f32.mrf.mxu0 }
 0x8ad   : > { %v3733_v36 = vpop.f32.mrf.mxu2 }
 0x8ae   : > { %v4135_v36 = vld [vmem:[%s6799_s3 + $0x8] sm:$0xf] }
 0x8b1   : > { %v3874_v19 = vpop.f32.mrf.mxu0 }
 0x8b2   : > { %v4142_v19 = vunpack.c.l.b16 %v4135_v36 }
 0x8b4   : > { %v4144_v38 = vpack.c.b16 %v4142_v19, %v4142_v19 }
 0x8b5   : > { %v3821_v10 = vpop.f32.mrf.mxu2 }
 0x8b6   : > { %v3825_v41 = vadd.f32 %v3821_v10, %v3772_v61 }
 0x8b8   : > { %v3876_v56 = vadd.f32 %v3872_v35, %v3825_v41  ;;  %v5107_v35 = vld [vmem:[%s6799_s3] sm:$0xff]  ;;  %s5293_s3 = scalar_lea.hbm %s5538_s12, 2 }
 0x8b9   : > { %p5295_p1 = scmp.lt.s32.totalorder %s5293_s3, %s5289_s14 }
 0x8bb   : > { %p5296_p2 = por %p5295_p1, %p5294_p0 }
 0x8bd   : > { %v3823_v45 = vpop.f32.mrf.mxu2  ;;  %p5297_p3 = pnand %p5296_p2, %p5292_p13 }
 0x8c5   : > { %v3907_v48 = vpop.f32.mrf.mxu2 }
 0x8c6   : > { %v3911_v53 = vadd.f32 %v3907_v48, %v3876_v56 }
 0x8c8   : > { %v3913_v44 = vadd.f32 %v3912_v49, %v3911_v53 }
 0x8ca   : > { %5271 = vtanh.f32 %v3913_v44 }
 0x8cd   : > { %v3909_v55 = vpop.f32.mrf.mxu2 }
 0x8d0   : > { %v5272_v15 = vpop.eup %5271 }
 0x8d1   : > { %v3915_v21 = vsub.f32 %v5272_v15, %v3877_v58  ;;  %v3927_v22 = vpack.c.bf16 %v5272_v15, %v5272_v15 }
 0x8d3   : > { %4919 = vmatmul.msk.bf16.vlgmr.msra.gmra.mxu0 %vm6793_vm7, %v3927_v22  ;;  %4932 = vmatmul.msk.bf16.vlgmr.msrb.gmra.mxu2 %vm6794_vm8, %v3927_v22  ;;  %v3923_v14 = vmul.f32 %v3922_v20, %v3915_v21 }
 0x8d4   : > { %4958 = vmatmul.msk.bf16.vlgmr.msra.gmra.mxu3 %vm6795_vm10, %v3927_v22 }
 0x8d5   : > { %v3924_v39 = vadd.f32 %v3923_v14, %v3877_v58 }
 0x8d7   : > { %3926 = vst.msk [vmem:[%s6541_s2] sm:$0x1] %vm3925_vm11, %v3924_v39 }
 0x8e3   : > { %4945 = vmatmul.msk.bf16.vlgmr.msra.gmra.mxu2 %vm6797_vm14, %v3927_v22 }
 0x950   : > { %v3956_v33 = vpop.f32.mrf.mxu0 }
 0x956   : > { %v3986_v63 = vpop.f32.mrf.mxu2 }
 0x957   : > { %v4046_v0 = vpop.f32.mrf.mxu3  ;;  %v4051_v4 = vrot.slane %v3986_v63, 7 }
 0x958   : > { %v3958_v1 = vpop.f32.mrf.mxu0  ;;  %v4057_v28 = vrot.slane %v4046_v0, 5 }
 0x959   : > { %v4060_v30 = vsel %vm4059_vm15, %v3956_v33, %v4051_v4 }
 0x95e   : > { %v3988_v2 = vpop.f32.mrf.mxu2 }
 0x95f   : > { %v4048_v46 = vpop.f32.mrf.mxu3 }
 0x966   : > { %v4016_v6 = vpop.f32.mrf.mxu2 }
 0x967   : > { %v4054_v5 = vrot.slane %v4016_v6, 6 }
 0x969   : > { %v4061_v8 = vsel %vm3636_vm5, %v4060_v30, %v4054_v5  ;;  %vm6801_vm5 = vmmov %vm6800_vm13 }
 0x96a   : > { %v4063_v51 = vsel %vm4062_vm2, %v4061_v8, %v4057_v28 }
 0x96b   : > { %v4065_v11 = vadd.f32 %v4064_v60, %v4063_v51 }
 0x96d   : > { %v4069_v12 = vsel %vm1084_vm0, %v4065_v11, %v4067_v7 }
 0x96e   : > { %v4018_v9 = vpop.f32.mrf.mxu2  ;;  %v4070_v47 = vpack.c.bf16 %v4069_v12, %v4069_v12 }
 0x970   : > { %v4083_v18 = vsel %vm1084_vm0, %v4070_v47, 0 }
 0x971   : > { %4092 = vmatpush.bf16.msrb.mxu0 %v4083_v18 }
 0x974   : > { %4963 = vmatmul.msk.bf16.vlgmr.msrb.gmra.mxu0 %vm4078_vm3, %v5106_v50 }
 0x9f1   : > { %v4094_v59 = vpop.f32.mrf.mxu0 }
 0x9f2   : > { %v4111_v54 = vmul.f32 %v4104_v23, %v4094_v59 }
 0x9f4   : > { %v4125_v27 = vadd.f32 %v4118_v26, %v4111_v54 }
 0x9f6   : > { %v4129_v32 = vmul.f32 0.1, %v4125_v27  ;;  %vm4127_vm0 = vcmp.gt.f32.partialorder %v4125_v27, 0.0 }
 0x9f8   : > { %v4131_v34 = vsel %vm4127_vm0, %v4125_v27, %v4129_v32 }
 0x9f9   : > { %v4096_v29 = vpop.f32.mrf.mxu0 }
 0x9fa   : > { %v4112_v62 = vmul.f32 %v4109_v43, %v4096_v29 }
 0x9fc   : > { %v4126_v58 = vadd.f32 %v4123_v13, %v4112_v62 }
 0x9fe   : > { %vm4128_vm9 = vcmp.gt.f32.partialorder %v4126_v58, 0.0  ;;  %v4130_v3 = vmul.f32 0.1, %v4126_v58 }
 0xa00   : > { %v4132_v31 = vsel %vm4128_vm9, %v4126_v58, %v4130_v3 }
 0xa01   : > { %v4136_v16 = vpack.c.bf16 %v4132_v31, %v4131_v34 }
 0xa03   : > { %4158 = vmatpush.bf16.msrb.mxu1 %v4136_v16 }
 0xa06   : > { %4968 = vmatmul.msk.bf16.vlgmr.msrb.gmra.mxu1 %vm6800_vm13, %v5107_v35 }
 0xa16   : > { %4969 = vmatmul.msk.bf16.gmra.mxu1 %vm6801_vm5, %v4144_v38 }
 0xa17   : > { %5300 = shalt.err (!%p5297_p3)
}
 0xa18   : > { %5109 = dma.vmem_to_hbm [thread:$0]  (%p5578_p5), %s4243_s5, 16, %s4245_s8, %s4229_s10   ;;  %v4175_v52 = vpop.permute.xlu0 %4174  ;;  %v4180_v17 = vpop.permute.xlu1 %4179 }
 0xa19   : > { %s5108_s0 = smul.u32 24, %s5598_s15  ;;  %v4185_v45 = vpop.permute.xlu2 %4184 }
 0xa1b   : > { %s984_s9 = scalar_lea.vmem %s5533_s6, %s5108_s0 }
 0xa20   : > { %v4196_v40 = vpop.permute.xlu0 %4195  ;;  %v4201_v43 = vpop.permute.xlu1 %4200 }
 0xa21   : > { %v4206_v55 = vpop.permute.xlu2 %4205 }
 0xa83   : > { %v4160_v24 = vpop.f32.mrf.mxu1 }
 0xa84   : > { %v4187_v25 = vmul.f32 %v4175_v52, %v4160_v24 }
 0xa86   : > { %v4208_v37 = vadd.f32 %v4196_v40, %v4187_v25 }
 0xa88   : > { %vm4211_vm1 = vcmp.gt.f32.partialorder %v4208_v37, 0.0  ;;  %v4214_v10 = vmul.f32 0.1, %v4208_v37 }
 0xa8a   : > { %v4217_v42 = vsel %vm4211_vm1, %v4208_v37, %v4214_v10 }
 0xa8b   : > { %4220 = vst.msk [vmem:[%s984_s9] sm:$0xff] %vm3718_vm6, %v4217_v42  ;;  %v4162_v61 = vpop.f32.mrf.mxu1 }
 0xa8c   : > { %v4188_v41 = vmul.f32 %v4180_v17, %v4162_v61 }
 0xa8e   : > { %v4209_v56 = vadd.f32 %v4201_v43, %v4188_v41 }
 0xa90   : > { %vm4212_vm4 = vcmp.gt.f32.partialorder %v4209_v56, 0.0  ;;  %v4215_v48 = vmul.f32 0.1, %v4209_v56 }
 0xa92   : > { %v4218_v49 = vsel %vm4212_vm4, %v4209_v56, %v4215_v48 }
 0xa93   : > { %4221 = vst.msk [vmem:[%s984_s9 + $0x8] sm:$0xff] %vm3718_vm6, %v4218_v49  ;;  %v4165_v53 = vpop.f32.mrf.mxu1 }
 0xa94   : > { %v4189_v44 = vmul.f32 %v4185_v45, %v4165_v53 }
 0xa96   : > { %v4210_v57 = vadd.f32 %v4206_v55, %v4189_v44 }
 0xa98   : > { %vm4213_vm12 = vcmp.gt.f32.partialorder %v4210_v57, 0.0  ;;  %v4216_v15 = vmul.f32 0.1, %v4210_v57 }
 0xa9a   : > { %v4219_v20 = vsel %vm4213_vm12, %v4210_v57, %v4216_v15 }
 0xa9b   : > { %4222 = vst.msk [vmem:[%s984_s9 + $0x10] sm:$0xff] %vm3718_vm6, %v4219_v20  ;;  %v4167_v21 = vpop.f32.mrf.mxu1 }
 0xa9c PF: > { %p5115_p4 = scmp.ge.s32.totalorder %s5335_s28, 2  ;;  %s4264_s3 = sand.u32 1, %s5323_s22  }
 0xa9d   : > { %s4265_s8 = scalar_lea.sflag [#allocation6], %s4264_s3 }
 0xa9e   : > { %p5112_p5 = pnand %p5115_p4, %p5582_p6 }
 0xaa0   : > { %p5113_p7 = pneg %p5112_p5 }
 0xaa2   : > { %5318 = dma.done.wait (%p5113_p7), %s4265_s8, 16  }
 0xaa3   : > { %5320 = vsyncadd (%p5113_p7), %s4265_s8, 4294967280  ;;  %p76_p8 = scmp.ge.s32.totalorder %s5565_s1, 4   ;;  %s6803_s22 = smov %s5327_s23 }
 0xaa4   : > { %s6804_s23 = smov %s5331_s26  ;;  %s6805_s26 = smov %s5576_s7 }
 0xaa5   : > { %s6806_s28 = smov %s5565_s1  ;;  %78 = sbr.rel (!%p76_p8) target bundleno = 64 (0x40), region = 227 }
 0xaaa   :  { %4270 = vsyncpa [#allocation6], 1 }
 0xaab   :  { %4272 = vsyncpa [#allocation6 + $0x1], 1 }

</bundles_post_ra>
